<compile_context>
chip_gen: v7x
topology: tpu7x:2x2x1
jax: 0.10.0
libtpu: 0.0.40
codegen_flags: <defaults>
</compile_context>

<pallas_src>
import functools

import jax
import jax.numpy as jnp
from jax import lax
from jax.experimental import pallas as pl
from jax.experimental.pallas import tpu as pltpu


# --------------------------------------------------------------------------- #
# Fused kernel: input projection + blocked LSTM recurrence + fc head
# --------------------------------------------------------------------------- #
def _lstm_fused_kernel(x_ref, w_ih_ref, b_g_ref, w_hh_ref, w_fc_ref, b_fc_ref,
                       out_ref, h_scr, c_scr, gx_scr, hblk_scr,
                       *, hidden_dim, time_tile, batch_p):
    """One time block of TT steps for Bp (padded) sequences.

    x_ref:    (TT*Bp, E)  bf16 embedded inputs, time-major rows (t*Bp + b)
    w_ih_ref: (E, 4H)     bf16
    b_g_ref:  (1, 4H)     f32  (= b_ih + b_hh)
    w_hh_ref: (H, 4H)     bf16
    w_fc_ref: (H, V)      bf16
    b_fc_ref: (1, V)      f32
    out_ref:  (TT*Bp, V)  f32 logits for this block (sublane/lane dense)
    h_scr/c_scr: (Bp, H)  f32 recurrent state carried across grid steps
    gx_scr:   (TT*Bp, 4H) f32 per-block input projection
    hblk_scr: (TT*Bp, H)  f32 per-step hidden states for the batched fc head
    """
    H, TT, Bp = hidden_dim, time_tile, batch_p

    @pl.when(pl.program_id(0) == 0)
    def _():
        h_scr[...] = jnp.zeros_like(h_scr)
        c_scr[...] = jnp.zeros_like(c_scr)

    # Time-independent input projection for the whole block: one big bf16 MXU
    # matmul, off the serial per-step dependency chain (replaces the separate
    # xproj kernel and its gates_x HBM round trip).
    gx_scr[...] = (
        jnp.dot(x_ref[...], w_ih_ref[...], preferred_element_type=jnp.float32)
        + b_g_ref[...])

    h = h_scr[...]
    c = c_scr[...]

    # Statically unrolled serial recurrence.  Bp is a multiple of 8, so every
    # r = s*Bp slice below is sublane-aligned (plain vld/vst, no masked partials).
    # w_hh_ref[...] is read inside the loop on purpose: no giant hoisted live
    # range across the unroll (Mosaic streams MXU operands from VMEM anyway).
    # NOTE: at tiny batch the (Bp, H) @ (H, 4H) step is MXU/EUP latency-bound;
    # the wins applied here are layout / HBM / VMEM-side.
    for s in range(TT):
        r = s * Bp
        gates = gx_scr[pl.ds(r, Bp), :] + jnp.dot(
            h.astype(w_hh_ref.dtype), w_hh_ref[...],
            preferred_element_type=jnp.float32)
        i_g = jax.nn.sigmoid(gates[:, 0 * H:1 * H])   # PyTorch gate order i,f,g,o
        f_g = jax.nn.sigmoid(gates[:, 1 * H:2 * H])
        g_g = jnp.tanh(gates[:, 2 * H:3 * H])
        o_g = jax.nn.sigmoid(gates[:, 3 * H:4 * H])
        c = f_g * c + i_g * g_g
        h = o_g * jnp.tanh(c)
        hblk_scr[pl.ds(r, Bp), :] = h

    h_scr[...] = h
    c_scr[...] = c

    # Batched fc head: one (TT*Bp, H) @ (H, V) bf16 matmul per time block.
    # TODO(synk): for large vocab, split this into a separate parallel-grid
    # matmul (or V-tile it) so w_fc and the (rows, V) output leave the serial
    # kernel's VMEM (critical at v7x's 64 MiB).
    out_ref[...] = (
        jnp.dot(hblk_scr[...].astype(w_fc_ref.dtype), w_fc_ref[...],
                preferred_element_type=jnp.float32)
        + b_fc_ref[...]).astype(out_ref.dtype)


# --------------------------------------------------------------------------- #
# VMEM-budget-aware tiling helpers
# --------------------------------------------------------------------------- #
def _vmem_capacity_bytes():
    try:
        return int(pltpu.get_tpu_info().vmem_capacity_bytes)
    except Exception:
        return 64 << 20          # v7x worst case


def _block_byte_costs(Bp, E, H, V):
    G = 4 * H
    per_row = (2 * E * 2        # x block   (bf16, double-buffered)
               + 2 * V * 4      # out block (f32, double-buffered)
               + G * 4          # gates_x scratch (f32)
               + H * 4)         # h_blk scratch   (f32)
    fixed = ((E * G + H * G + H * V) * 2   # bf16 weights (single-buffered)
             + (G + V) * 4                 # biases
             + 2 * Bp * H * 4)             # h / c carries
    return per_row, fixed


def _pick_time_tile(T, Bp, E, H, V):
    """Largest time tile whose big buffers fit ~40% of physical VMEM (rows<=512)."""
    cap = _vmem_capacity_bytes()
    budget = int(cap * 0.4)
    per_row, fixed = _block_byte_costs(Bp, E, H, V)
    rows = max(Bp, min((budget - fixed) // per_row, 512))
    return int(max(1, min(rows // Bp, T, 64)))


# --------------------------------------------------------------------------- #
# Forward pass
# --------------------------------------------------------------------------- #
def lstm_model_forward(tokens, params, *, time_tile=None):
    """Pallas forward pass.  tokens: (B, T) int32  ->  logits (B, T, V) f32."""
    emb = params["embedding"]                       # (V, E) f32
    w_ih = params["w_ih"].astype(jnp.bfloat16)      # (E, 4H)
    w_hh = params["w_hh"].astype(jnp.bfloat16)      # (H, 4H)
    b_g = params["b_gates"].astype(jnp.float32)     # (1, 4H) == b_ih + b_hh
    w_fc = params["w_fc"].astype(jnp.bfloat16)      # (H, V)
    b_fc = params["b_fc"].astype(jnp.float32)       # (1, V)

    B, T = tokens.shape
    V, E = emb.shape
    H = w_hh.shape[0]
    G = 4 * H

    # Pad batch to a multiple of 8 sublanes (aligned per-step slices) and time to
    # a multiple of the time tile (padded trailing steps are sliced off below).
    Bp = ((B + 7) // 8) * 8
    TT = _pick_time_tile(T, Bp, E, H, V) if time_tile is None else int(time_tile)
    Tp = int(pl.cdiv(T, TT)) * TT
    rows = TT * Bp

    tok_p = jnp.zeros((Bp, Tp), dtype=jnp.int32).at[:B, :T].set(tokens)

    # TODO(synk): embedding gather stays in JAX glue (data-dependent gather); for
    # small vocabularies it could be fused via scalar-prefetched tokens + a
    # VMEM-resident embedding table.
    x_tm = jnp.take(emb, tok_p.T, axis=0).astype(jnp.bfloat16)   # (Tp, Bp, E)
    x_flat = x_tm.reshape(Tp * Bp, E)

    per_row, fixed = _block_byte_costs(Bp, E, H, V)
    cap = _vmem_capacity_bytes()
    vmem_limit = int(min(max(rows * per_row + fixed + (8 << 20), 16 << 20),
                         int(cap * 0.85)))

    kernel = functools.partial(
        _lstm_fused_kernel, hidden_dim=H, time_tile=TT, batch_p=Bp)

    def run(buffered_weights):
        def inv(shape):
            kw = {"pipeline_mode": pl.Buffered(1)} if buffered_weights else {}
            return pl.BlockSpec(shape, lambda t: (0,) * len(shape), **kw)

        # TODO(synk): on v7x add a leading "parallel" batch-half grid axis so the
        # recurrence runs on both TensorCores (time axis must stay "arbitrary").
        return pl.pallas_call(
            kernel,
            out_shape=jax.ShapeDtypeStruct((Tp * Bp, V), jnp.float32),
            grid_spec=pltpu.PrefetchScalarGridSpec(
                num_scalar_prefetch=0,
                grid=(Tp // TT,),
                in_specs=[
                    pl.BlockSpec((rows, E), lambda t: (t, 0)),   # x block
                    inv((E, G)),                                  # w_ih
                    inv((1, G)),                                  # b_gates
                    inv((H, G)),                                  # w_hh
                    inv((H, V)),                                  # w_fc
                    inv((1, V)),                                  # b_fc
                ],
                out_specs=pl.BlockSpec((rows, V), lambda t: (t, 0)),
                scratch_shapes=[
                    pltpu.VMEM((Bp, H), jnp.float32),     # h carry
                    pltpu.VMEM((Bp, H), jnp.float32),     # c carry
                    pltpu.VMEM((rows, G), jnp.float32),   # gates_x (per block)
                    pltpu.VMEM((rows, H), jnp.float32),   # per-block hidden states
                ],
            ),
            compiler_params=pltpu.CompilerParams(
                dimension_semantics=("arbitrary",),       # serial time recurrence
                vmem_limit_bytes=vmem_limit),
        )(x_flat, w_ih, b_g, w_hh, w_fc, b_fc)

    # Buffered(1) halves the VMEM footprint of the grid-invariant weights; fall
    # back to default double-buffering if this jax build rejects the hint.
    try:
        out_flat = run(True)
    except Exception:
        out_flat = run(False)

    # (Tp*Bp, V) -> (Tp, Bp, V) -> (Bp, Tp, V) -> slice padding, batch_first.
    out = out_flat.reshape(Tp, Bp, V).transpose(1, 0, 2)
    return out[:B, :T, :]


# --------------------------------------------------------------------------- #
# Pure-JAX f32 reference (lax.scan) for correctness checking
# --------------------------------------------------------------------------- #
def lstm_model_reference(tokens, params):
    emb = params["embedding"]
    w_ih, w_hh, b = params["w_ih"], params["w_hh"], params["b_gates"]
    w_fc, b_fc = params["w_fc"], params["b_fc"]
    H = w_hh.shape[0]
    B = tokens.shape[0]

    x = jnp.take(emb, tokens, axis=0)              # (B, T, E)
    x_tm = jnp.transpose(x, (1, 0, 2))             # (T, B, E)

    def step(carry, x_t):
        h, c = carry
        gates = x_t @ w_ih + h @ w_hh + b
        i = jax.nn.sigmoid(gates[:, 0 * H:1 * H])
        f = jax.nn.sigmoid(gates[:, 1 * H:2 * H])
        g = jnp.tanh(gates[:, 2 * H:3 * H])
        o = jax.nn.sigmoid(gates[:, 3 * H:4 * H])
        c = f * c + i * g
        h = o * jnp.tanh(c)
        return (h, c), h @ w_fc + b_fc

    init = (jnp.zeros((B, H), jnp.float32), jnp.zeros((B, H), jnp.float32))
    _, out_tm = lax.scan(step, init, x_tm)
    return jnp.transpose(out_tm, (1, 0, 2))


def init_params(key, vocab_size, embedding_dim, hidden_dim):
    ks = jax.random.split(key, 7)
    s = 0.1
    return {
        "embedding": s * jax.random.normal(ks[0], (vocab_size, embedding_dim), jnp.float32),
        # Stored pre-transposed relative to PyTorch: weight_ih_l0 (4H, E) -> (E, 4H).
        "w_ih": s * jax.random.normal(ks[1], (embedding_dim, 4 * hidden_dim), jnp.float32),
        "w_hh": s * jax.random.normal(ks[2], (hidden_dim, 4 * hidden_dim), jnp.float32),
        # b_gates = b_ih + b_hh (they always appear summed in the LSTM equations).
        "b_gates": s * jax.random.normal(ks[3], (1, 4 * hidden_dim), jnp.float32),
        "w_fc": s * jax.random.normal(ks[4], (hidden_dim, vocab_size), jnp.float32),
        "b_fc": s * jax.random.normal(ks[5], (1, vocab_size), jnp.float32),
    }


if __name__ == "__main__":
    VOCAB, EMB, HID = 256, 128, 128
    B, T = 2, 8

    key = jax.random.PRNGKey(0)
    pkey, tkey = jax.random.split(key)
    params = init_params(pkey, VOCAB, EMB, HID)
    tokens = jax.random.randint(tkey, (B, T), 0, VOCAB, dtype=jnp.int32)

    # time_tile=4 -> grid of 2 time blocks: exercises batch padding (2 -> 8) and
    # the h/c carry across grid steps.
    out = jax.block_until_ready(lstm_model_forward(tokens, params, time_tile=4))
    ref = jax.block_until_ready(lstm_model_reference(tokens, params))

    assert out.shape == (B, T, VOCAB), out.shape
    # bf16 matmul operands vs. the f32 reference -> loosened tolerance.
    err = float(jnp.max(jnp.abs(out - ref)))
    assert err < 2e-2, err
    print("KERNEL_OK")
</pallas_src>

<mosaic_0001>
module attributes {stable_mosaic.version = 11 : i64} {
  func.func @_lstm_fused_kernel(%arg0: i32, %arg1: memref<32x128xbf16, #tpu.memory_space<vmem>>, %arg2: memref<128x512xbf16, #tpu.memory_space<vmem>>, %arg3: memref<1x512xf32, #tpu.memory_space<vmem>>, %arg4: memref<128x512xbf16, #tpu.memory_space<vmem>>, %arg5: memref<128x256xbf16, #tpu.memory_space<vmem>>, %arg6: memref<1x256xf32, #tpu.memory_space<vmem>>, %arg7: memref<32x256xf32, #tpu.memory_space<vmem>>, %arg8: memref<8x128xf32, #tpu.memory_space<vmem>>, %arg9: memref<8x128xf32, #tpu.memory_space<vmem>>, %arg10: memref<32x512xf32, #tpu.memory_space<vmem>>, %arg11: memref<32x128xf32, #tpu.memory_space<vmem>>) attributes {dimension_semantics = [#tpu.dimension_semantics<arbitrary>], iteration_bounds = array<i64: 2>, scalar_prefetch = 0 : i64, scratch_operands = 4 : i64, tpu.core_type = #tpu.core_type<tc>, window_params = [{transform_indices = @transform_0, window_bounds = array<i64: 32, 128>}, {pipeline_mode = #tpu.pipeline_mode<synchronous>, transform_indices = @transform_1, window_bounds = array<i64: 128, 512>}, {pipeline_mode = #tpu.pipeline_mode<synchronous>, transform_indices = @transform_2, window_bounds = array<i64: 1, 512>}, {pipeline_mode = #tpu.pipeline_mode<synchronous>, transform_indices = @transform_3, window_bounds = array<i64: 128, 512>}, {pipeline_mode = #tpu.pipeline_mode<synchronous>, transform_indices = @transform_4, window_bounds = array<i64: 128, 256>}, {pipeline_mode = #tpu.pipeline_mode<synchronous>, transform_indices = @transform_5, window_bounds = array<i64: 1, 256>}, {transform_indices = @transform_6, window_bounds = array<i64: 32, 256>}]} {
    %c0_i32 = arith.constant 0 : i32
    %0 = arith.cmpi eq, %arg0, %c0_i32 : i32
    %1 = arith.extui %0 : i1 to i32
    %c0_i32_0 = arith.constant 0 : i32
    %2 = arith.cmpi ne, %1, %c0_i32_0 : i32
    scf.if %2 {
      %cst_62 = arith.constant 0.000000e+00 : f32
      %146 = vector.broadcast %cst_62 : f32 to vector<8x128xf32>
      %c0_63 = arith.constant 0 : index
      %c0_64 = arith.constant 0 : index
      %147 = vector.load %arg8[%c0_63, %c0_64] : memref<8x128xf32, #tpu.memory_space<vmem>>, vector<8x128xf32>
      tpu.vector_store %arg8[%c0_63, %c0_64], %146 {strides = array<i32>} : memref<8x128xf32, #tpu.memory_space<vmem>>, vector<8x128xf32>,
      %cst_65 = arith.constant 0.000000e+00 : f32
      %148 = vector.broadcast %cst_65 : f32 to vector<8x128xf32>
      %c0_66 = arith.constant 0 : index
      %c0_67 = arith.constant 0 : index
      %149 = vector.load %arg9[%c0_66, %c0_67] : memref<8x128xf32, #tpu.memory_space<vmem>>, vector<8x128xf32>
      tpu.vector_store %arg9[%c0_66, %c0_67], %148 {strides = array<i32>} : memref<8x128xf32, #tpu.memory_space<vmem>>, vector<8x128xf32>,
    } else {
    }
    %c0 = arith.constant 0 : index
    %c0_1 = arith.constant 0 : index
    %3 = vector.load %arg1[%c0, %c0_1] : memref<32x128xbf16, #tpu.memory_space<vmem>>, vector<32x128xbf16>
    %c0_2 = arith.constant 0 : index
    %c0_3 = arith.constant 0 : index
    %4 = vector.load %arg2[%c0_2, %c0_3] : memref<128x512xbf16, #tpu.memory_space<vmem>>, vector<128x512xbf16>
    %cst = arith.constant dense<0.000000e+00> : vector<32x512xf32>
    %5 = tpu.matmul %3, %4, %cst {dimension_numbers = #tpu.dot_dimension_numbers<[1], [0], [0], [1], [0, 0, 1, 1], [], []>} : vector<32x128xbf16>, vector<128x512xbf16>, vector<32x512xf32> -> vector<32x512xf32>
    %c0_4 = arith.constant 0 : index
    %c0_5 = arith.constant 0 : index
    %6 = vector.load %arg3[%c0_4, %c0_5] : memref<1x512xf32, #tpu.memory_space<vmem>>, vector<1x512xf32>
    %7 = vector.broadcast %6 : vector<1x512xf32> to vector<32x512xf32>
    %8 = arith.addf %5, %7 : vector<32x512xf32>
    %c0_6 = arith.constant 0 : index
    %c0_7 = arith.constant 0 : index
    %9 = vector.load %arg10[%c0_6, %c0_7] : memref<32x512xf32, #tpu.memory_space<vmem>>, vector<32x512xf32>
    tpu.vector_store %arg10[%c0_6, %c0_7], %8 {strides = array<i32>} : memref<32x512xf32, #tpu.memory_space<vmem>>, vector<32x512xf32>,
    %c0_8 = arith.constant 0 : index
    %c0_9 = arith.constant 0 : index
    %10 = vector.load %arg8[%c0_8, %c0_9] : memref<8x128xf32, #tpu.memory_space<vmem>>, vector<8x128xf32>
    %c0_10 = arith.constant 0 : index
    %c0_11 = arith.constant 0 : index
    %11 = vector.load %arg9[%c0_10, %c0_11] : memref<8x128xf32, #tpu.memory_space<vmem>>, vector<8x128xf32>
    %c0_12 = arith.constant 0 : index
    %c0_13 = arith.constant 0 : index
    %12 = vector.load %arg10[%c0_12, %c0_13] : memref<32x512xf32, #tpu.memory_space<vmem>>, vector<8x512xf32>
    %13 = arith.truncf %10 : vector<8x128xf32> to vector<8x128xbf16>
    %c0_14 = arith.constant 0 : index
    %c0_15 = arith.constant 0 : index
    %14 = vector.load %arg4[%c0_14, %c0_15] : memref<128x512xbf16, #tpu.memory_space<vmem>>, vector<128x512xbf16>
    %cst_16 = arith.constant dense<0.000000e+00> : vector<8x512xf32>
    %15 = tpu.matmul %13, %14, %cst_16 {dimension_numbers = #tpu.dot_dimension_numbers<[1], [0], [0], [1], [0, 0, 1, 1], [], []>} : vector<8x128xbf16>, vector<128x512xbf16>, vector<8x512xf32> -> vector<8x512xf32>
    %16 = arith.addf %12, %15 : vector<8x512xf32>
    %17 = vector.extract_strided_slice %16 {offsets = [0, 0], sizes = [8, 128], strides = [1, 1]} : vector<8x512xf32> to vector<8x128xf32>
    %18 = arith.negf %17 : vector<8x128xf32>
    %19 = math.exp %18 : vector<8x128xf32>
    %cst_17 = arith.constant 1.000000e+00 : f32
    %20 = vector.broadcast %cst_17 : f32 to vector<8x128xf32>
    %21 = arith.addf %20, %19 : vector<8x128xf32>
    %22 = arith.divf %20, %21 : vector<8x128xf32>
    %23 = vector.extract_strided_slice %16 {offsets = [0, 128], sizes = [8, 128], strides = [1, 1]} : vector<8x512xf32> to vector<8x128xf32>
    %24 = arith.negf %23 : vector<8x128xf32>
    %25 = math.exp %24 : vector<8x128xf32>
    %cst_18 = arith.constant 1.000000e+00 : f32
    %26 = vector.broadcast %cst_18 : f32 to vector<8x128xf32>
    %27 = arith.addf %26, %25 : vector<8x128xf32>
    %28 = arith.divf %26, %27 : vector<8x128xf32>
    %29 = vector.extract_strided_slice %16 {offsets = [0, 256], sizes = [8, 128], strides = [1, 1]} : vector<8x512xf32> to vector<8x128xf32>
    %30 = math.tanh %29 : vector<8x128xf32>
    %31 = vector.extract_strided_slice %16 {offsets = [0, 384], sizes = [8, 128], strides = [1, 1]} : vector<8x512xf32> to vector<8x128xf32>
    %32 = arith.negf %31 : vector<8x128xf32>
    %33 = math.exp %32 : vector<8x128xf32>
    %cst_19 = arith.constant 1.000000e+00 : f32
    %34 = vector.broadcast %cst_19 : f32 to vector<8x128xf32>
    %35 = arith.addf %34, %33 : vector<8x128xf32>
    %36 = arith.divf %34, %35 : vector<8x128xf32>
    %37 = arith.mulf %28, %11 : vector<8x128xf32>
    %38 = arith.mulf %22, %30 : vector<8x128xf32>
    %39 = arith.addf %37, %38 : vector<8x128xf32>
    %40 = math.tanh %39 : vector<8x128xf32>
    %41 = arith.mulf %36, %40 : vector<8x128xf32>
    %c0_20 = arith.constant 0 : index
    %c0_21 = arith.constant 0 : index
    %42 = vector.load %arg11[%c0_20, %c0_21] : memref<32x128xf32, #tpu.memory_space<vmem>>, vector<8x128xf32>
    tpu.vector_store %arg11[%c0_20, %c0_21], %41 {strides = array<i32>} : memref<32x128xf32, #tpu.memory_space<vmem>>, vector<8x128xf32>,
    %c8 = arith.constant 8 : index
    %c0_22 = arith.constant 0 : index
    %43 = vector.load %arg10[%c8, %c0_22] : memref<32x512xf32, #tpu.memory_space<vmem>>, vector<8x512xf32>
    %44 = arith.truncf %41 : vector<8x128xf32> to vector<8x128xbf16>
    %c0_23 = arith.constant 0 : index
    %c0_24 = arith.constant 0 : index
    %45 = vector.load %arg4[%c0_23, %c0_24] : memref<128x512xbf16, #tpu.memory_space<vmem>>, vector<128x512xbf16>
    %cst_25 = arith.constant dense<0.000000e+00> : vector<8x512xf32>
    %46 = tpu.matmul %44, %45, %cst_25 {dimension_numbers = #tpu.dot_dimension_numbers<[1], [0], [0], [1], [0, 0, 1, 1], [], []>} : vector<8x128xbf16>, vector<128x512xbf16>, vector<8x512xf32> -> vector<8x512xf32>
    %47 = arith.addf %43, %46 : vector<8x512xf32>
    %48 = vector.extract_strided_slice %47 {offsets = [0, 0], sizes = [8, 128], strides = [1, 1]} : vector<8x512xf32> to vector<8x128xf32>
    %49 = arith.negf %48 : vector<8x128xf32>
    %50 = math.exp %49 : vector<8x128xf32>
    %cst_26 = arith.constant 1.000000e+00 : f32
    %51 = vector.broadcast %cst_26 : f32 to vector<8x128xf32>
    %52 = arith.addf %51, %50 : vector<8x128xf32>
    %53 = arith.divf %51, %52 : vector<8x128xf32>
    %54 = vector.extract_strided_slice %47 {offsets = [0, 128], sizes = [8, 128], strides = [1, 1]} : vector<8x512xf32> to vector<8x128xf32>
    %55 = arith.negf %54 : vector<8x128xf32>
    %56 = math.exp %55 : vector<8x128xf32>
    %cst_27 = arith.constant 1.000000e+00 : f32
    %57 = vector.broadcast %cst_27 : f32 to vector<8x128xf32>
    %58 = arith.addf %57, %56 : vector<8x128xf32>
    %59 = arith.divf %57, %58 : vector<8x128xf32>
    %60 = vector.extract_strided_slice %47 {offsets = [0, 256], sizes = [8, 128], strides = [1, 1]} : vector<8x512xf32> to vector<8x128xf32>
    %61 = math.tanh %60 : vector<8x128xf32>
    %62 = vector.extract_strided_slice %47 {offsets = [0, 384], sizes = [8, 128], strides = [1, 1]} : vector<8x512xf32> to vector<8x128xf32>
    %63 = arith.negf %62 : vector<8x128xf32>
    %64 = math.exp %63 : vector<8x128xf32>
    %cst_28 = arith.constant 1.000000e+00 : f32
    %65 = vector.broadcast %cst_28 : f32 to vector<8x128xf32>
    %66 = arith.addf %65, %64 : vector<8x128xf32>
    %67 = arith.divf %65, %66 : vector<8x128xf32>
    %68 = arith.mulf %59, %39 : vector<8x128xf32>
    %69 = arith.mulf %53, %61 : vector<8x128xf32>
    %70 = arith.addf %68, %69 : vector<8x128xf32>
    %71 = math.tanh %70 : vector<8x128xf32>
    %72 = arith.mulf %67, %71 : vector<8x128xf32>
    %c8_29 = arith.constant 8 : index
    %c0_30 = arith.constant 0 : index
    %73 = vector.load %arg11[%c8_29, %c0_30] : memref<32x128xf32, #tpu.memory_space<vmem>>, vector<8x128xf32>
    tpu.vector_store %arg11[%c8_29, %c0_30], %72 {strides = array<i32>} : memref<32x128xf32, #tpu.memory_space<vmem>>, vector<8x128xf32>,
    %c16 = arith.constant 16 : index
    %c0_31 = arith.constant 0 : index
    %74 = vector.load %arg10[%c16, %c0_31] : memref<32x512xf32, #tpu.memory_space<vmem>>, vector<8x512xf32>
    %75 = arith.truncf %72 : vector<8x128xf32> to vector<8x128xbf16>
    %c0_32 = arith.constant 0 : index
    %c0_33 = arith.constant 0 : index
    %76 = vector.load %arg4[%c0_32, %c0_33] : memref<128x512xbf16, #tpu.memory_space<vmem>>, vector<128x512xbf16>
    %cst_34 = arith.constant dense<0.000000e+00> : vector<8x512xf32>
    %77 = tpu.matmul %75, %76, %cst_34 {dimension_numbers = #tpu.dot_dimension_numbers<[1], [0], [0], [1], [0, 0, 1, 1], [], []>} : vector<8x128xbf16>, vector<128x512xbf16>, vector<8x512xf32> -> vector<8x512xf32>
    %78 = arith.addf %74, %77 : vector<8x512xf32>
    %79 = vector.extract_strided_slice %78 {offsets = [0, 0], sizes = [8, 128], strides = [1, 1]} : vector<8x512xf32> to vector<8x128xf32>
    %80 = arith.negf %79 : vector<8x128xf32>
    %81 = math.exp %80 : vector<8x128xf32>
    %cst_35 = arith.constant 1.000000e+00 : f32
    %82 = vector.broadcast %cst_35 : f32 to vector<8x128xf32>
    %83 = arith.addf %82, %81 : vector<8x128xf32>
    %84 = arith.divf %82, %83 : vector<8x128xf32>
    %85 = vector.extract_strided_slice %78 {offsets = [0, 128], sizes = [8, 128], strides = [1, 1]} : vector<8x512xf32> to vector<8x128xf32>
    %86 = arith.negf %85 : vector<8x128xf32>
    %87 = math.exp %86 : vector<8x128xf32>
    %cst_36 = arith.constant 1.000000e+00 : f32
    %88 = vector.broadcast %cst_36 : f32 to vector<8x128xf32>
    %89 = arith.addf %88, %87 : vector<8x128xf32>
    %90 = arith.divf %88, %89 : vector<8x128xf32>
    %91 = vector.extract_strided_slice %78 {offsets = [0, 256], sizes = [8, 128], strides = [1, 1]} : vector<8x512xf32> to vector<8x128xf32>
    %92 = math.tanh %91 : vector<8x128xf32>
    %93 = vector.extract_strided_slice %78 {offsets = [0, 384], sizes = [8, 128], strides = [1, 1]} : vector<8x512xf32> to vector<8x128xf32>
    %94 = arith.negf %93 : vector<8x128xf32>
    %95 = math.exp %94 : vector<8x128xf32>
    %cst_37 = arith.constant 1.000000e+00 : f32
    %96 = vector.broadcast %cst_37 : f32 to vector<8x128xf32>
    %97 = arith.addf %96, %95 : vector<8x128xf32>
    %98 = arith.divf %96, %97 : vector<8x128xf32>
    %99 = arith.mulf %90, %70 : vector<8x128xf32>
    %100 = arith.mulf %84, %92 : vector<8x128xf32>
    %101 = arith.addf %99, %100 : vector<8x128xf32>
    %102 = math.tanh %101 : vector<8x128xf32>
    %103 = arith.mulf %98, %102 : vector<8x128xf32>
    %c16_38 = arith.constant 16 : index
    %c0_39 = arith.constant 0 : index
    %104 = vector.load %arg11[%c16_38, %c0_39] : memref<32x128xf32, #tpu.memory_space<vmem>>, vector<8x128xf32>
    tpu.vector_store %arg11[%c16_38, %c0_39], %103 {strides = array<i32>} : memref<32x128xf32, #tpu.memory_space<vmem>>, vector<8x128xf32>,
    %c24 = arith.constant 24 : index
    %c0_40 = arith.constant 0 : index
    %105 = vector.load %arg10[%c24, %c0_40] : memref<32x512xf32, #tpu.memory_space<vmem>>, vector<8x512xf32>
    %106 = arith.truncf %103 : vector<8x128xf32> to vector<8x128xbf16>
    %c0_41 = arith.constant 0 : index
    %c0_42 = arith.constant 0 : index
    %107 = vector.load %arg4[%c0_41, %c0_42] : memref<128x512xbf16, #tpu.memory_space<vmem>>, vector<128x512xbf16>
    %cst_43 = arith.constant dense<0.000000e+00> : vector<8x512xf32>
    %108 = tpu.matmul %106, %107, %cst_43 {dimension_numbers = #tpu.dot_dimension_numbers<[1], [0], [0], [1], [0, 0, 1, 1], [], []>} : vector<8x128xbf16>, vector<128x512xbf16>, vector<8x512xf32> -> vector<8x512xf32>
    %109 = arith.addf %105, %108 : vector<8x512xf32>
    %110 = vector.extract_strided_slice %109 {offsets = [0, 0], sizes = [8, 128], strides = [1, 1]} : vector<8x512xf32> to vector<8x128xf32>
    %111 = arith.negf %110 : vector<8x128xf32>
    %112 = math.exp %111 : vector<8x128xf32>
    %cst_44 = arith.constant 1.000000e+00 : f32
    %113 = vector.broadcast %cst_44 : f32 to vector<8x128xf32>
    %114 = arith.addf %113, %112 : vector<8x128xf32>
    %115 = arith.divf %113, %114 : vector<8x128xf32>
    %116 = vector.extract_strided_slice %109 {offsets = [0, 128], sizes = [8, 128], strides = [1, 1]} : vector<8x512xf32> to vector<8x128xf32>
    %117 = arith.negf %116 : vector<8x128xf32>
    %118 = math.exp %117 : vector<8x128xf32>
    %cst_45 = arith.constant 1.000000e+00 : f32
    %119 = vector.broadcast %cst_45 : f32 to vector<8x128xf32>
    %120 = arith.addf %119, %118 : vector<8x128xf32>
    %121 = arith.divf %119, %120 : vector<8x128xf32>
    %122 = vector.extract_strided_slice %109 {offsets = [0, 256], sizes = [8, 128], strides = [1, 1]} : vector<8x512xf32> to vector<8x128xf32>
    %123 = math.tanh %122 : vector<8x128xf32>
    %124 = vector.extract_strided_slice %109 {offsets = [0, 384], sizes = [8, 128], strides = [1, 1]} : vector<8x512xf32> to vector<8x128xf32>
    %125 = arith.negf %124 : vector<8x128xf32>
    %126 = math.exp %125 : vector<8x128xf32>
    %cst_46 = arith.constant 1.000000e+00 : f32
    %127 = vector.broadcast %cst_46 : f32 to vector<8x128xf32>
    %128 = arith.addf %127, %126 : vector<8x128xf32>
    %129 = arith.divf %127, %128 : vector<8x128xf32>
    %130 = arith.mulf %121, %101 : vector<8x128xf32>
    %131 = arith.mulf %115, %123 : vector<8x128xf32>
    %132 = arith.addf %130, %131 : vector<8x128xf32>
    %133 = math.tanh %132 : vector<8x128xf32>
    %134 = arith.mulf %129, %133 : vector<8x128xf32>
    %c24_47 = arith.constant 24 : index
    %c0_48 = arith.constant 0 : index
    %135 = vector.load %arg11[%c24_47, %c0_48] : memref<32x128xf32, #tpu.memory_space<vmem>>, vector<8x128xf32>
    tpu.vector_store %arg11[%c24_47, %c0_48], %134 {strides = array<i32>} : memref<32x128xf32, #tpu.memory_space<vmem>>, vector<8x128xf32>,
    %c0_49 = arith.constant 0 : index
    %c0_50 = arith.constant 0 : index
    %136 = vector.load %arg8[%c0_49, %c0_50] : memref<8x128xf32, #tpu.memory_space<vmem>>, vector<8x128xf32>
    tpu.vector_store %arg8[%c0_49, %c0_50], %134 {strides = array<i32>} : memref<8x128xf32, #tpu.memory_space<vmem>>, vector<8x128xf32>,
    %c0_51 = arith.constant 0 : index
    %c0_52 = arith.constant 0 : index
    %137 = vector.load %arg9[%c0_51, %c0_52] : memref<8x128xf32, #tpu.memory_space<vmem>>, vector<8x128xf32>
    tpu.vector_store %arg9[%c0_51, %c0_52], %132 {strides = array<i32>} : memref<8x128xf32, #tpu.memory_space<vmem>>, vector<8x128xf32>,
    %c0_53 = arith.constant 0 : index
    %c0_54 = arith.constant 0 : index
    %138 = vector.load %arg11[%c0_53, %c0_54] : memref<32x128xf32, #tpu.memory_space<vmem>>, vector<32x128xf32>
    %139 = arith.truncf %138 : vector<32x128xf32> to vector<32x128xbf16>
    %c0_55 = arith.constant 0 : index
    %c0_56 = arith.constant 0 : index
    %140 = vector.load %arg5[%c0_55, %c0_56] : memref<128x256xbf16, #tpu.memory_space<vmem>>, vector<128x256xbf16>
    %cst_57 = arith.constant dense<0.000000e+00> : vector<32x256xf32>
    %141 = tpu.matmul %139, %140, %cst_57 {dimension_numbers = #tpu.dot_dimension_numbers<[1], [0], [0], [1], [0, 0, 1, 1], [], []>} : vector<32x128xbf16>, vector<128x256xbf16>, vector<32x256xf32> -> vector<32x256xf32>
    %c0_58 = arith.constant 0 : index
    %c0_59 = arith.constant 0 : index
    %142 = vector.load %arg6[%c0_58, %c0_59] : memref<1x256xf32, #tpu.memory_space<vmem>>, vector<1x256xf32>
    %143 = vector.broadcast %142 : vector<1x256xf32> to vector<32x256xf32>
    %144 = arith.addf %141, %143 : vector<32x256xf32>
    %c0_60 = arith.constant 0 : index
    %c0_61 = arith.constant 0 : index
    %145 = vector.load %arg7[%c0_60, %c0_61] : memref<32x256xf32, #tpu.memory_space<vmem>>, vector<32x256xf32>
    tpu.vector_store %arg7[%c0_60, %c0_61], %144 {strides = array<i32>} : memref<32x256xf32, #tpu.memory_space<vmem>>, vector<32x256xf32>,
    return
  }
  func.func @transform_0(%arg0: i32) -> (i32, i32) {
    %c0_i32 = arith.constant 0 : i32
    %c0_i32_0 = arith.constant 0 : i32
    return %arg0, %c0_i32 : i32, i32
  }
  func.func @transform_1(%arg0: i32) -> (i32, i32) {
    %c0_i32 = arith.constant 0 : i32
    %c0_i32_0 = arith.constant 0 : i32
    %c0_i32_1 = arith.constant 0 : i32
    return %c0_i32, %c0_i32_0 : i32, i32
  }
  func.func @transform_2(%arg0: i32) -> (i32, i32) {
    %c0_i32 = arith.constant 0 : i32
    %c0_i32_0 = arith.constant 0 : i32
    %c0_i32_1 = arith.constant 0 : i32
    return %c0_i32, %c0_i32_0 : i32, i32
  }
  func.func @transform_3(%arg0: i32) -> (i32, i32) {
    %c0_i32 = arith.constant 0 : i32
    %c0_i32_0 = arith.constant 0 : i32
    %c0_i32_1 = arith.constant 0 : i32
    return %c0_i32, %c0_i32_0 : i32, i32
  }
  func.func @transform_4(%arg0: i32) -> (i32, i32) {
    %c0_i32 = arith.constant 0 : i32
    %c0_i32_0 = arith.constant 0 : i32
    %c0_i32_1 = arith.constant 0 : i32
    return %c0_i32, %c0_i32_0 : i32, i32
  }
  func.func @transform_5(%arg0: i32) -> (i32, i32) {
    %c0_i32 = arith.constant 0 : i32
    %c0_i32_0 = arith.constant 0 : i32
    %c0_i32_1 = arith.constant 0 : i32
    return %c0_i32, %c0_i32_0 : i32, i32
  }
  func.func @transform_6(%arg0: i32) -> (i32, i32) {
    %c0_i32 = arith.constant 0 : i32
    %c0_i32_0 = arith.constant 0 : i32
    return %arg0, %c0_i32 : i32, i32
  }
}

module attributes {stable_mosaic.version = 11 : i64} {
  func.func @_lstm_fused_kernel(%arg0: i32, %arg1: memref<32x128xbf16, #tpu.memory_space<vmem>>, %arg2: memref<128x512xbf16, #tpu.memory_space<vmem>>, %arg3: memref<1x512xf32, #tpu.memory_space<vmem>>, %arg4: memref<128x512xbf16, #tpu.memory_space<vmem>>, %arg5: memref<128x256xbf16, #tpu.memory_space<vmem>>, %arg6: memref<1x256xf32, #tpu.memory_space<vmem>>, %arg7: memref<32x256xf32, #tpu.memory_space<vmem>>, %arg8: memref<8x128xf32, #tpu.memory_space<vmem>>, %arg9: memref<8x128xf32, #tpu.memory_space<vmem>>, %arg10: memref<32x512xf32, #tpu.memory_space<vmem>>, %arg11: memref<32x128xf32, #tpu.memory_space<vmem>>) attributes {dimension_semantics = [#tpu.dimension_semantics<arbitrary>], iteration_bounds = array<i64: 2>, scalar_prefetch = 0 : i64, scratch_operands = 4 : i64, tpu.core_type = #tpu.core_type<tc>, window_params = [{transform_indices = @transform_0, window_bounds = array<i64: 32, 128>}, {pipeline_mode = #tpu.pipeline_mode<synchronous>, transform_indices = @transform_1, window_bounds = array<i64: 128, 512>}, {pipeline_mode = #tpu.pipeline_mode<synchronous>, transform_indices = @transform_2, window_bounds = array<i64: 1, 512>}, {pipeline_mode = #tpu.pipeline_mode<synchronous>, transform_indices = @transform_3, window_bounds = array<i64: 128, 512>}, {pipeline_mode = #tpu.pipeline_mode<synchronous>, transform_indices = @transform_4, window_bounds = array<i64: 128, 256>}, {pipeline_mode = #tpu.pipeline_mode<synchronous>, transform_indices = @transform_5, window_bounds = array<i64: 1, 256>}, {transform_indices = @transform_6, window_bounds = array<i64: 32, 256>}]} {
    %c0_i32 = arith.constant 0 : i32
    %0 = arith.cmpi eq, %arg0, %c0_i32 : i32
    %1 = arith.extui %0 : i1 to i32
    %c0_i32_0 = arith.constant 0 : i32
    %2 = arith.cmpi ne, %1, %c0_i32_0 : i32
    scf.if %2 {
      %cst_62 = arith.constant 0.000000e+00 : f32
      %146 = vector.broadcast %cst_62 : f32 to vector<8x128xf32>
      %c0_63 = arith.constant 0 : index
      %c0_64 = arith.constant 0 : index
      %147 = vector.load %arg8[%c0_63, %c0_64] : memref<8x128xf32, #tpu.memory_space<vmem>>, vector<8x128xf32>
      tpu.vector_store %arg8[%c0_63, %c0_64], %146 {strides = array<i32>} : memref<8x128xf32, #tpu.memory_space<vmem>>, vector<8x128xf32>,
      %cst_65 = arith.constant 0.000000e+00 : f32
      %148 = vector.broadcast %cst_65 : f32 to vector<8x128xf32>
      %c0_66 = arith.constant 0 : index
      %c0_67 = arith.constant 0 : index
      %149 = vector.load %arg9[%c0_66, %c0_67] : memref<8x128xf32, #tpu.memory_space<vmem>>, vector<8x128xf32>
      tpu.vector_store %arg9[%c0_66, %c0_67], %148 {strides = array<i32>} : memref<8x128xf32, #tpu.memory_space<vmem>>, vector<8x128xf32>,
    } else {
    }
    %c0 = arith.constant 0 : index
    %c0_1 = arith.constant 0 : index
    %3 = vector.load %arg1[%c0, %c0_1] : memref<32x128xbf16, #tpu.memory_space<vmem>>, vector<32x128xbf16>
    %c0_2 = arith.constant 0 : index
    %c0_3 = arith.constant 0 : index
    %4 = vector.load %arg2[%c0_2, %c0_3] : memref<128x512xbf16, #tpu.memory_space<vmem>>, vector<128x512xbf16>
    %cst = arith.constant dense<0.000000e+00> : vector<32x512xf32>
    %5 = tpu.matmul %3, %4, %cst {dimension_numbers = #tpu.dot_dimension_numbers<[1], [0], [0], [1], [0, 0, 1, 1], [], []>} : vector<32x128xbf16>, vector<128x512xbf16>, vector<32x512xf32> -> vector<32x512xf32>
    %c0_4 = arith.constant 0 : index
    %c0_5 = arith.constant 0 : index
    %6 = vector.load %arg3[%c0_4, %c0_5] : memref<1x512xf32, #tpu.memory_space<vmem>>, vector<1x512xf32>
    %7 = vector.broadcast %6 : vector<1x512xf32> to vector<32x512xf32>
    %8 = arith.addf %5, %7 : vector<32x512xf32>
    %c0_6 = arith.constant 0 : index
    %c0_7 = arith.constant 0 : index
    %9 = vector.load %arg10[%c0_6, %c0_7] : memref<32x512xf32, #tpu.memory_space<vmem>>, vector<32x512xf32>
    tpu.vector_store %arg10[%c0_6, %c0_7], %8 {strides = array<i32>} : memref<32x512xf32, #tpu.memory_space<vmem>>, vector<32x512xf32>,
    %c0_8 = arith.constant 0 : index
    %c0_9 = arith.constant 0 : index
    %10 = vector.load %arg8[%c0_8, %c0_9] : memref<8x128xf32, #tpu.memory_space<vmem>>, vector<8x128xf32>
    %c0_10 = arith.constant 0 : index
    %c0_11 = arith.constant 0 : index
    %11 = vector.load %arg9[%c0_10, %c0_11] : memref<8x128xf32, #tpu.memory_space<vmem>>, vector<8x128xf32>
    %c0_12 = arith.constant 0 : index
    %c0_13 = arith.constant 0 : index
    %12 = vector.load %arg10[%c0_12, %c0_13] : memref<32x512xf32, #tpu.memory_space<vmem>>, vector<8x512xf32>
    %13 = arith.truncf %10 : vector<8x128xf32> to vector<8x128xbf16>
    %c0_14 = arith.constant 0 : index
    %c0_15 = arith.constant 0 : index
    %14 = vector.load %arg4[%c0_14, %c0_15] : memref<128x512xbf16, #tpu.memory_space<vmem>>, vector<128x512xbf16>
    %cst_16 = arith.constant dense<0.000000e+00> : vector<8x512xf32>
    %15 = tpu.matmul %13, %14, %cst_16 {dimension_numbers = #tpu.dot_dimension_numbers<[1], [0], [0], [1], [0, 0, 1, 1], [], []>} : vector<8x128xbf16>, vector<128x512xbf16>, vector<8x512xf32> -> vector<8x512xf32>
    %16 = arith.addf %12, %15 : vector<8x512xf32>
    %17 = vector.extract_strided_slice %16 {offsets = [0, 0], sizes = [8, 128], strides = [1, 1]} : vector<8x512xf32> to vector<8x128xf32>
    %18 = arith.negf %17 : vector<8x128xf32>
    %19 = math.exp %18 : vector<8x128xf32>
    %cst_17 = arith.constant 1.000000e+00 : f32
    %20 = vector.broadcast %cst_17 : f32 to vector<8x128xf32>
    %21 = arith.addf %20, %19 : vector<8x128xf32>
    %22 = arith.divf %20, %21 : vector<8x128xf32>
    %23 = vector.extract_strided_slice %16 {offsets = [0, 128], sizes = [8, 128], strides = [1, 1]} : vector<8x512xf32> to vector<8x128xf32>
    %24 = arith.negf %23 : vector<8x128xf32>
    %25 = math.exp %24 : vector<8x128xf32>
    %cst_18 = arith.constant 1.000000e+00 : f32
    %26 = vector.broadcast %cst_18 : f32 to vector<8x128xf32>
    %27 = arith.addf %26, %25 : vector<8x128xf32>
    %28 = arith.divf %26, %27 : vector<8x128xf32>
    %29 = vector.extract_strided_slice %16 {offsets = [0, 256], sizes = [8, 128], strides = [1, 1]} : vector<8x512xf32> to vector<8x128xf32>
    %30 = math.tanh %29 : vector<8x128xf32>
    %31 = vector.extract_strided_slice %16 {offsets = [0, 384], sizes = [8, 128], strides = [1, 1]} : vector<8x512xf32> to vector<8x128xf32>
    %32 = arith.negf %31 : vector<8x128xf32>
    %33 = math.exp %32 : vector<8x128xf32>
    %cst_19 = arith.constant 1.000000e+00 : f32
    %34 = vector.broadcast %cst_19 : f32 to vector<8x128xf32>
    %35 = arith.addf %34, %33 : vector<8x128xf32>
    %36 = arith.divf %34, %35 : vector<8x128xf32>
    %37 = arith.mulf %28, %11 : vector<8x128xf32>
    %38 = arith.mulf %22, %30 : vector<8x128xf32>
    %39 = arith.addf %37, %38 : vector<8x128xf32>
    %40 = math.tanh %39 : vector<8x128xf32>
    %41 = arith.mulf %36, %40 : vector<8x128xf32>
    %c0_20 = arith.constant 0 : index
    %c0_21 = arith.constant 0 : index
    %42 = vector.load %arg11[%c0_20, %c0_21] : memref<32x128xf32, #tpu.memory_space<vmem>>, vector<8x128xf32>
    tpu.vector_store %arg11[%c0_20, %c0_21], %41 {strides = array<i32>} : memref<32x128xf32, #tpu.memory_space<vmem>>, vector<8x128xf32>,
    %c8 = arith.constant 8 : index
    %c0_22 = arith.constant 0 : index
    %43 = vector.load %arg10[%c8, %c0_22] : memref<32x512xf32, #tpu.memory_space<vmem>>, vector<8x512xf32>
    %44 = arith.truncf %41 : vector<8x128xf32> to vector<8x128xbf16>
    %c0_23 = arith.constant 0 : index
    %c0_24 = arith.constant 0 : index
    %45 = vector.load %arg4[%c0_23, %c0_24] : memref<128x512xbf16, #tpu.memory_space<vmem>>, vector<128x512xbf16>
    %cst_25 = arith.constant dense<0.000000e+00> : vector<8x512xf32>
    %46 = tpu.matmul %44, %45, %cst_25 {dimension_numbers = #tpu.dot_dimension_numbers<[1], [0], [0], [1], [0, 0, 1, 1], [], []>} : vector<8x128xbf16>, vector<128x512xbf16>, vector<8x512xf32> -> vector<8x512xf32>
    %47 = arith.addf %43, %46 : vector<8x512xf32>
    %48 = vector.extract_strided_slice %47 {offsets = [0, 0], sizes = [8, 128], strides = [1, 1]} : vector<8x512xf32> to vector<8x128xf32>
    %49 = arith.negf %48 : vector<8x128xf32>
    %50 = math.exp %49 : vector<8x128xf32>
    %cst_26 = arith.constant 1.000000e+00 : f32
    %51 = vector.broadcast %cst_26 : f32 to vector<8x128xf32>
    %52 = arith.addf %51, %50 : vector<8x128xf32>
    %53 = arith.divf %51, %52 : vector<8x128xf32>
    %54 = vector.extract_strided_slice %47 {offsets = [0, 128], sizes = [8, 128], strides = [1, 1]} : vector<8x512xf32> to vector<8x128xf32>
    %55 = arith.negf %54 : vector<8x128xf32>
    %56 = math.exp %55 : vector<8x128xf32>
    %cst_27 = arith.constant 1.000000e+00 : f32
    %57 = vector.broadcast %cst_27 : f32 to vector<8x128xf32>
    %58 = arith.addf %57, %56 : vector<8x128xf32>
    %59 = arith.divf %57, %58 : vector<8x128xf32>
    %60 = vector.extract_strided_slice %47 {offsets = [0, 256], sizes = [8, 128], strides = [1, 1]} : vector<8x512xf32> to vector<8x128xf32>
    %61 = math.tanh %60 : vector<8x128xf32>
    %62 = vector.extract_strided_slice %47 {offsets = [0, 384], sizes = [8, 128], strides = [1, 1]} : vector<8x512xf32> to vector<8x128xf32>
    %63 = arith.negf %62 : vector<8x128xf32>
    %64 = math.exp %63 : vector<8x128xf32>
    %cst_28 = arith.constant 1.000000e+00 : f32
    %65 = vector.broadcast %cst_28 : f32 to vector<8x128xf32>
    %66 = arith.addf %65, %64 : vector<8x128xf32>
    %67 = arith.divf %65, %66 : vector<8x128xf32>
    %68 = arith.mulf %59, %39 : vector<8x128xf32>
    %69 = arith.mulf %53, %61 : vector<8x128xf32>
    %70 = arith.addf %68, %69 : vector<8x128xf32>
    %71 = math.tanh %70 : vector<8x128xf32>
    %72 = arith.mulf %67, %71 : vector<8x128xf32>
    %c8_29 = arith.constant 8 : index
    %c0_30 = arith.constant 0 : index
    %73 = vector.load %arg11[%c8_29, %c0_30] : memref<32x128xf32, #tpu.memory_space<vmem>>, vector<8x128xf32>
    tpu.vector_store %arg11[%c8_29, %c0_30], %72 {strides = array<i32>} : memref<32x128xf32, #tpu.memory_space<vmem>>, vector<8x128xf32>,
    %c16 = arith.constant 16 : index
    %c0_31 = arith.constant 0 : index
    %74 = vector.load %arg10[%c16, %c0_31] : memref<32x512xf32, #tpu.memory_space<vmem>>, vector<8x512xf32>
    %75 = arith.truncf %72 : vector<8x128xf32> to vector<8x128xbf16>
    %c0_32 = arith.constant 0 : index
    %c0_33 = arith.constant 0 : index
    %76 = vector.load %arg4[%c0_32, %c0_33] : memref<128x512xbf16, #tpu.memory_space<vmem>>, vector<128x512xbf16>
    %cst_34 = arith.constant dense<0.000000e+00> : vector<8x512xf32>
    %77 = tpu.matmul %75, %76, %cst_34 {dimension_numbers = #tpu.dot_dimension_numbers<[1], [0], [0], [1], [0, 0, 1, 1], [], []>} : vector<8x128xbf16>, vector<128x512xbf16>, vector<8x512xf32> -> vector<8x512xf32>
    %78 = arith.addf %74, %77 : vector<8x512xf32>
    %79 = vector.extract_strided_slice %78 {offsets = [0, 0], sizes = [8, 128], strides = [1, 1]} : vector<8x512xf32> to vector<8x128xf32>
    %80 = arith.negf %79 : vector<8x128xf32>
    %81 = math.exp %80 : vector<8x128xf32>
    %cst_35 = arith.constant 1.000000e+00 : f32
    %82 = vector.broadcast %cst_35 : f32 to vector<8x128xf32>
    %83 = arith.addf %82, %81 : vector<8x128xf32>
    %84 = arith.divf %82, %83 : vector<8x128xf32>
    %85 = vector.extract_strided_slice %78 {offsets = [0, 128], sizes = [8, 128], strides = [1, 1]} : vector<8x512xf32> to vector<8x128xf32>
    %86 = arith.negf %85 : vector<8x128xf32>
    %87 = math.exp %86 : vector<8x128xf32>
    %cst_36 = arith.constant 1.000000e+00 : f32
    %88 = vector.broadcast %cst_36 : f32 to vector<8x128xf32>
    %89 = arith.addf %88, %87 : vector<8x128xf32>
    %90 = arith.divf %88, %89 : vector<8x128xf32>
    %91 = vector.extract_strided_slice %78 {offsets = [0, 256], sizes = [8, 128], strides = [1, 1]} : vector<8x512xf32> to vector<8x128xf32>
    %92 = math.tanh %91 : vector<8x128xf32>
    %93 = vector.extract_strided_slice %78 {offsets = [0, 384], sizes = [8, 128], strides = [1, 1]} : vector<8x512xf32> to vector<8x128xf32>
    %94 = arith.negf %93 : vector<8x128xf32>
    %95 = math.exp %94 : vector<8x128xf32>
    %cst_37 = arith.constant 1.000000e+00 : f32
    %96 = vector.broadcast %cst_37 : f32 to vector<8x128xf32>
    %97 = arith.addf %96, %95 : vector<8x128xf32>
    %98 = arith.divf %96, %97 : vector<8x128xf32>
    %99 = arith.mulf %90, %70 : vector<8x128xf32>
    %100 = arith.mulf %84, %92 : vector<8x128xf32>
    %101 = arith.addf %99, %100 : vector<8x128xf32>
    %102 = math.tanh %101 : vector<8x128xf32>
    %103 = arith.mulf %98, %102 : vector<8x128xf32>
    %c16_38 = arith.constant 16 : index
    %c0_39 = arith.constant 0 : index
    %104 = vector.load %arg11[%c16_38, %c0_39] : memref<32x128xf32, #tpu.memory_space<vmem>>, vector<8x128xf32>
    tpu.vector_store %arg11[%c16_38, %c0_39], %103 {strides = array<i32>} : memref<32x128xf32, #tpu.memory_space<vmem>>, vector<8x128xf32>,
    %c24 = arith.constant 24 : index
    %c0_40 = arith.constant 0 : index
    %105 = vector.load %arg10[%c24, %c0_40] : memref<32x512xf32, #tpu.memory_space<vmem>>, vector<8x512xf32>
    %106 = arith.truncf %103 : vector<8x128xf32> to vector<8x128xbf16>
    %c0_41 = arith.constant 0 : index
    %c0_42 = arith.constant 0 : index
    %107 = vector.load %arg4[%c0_41, %c0_42] : memref<128x512xbf16, #tpu.memory_space<vmem>>, vector<128x512xbf16>
    %cst_43 = arith.constant dense<0.000000e+00> : vector<8x512xf32>
    %108 = tpu.matmul %106, %107, %cst_43 {dimension_numbers = #tpu.dot_dimension_numbers<[1], [0], [0], [1], [0, 0, 1, 1], [], []>} : vector<8x128xbf16>, vector<128x512xbf16>, vector<8x512xf32> -> vector<8x512xf32>
    %109 = arith.addf %105, %108 : vector<8x512xf32>
    %110 = vector.extract_strided_slice %109 {offsets = [0, 0], sizes = [8, 128], strides = [1, 1]} : vector<8x512xf32> to vector<8x128xf32>
    %111 = arith.negf %110 : vector<8x128xf32>
    %112 = math.exp %111 : vector<8x128xf32>
    %cst_44 = arith.constant 1.000000e+00 : f32
    %113 = vector.broadcast %cst_44 : f32 to vector<8x128xf32>
    %114 = arith.addf %113, %112 : vector<8x128xf32>
    %115 = arith.divf %113, %114 : vector<8x128xf32>
    %116 = vector.extract_strided_slice %109 {offsets = [0, 128], sizes = [8, 128], strides = [1, 1]} : vector<8x512xf32> to vector<8x128xf32>
    %117 = arith.negf %116 : vector<8x128xf32>
    %118 = math.exp %117 : vector<8x128xf32>
    %cst_45 = arith.constant 1.000000e+00 : f32
    %119 = vector.broadcast %cst_45 : f32 to vector<8x128xf32>
    %120 = arith.addf %119, %118 : vector<8x128xf32>
    %121 = arith.divf %119, %120 : vector<8x128xf32>
    %122 = vector.extract_strided_slice %109 {offsets = [0, 256], sizes = [8, 128], strides = [1, 1]} : vector<8x512xf32> to vector<8x128xf32>
    %123 = math.tanh %122 : vector<8x128xf32>
    %124 = vector.extract_strided_slice %109 {offsets = [0, 384], sizes = [8, 128], strides = [1, 1]} : vector<8x512xf32> to vector<8x128xf32>
    %125 = arith.negf %124 : vector<8x128xf32>
    %126 = math.exp %125 : vector<8x128xf32>
    %cst_46 = arith.constant 1.000000e+00 : f32
    %127 = vector.broadcast %cst_46 : f32 to vector<8x128xf32>
    %128 = arith.addf %127, %126 : vector<8x128xf32>
    %129 = arith.divf %127, %128 : vector<8x128xf32>
    %130 = arith.mulf %121, %101 : vector<8x128xf32>
    %131 = arith.mulf %115, %123 : vector<8x128xf32>
    %132 = arith.addf %130, %131 : vector<8x128xf32>
    %133 = math.tanh %132 : vector<8x128xf32>
    %134 = arith.mulf %129, %133 : vector<8x128xf32>
    %c24_47 = arith.constant 24 : index
    %c0_48 = arith.constant 0 : index
    %135 = vector.load %arg11[%c24_47, %c0_48] : memref<32x128xf32, #tpu.memory_space<vmem>>, vector<8x128xf32>
    tpu.vector_store %arg11[%c24_47, %c0_48], %134 {strides = array<i32>} : memref<32x128xf32, #tpu.memory_space<vmem>>, vector<8x128xf32>,
    %c0_49 = arith.constant 0 : index
    %c0_50 = arith.constant 0 : index
    %136 = vector.load %arg8[%c0_49, %c0_50] : memref<8x128xf32, #tpu.memory_space<vmem>>, vector<8x128xf32>
    tpu.vector_store %arg8[%c0_49, %c0_50], %134 {strides = array<i32>} : memref<8x128xf32, #tpu.memory_space<vmem>>, vector<8x128xf32>,
    %c0_51 = arith.constant 0 : index
    %c0_52 = arith.constant 0 : index
    %137 = vector.load %arg9[%c0_51, %c0_52] : memref<8x128xf32, #tpu.memory_space<vmem>>, vector<8x128xf32>
    tpu.vector_store %arg9[%c0_51, %c0_52], %132 {strides = array<i32>} : memref<8x128xf32, #tpu.memory_space<vmem>>, vector<8x128xf32>,
    %c0_53 = arith.constant 0 : index
    %c0_54 = arith.constant 0 : index
    %138 = vector.load %arg11[%c0_53, %c0_54] : memref<32x128xf32, #tpu.memory_space<vmem>>, vector<32x128xf32>
    %139 = arith.truncf %138 : vector<32x128xf32> to vector<32x128xbf16>
    %c0_55 = arith.constant 0 : index
    %c0_56 = arith.constant 0 : index
    %140 = vector.load %arg5[%c0_55, %c0_56] : memref<128x256xbf16, #tpu.memory_space<vmem>>, vector<128x256xbf16>
    %cst_57 = arith.constant dense<0.000000e+00> : vector<32x256xf32>
    %141 = tpu.matmul %139, %140, %cst_57 {dimension_numbers = #tpu.dot_dimension_numbers<[1], [0], [0], [1], [0, 0, 1, 1], [], []>} : vector<32x128xbf16>, vector<128x256xbf16>, vector<32x256xf32> -> vector<32x256xf32>
    %c0_58 = arith.constant 0 : index
    %c0_59 = arith.constant 0 : index
    %142 = vector.load %arg6[%c0_58, %c0_59] : memref<1x256xf32, #tpu.memory_space<vmem>>, vector<1x256xf32>
    %143 = vector.broadcast %142 : vector<1x256xf32> to vector<32x256xf32>
    %144 = arith.addf %141, %143 : vector<32x256xf32>
    %c0_60 = arith.constant 0 : index
    %c0_61 = arith.constant 0 : index
    %145 = vector.load %arg7[%c0_60, %c0_61] : memref<32x256xf32, #tpu.memory_space<vmem>>, vector<32x256xf32>
    tpu.vector_store %arg7[%c0_60, %c0_61], %144 {strides = array<i32>} : memref<32x256xf32, #tpu.memory_space<vmem>>, vector<32x256xf32>,
    return
  }
  func.func @transform_0(%arg0: i32) -> (i32, i32) {
    %c0_i32 = arith.constant 0 : i32
    %c0_i32_0 = arith.constant 0 : i32
    return %arg0, %c0_i32 : i32, i32
  }
  func.func @transform_1(%arg0: i32) -> (i32, i32) {
    %c0_i32 = arith.constant 0 : i32
    %c0_i32_0 = arith.constant 0 : i32
    %c0_i32_1 = arith.constant 0 : i32
    return %c0_i32, %c0_i32_0 : i32, i32
  }
  func.func @transform_2(%arg0: i32) -> (i32, i32) {
    %c0_i32 = arith.constant 0 : i32
    %c0_i32_0 = arith.constant 0 : i32
    %c0_i32_1 = arith.constant 0 : i32
    return %c0_i32, %c0_i32_0 : i32, i32
  }
  func.func @transform_3(%arg0: i32) -> (i32, i32) {
    %c0_i32 = arith.constant 0 : i32
    %c0_i32_0 = arith.constant 0 : i32
    %c0_i32_1 = arith.constant 0 : i32
    return %c0_i32, %c0_i32_0 : i32, i32
  }
  func.func @transform_4(%arg0: i32) -> (i32, i32) {
    %c0_i32 = arith.constant 0 : i32
    %c0_i32_0 = arith.constant 0 : i32
    %c0_i32_1 = arith.constant 0 : i32
    return %c0_i32, %c0_i32_0 : i32, i32
  }
  func.func @transform_5(%arg0: i32) -> (i32, i32) {
    %c0_i32 = arith.constant 0 : i32
    %c0_i32_0 = arith.constant 0 : i32
    %c0_i32_1 = arith.constant 0 : i32
    return %c0_i32, %c0_i32_0 : i32, i32
  }
  func.func @transform_6(%arg0: i32) -> (i32, i32) {
    %c0_i32 = arith.constant 0 : i32
    %c0_i32_0 = arith.constant 0 : i32
    return %arg0, %c0_i32 : i32, i32
  }
}

</mosaic_0001>

<bundles_post_ra>
// kernel: tpu_custom_call.1
= control target key start
LH: loop header
LB: loop body
LE: loop exit
PB: predicated region body
PF: predicated region fallthrough
CT: control target
= control target key end

     0   :  { %11 = vsyncpa [#allocation7], 0  ;;  %s3510_s0 = inlined_call_operand.hbm [shape: bf16[64,128], index: 0, kind: input, shape index: {}]   ;;  %s3511_s1 = inlined_call_operand.hbm [shape: bf16[128,512], index: 1, kind: input, shape index: {}]   ;;  %s3512_s2 = inlined_call_operand.vmem [shape: f32[1,512], index: 2, kind: input, shape index: {}]   ;;  %s3513_s3 = inlined_call_operand.hbm [shape: bf16[128,512], index: 3, kind: input, shape index: {}]   ;;  %s3514_s4 = inlined_call_operand.hbm [shape: bf16[128,256], index: 4, kind: input, shape index: {}]   ;;  %s3515_s5 = inlined_call_operand.vmem [shape: f32[1,256], index: 5, kind: input, shape index: {}]   ;;  %s3516_s6 = inlined_call_operand.hbm [shape: f32[64,256], index: 6, kind: output, shape index: {}]  }
   0x1   :  { %13 = vsyncpa [#allocation7 + $0x1], 0 }
   0x2   :  { %14 = vsyncpa [#allocation10], 0 }
   0x3   :  { %15 = vsyncpa [#allocation13], 0 }
   0x4   :  { %16 = vsyncpa [#allocation8], 0 }
   0x5   :  { %18 = vsyncpa [#allocation8 + $0x1], 0  ;;  %s2955_s21 = smov 0   ;;  %s2957_s22 = smov 0  }
   0x6   :  { %s2959_s23 = smov 0   ;;  %s2961_s24 = smov 0  }
   0x7 LB: > { %s2976_s25 = sadd.s32 4294967295, %s2903_s24   ;;  %s2203_s26 = sadd.s32 4294967294, %s2903_s24   ;;  %s2903_s24 = sphi %s2961_s24, %s3553_s24   ;;  %s2899_s23 = sphi %s2959_s23, %s3552_s23   ;;  %s2895_s22 = sphi %s2957_s22, %s3551_s22   ;;  %s2891_s21 = sphi %s2955_s21, %s3550_s21  }
   0x8   : > { %p44_p0 = scmp.ne.s32.totalorder %s2895_s22, %s2891_s21  ;;  %p3517_p1 = scmp.eq.s32.totalorder %s2976_s25, 0 }
   0x9   : > { %p179_p3 = scmp.eq.s32.totalorder %s2203_s26, 1  ;;  %p2204_p5 = scmp.ge.s32.totalorder %s2903_s24, 1 }
   0xa   : > { %p2985_p4 = por %p3517_p1, %p44_p0  ;;  %p186_p7 = scmp.lt.s32.totalorder %s2903_s24, 3 }
   0xb   : > { %p2990_p6 = por %p179_p3, %p44_p0  ;;  %s2905_s30 = smov [#allocation9]  }
   0xc   : > { %s3526_s27 = scalar_select %p2985_p4, 1, 0 }
   0xd   : > { %s3527_s28 = scalar_select %p2990_p6, 1, 0 }
   0xe   : > { %p2996_p9 = pnand %p2204_p5, %p186_p7  ;;  %s198_s7 = sshll.u32 %s2905_s30, 4  ;;  %s3000_s7 = int_to_ptr.vmem [resolvable:$true] %s198_s7 }
   0xf   : > { %s2906_s9 = smov [#allocation11]   ;;  %s2907_s11 = smov [#allocation12]  }
  0x10   : > { %s3528_s29 = scalar_select %p2996_p9, 1, 0 }
  0x11   : > { %p2434_p10 = pneg %p2996_p9  ;;  %s214_s10 = sshll.u32 %s2906_s9, 4  ;;  %s3011_s10 = int_to_ptr.vmem [resolvable:$true] %s214_s10 }
  0x12   : > { %s3013_s12 = sshll.u32 %s2907_s11, 4  ;;  %s2715_s15 = scalar_lea.hbm %s3511_s1, 4096  ;;  %s228_s12 = int_to_ptr.vmem [resolvable:$true] %s3013_s12 }
  0x13   : > { %p3007_p12 = pnand %p2434_p10, %p3517_p1  ;;  %p2716_p13 = scmp.ne.s32.totalorder %s3511_s1, %s2715_s15 }
  0x14   : > { %p2722_p7 = scmp.lt.u32.totalorder %s2715_s15, %s3511_s1 }
  0x15   : > { %p3023_p0 = pneg %p3007_p12 }
  0x17   : > { %p2718_p3 = pnand %p3023_p0, %p2716_p13 }
  0x19   : > { %p2719_p5 = pneg %p2718_p3 }
  0x1b   : > { %p2724_p10 = pnand %p2722_p7, %p2719_p5 }
  0x1d   : > { %2727 = shalt.err (!%p2724_p10)
}
  0x1e   : > { %s2728_s26 = scalar_lea.vmem %s3000_s7, 4096  ;;  %p2736_p2 = scmp.lt.s32.totalorder %s3000_s7, %s3000_s7 }
  0x1f   : > { %p2729_p11 = scmp.ne.s32.totalorder %s3000_s7, %s2728_s26  ;;  %p2737_p6 = scmp.lt.s32.totalorder %s2728_s26, %s2728_s26 }
  0x21   : > { %p2731_p8 = pnand %p2729_p11, %p3023_p0  ;;  %p2738_p13 = por %p2737_p6, %p2736_p2 }
  0x23   : > { %p2732_p1 = pneg %p2731_p8 }
  0x25   : > { %p2739_p3 = pnand %p2738_p13, %p2732_p1 }
  0x27   : > { %2742 = shalt.err (!%p2739_p3)
}
  0x28   : > { %s2908_s30 = smov 256   ;;  %s2909_s9 = smov 16  }
  0x29   : > { %2437 = dma.hbm_to_vmem [thread:$0]  (!%p3007_p12), %s3511_s1, 4096, %s3000_s7, [#allocation10], %s2908_s30, %s2908_s30, %s2909_s9  }
  0x2a   : > { %s2743_s16 = scalar_lea.hbm %s3513_s3, 4096 }
  0x2b   : > { %p2744_p2 = scmp.ne.s32.totalorder %s3513_s3, %s2743_s16  ;;  %p2750_p8 = scmp.lt.u32.totalorder %s2743_s16, %s3513_s3 }
  0x2d   : > { %p2746_p1 = pnand %p2744_p2, %p3023_p0 }
  0x2f   : > { %p2747_p6 = pneg %p2746_p1 }
  0x31   : > { %p2752_p11 = pnand %p2750_p8, %p2747_p6 }
  0x33   : > { %2755 = shalt.err (!%p2752_p11)
}
  0x34   : > { %s2756_s7 = scalar_lea.vmem %s3011_s10, 4096  ;;  %p2764_p13 = scmp.lt.s32.totalorder %s3011_s10, %s3011_s10 }
  0x35   : > { %p2757_p5 = scmp.ne.s32.totalorder %s3011_s10, %s2756_s7  ;;  %p2765_p3 = scmp.lt.s32.totalorder %s2756_s7, %s2756_s7 }
  0x37   : > { %p2759_p7 = pnand %p2757_p5, %p3023_p0  ;;  %p2766_p2 = por %p2765_p3, %p2764_p13 }
  0x39   : > { %p2760_p10 = pneg %p2759_p7 }
  0x3b   : > { %p2767_p1 = pnand %p2766_p2, %p2760_p10 }
  0x3d   : > { %2770 = shalt.err (!%p2767_p1)
}
  0x3e   : > { %2440 = dma.hbm_to_vmem [thread:$0]  (!%p3007_p12), %s3513_s3, 4096, %s3011_s10, [#allocation10], %s2908_s30, %s2908_s30, %s2909_s9  }
  0x3f   : > { %s2771_s16 = scalar_lea.hbm %s3514_s4, 2048 }
  0x40   : > { %p2772_p6 = scmp.ne.s32.totalorder %s3514_s4, %s2771_s16  ;;  %p2778_p5 = scmp.lt.u32.totalorder %s2771_s16, %s3514_s4 }
  0x42   : > { %p2774_p8 = pnand %p2772_p6, %p3023_p0 }
  0x44   : > { %p2775_p11 = pneg %p2774_p8 }
  0x46   : > { %p2780_p7 = pnand %p2778_p5, %p2775_p11 }
  0x48   : > { %2783 = shalt.err (!%p2780_p7)
}
  0x49   : > { %s2784_s7 = scalar_lea.vmem %s228_s12, 2048  ;;  %p2792_p2 = scmp.lt.s32.totalorder %s228_s12, %s228_s12 }
  0x4a   : > { %p2785_p10 = scmp.ne.s32.totalorder %s228_s12, %s2784_s7  ;;  %p2793_p1 = scmp.lt.s32.totalorder %s2784_s7, %s2784_s7 }
  0x4c   : > { %p2787_p13 = pnand %p2785_p10, %p3023_p0  ;;  %p2794_p4 = por %p2793_p1, %p2792_p2 }
  0x4e   : > { %p2788_p3 = pneg %p2787_p13 }
  0x50   : > { %p2795_p9 = pnand %p2794_p4, %p2788_p3 }
  0x52   : > { %2798 = shalt.err (!%p2795_p9)
}
  0x53   : > { %s2910_s10 = smov 128   ;;  %s2911_s18 = smov 8  }
  0x54   : > { %2443 = dma.hbm_to_vmem [thread:$0]  (!%p3007_p12), %s3514_s4, 2048, %s228_s12, [#allocation13], %s2910_s10, %s2910_s10, %s2911_s18  }
  0x55   : > { %s3087_s11 = sadd.s32 1, %s2903_s24   ;;  %s31_s14 = sadd.s32 1, %s2899_s23 }
  0x56   : > { %s28_s13 = ssub.s32 %s2903_s24, %s3087_s11  ;;  %p38_p9 = scmp.ne.s32.totalorder %s2899_s23, %s2895_s22 }
  0x57   : > { %p29_p4 = scmp.eq.s32.totalorder %s28_s13, 0  ;;  %p39_p0 = scmp.eq.s32.totalorder %s2903_s24, 0 }
  0x58   : > { %p2455_p6 = scmp.lt.s32.totalorder %s2903_s24, 2  ;;  %p3531_p11 = scmp.eq.s32.totalorder %s2976_s25, 1 }
  0x59   : > { %s3097_s15 = scalar_select %p29_p4, %s2899_s23, %s31_s14  }
  0x5a   : > { %p40_p8 = por %p39_p0, %p38_p9  ;;  %p3101_p5 = por %p3531_p11, %p38_p9 }
  0x5b   : > { %s244_s8 = sand.u32 1, %s2899_s23   ;;  %s2415_s17 = sshll.u32 %s2903_s24, 8 }
  0x5c   : > { %s2209_s12 = sshll.u32 %s244_s8, 4  ;;  %s3110_s26 = scalar_lea.hbm %s3510_s0, %s2415_s17 }
  0x5d   : > { %s248_s7 = scalar_lea.vmem [#allocation6], %s2209_s12  ;;  %p3112_p12 = pnand %p2455_p6, %p40_p8 }
  0x5e   : > { %s255_s10 = sshll.u32 %s248_s7, 4  ;;  %s3118_s30 = scalar_lea.sflag [#allocation7], %s244_s8  ;;  %s3116_s10 = int_to_ptr.vmem [resolvable:$true] %s255_s10 }
  0x5f   : > { %s2799_s9 = scalar_lea.hbm %s3110_s26, 256  ;;  %p2801_p10 = pneg %p3112_p12 }
  0x60   : > { %p2800_p7 = scmp.ne.s32.totalorder %s3110_s26, %s2799_s9  ;;  %s2804_s17 = scalar_lea.hbm %s3510_s0, 512 }
  0x61   : > { %p2805_p2 = scmp.lt.u32.totalorder %s3110_s26, %s3510_s0  ;;  %p2806_p1 = scmp.lt.u32.totalorder %s2804_s17, %s2799_s9 }
  0x62   : > { %p2802_p13 = pnand %p2801_p10, %p2800_p7  ;;  %p2808_p9 = scmp.lt.u32.totalorder %s2799_s9, %s3110_s26 }
  0x63   : > { %p2807_p4 = por %p2806_p1, %p2805_p2 }
  0x64   : > { %p2803_p3 = pneg %p2802_p13 }
  0x65   : > { %p2809_p0 = por %p2808_p9, %p2807_p4 }
  0x67   : > { %p2810_p6 = pnand %p2809_p0, %p2803_p3 }
  0x69   : > { %2813 = shalt.err (!%p2810_p6)
}
  0x6a   : > { %s2814_s8 = scalar_lea.vmem %s3116_s10, 256  ;;  %s2912_s20 = smov [#allocation6]  }
  0x6b   : > { %p2815_p8 = scmp.ne.s32.totalorder %s3116_s10, %s2814_s8  ;;  %s2819_s7 = sshll.u32 %s2912_s20, 4  ;;  %s2820_s7 = int_to_ptr.vmem [resolvable:$false] %s2819_s7 }
  0x6c   : > { %s2821_s13 = scalar_lea.vmem %s2820_s7, 512  ;;  %p2822_p13 = scmp.lt.s32.totalorder %s3116_s10, %s2820_s7 }
  0x6d   : > { %p2817_p11 = pnand %p2815_p8, %p2801_p10  ;;  %p2823_p2 = scmp.lt.s32.totalorder %s2821_s13, %s2814_s8 }
  0x6f   : > { %p2818_p7 = pneg %p2817_p11  ;;  %p2824_p1 = por %p2823_p2, %p2822_p13 }
  0x71   : > { %p2825_p4 = pnand %p2824_p1, %p2818_p7 }
  0x73   : > { %2828 = shalt.err (!%p2825_p4)
}
  0x74   : > { %s2913_s9 = smov 64   ;;  %s2914_s14 = smov 4  }
  0x75   : > { %2447 = dma.hbm_to_vmem [thread:$0]  (!%p3112_p12), %s3110_s26, 256, %s3116_s10, %s3118_s30, %s2913_s9, %s2913_s9, %s2914_s14  }
  0x76   : > { %p3534_p10 = scmp.ne.s32.totalorder %s3528_s29, 0 }
  0x78   : > { %267 = sbr.rel (%p3534_p10) target bundleno = 1502 (0x5de), region = 44 }
  0x7f   : > { %s3149_s17 = sand.u32 1, %s2895_s22   ;;  %p3535_p3 = scmp.ne.s32.totalorder %s3526_s27, 0 }
  0x80   : > { %s2213_s12 = sshll.u32 %s3149_s17, 4  ;;  %s270_s19 = scalar_lea.sflag [#allocation7], %s3149_s17 }
  0x81   : > { %s3153_s8 = scalar_lea.vmem [#allocation6], %s2213_s12 }
  0x82   : > { %2874 = dma.done.wait (%p3535_p3), %s270_s19, 256  }
  0x83   : > { %2876 = vsyncadd (%p3535_p3), %s270_s19, 4294967040  ;;  %p3536_p12 = scmp.eq.s32.totalorder %s2976_s25, 0 }
  0x85   : > { %2878 = dma.done.wait (%p3536_p12), [#allocation10], 8192   ;;  %p3537_p9 = pmov %p3536_p12 }
  0x87   : > { %2880 = vsyncadd (%p3537_p9), [#allocation10], 4294959104  ;;  %p3538_p0 = pmov %p3537_p9 }
  0x89   : > { %2882 = dma.done.wait (%p3538_p0), [#allocation13], 2048   ;;  %p3539_p6 = pmov %p3538_p0 }
  0x8a   : > { %s2217_s29 = sshll.u32 %s3149_s17, 6  ;;  %p3540_p8 = scmp.ne.s32.totalorder %s2976_s25, 0 }
  0x8b   : > { %2884 = vsyncadd (%p3539_p6), [#allocation13], 4294965248  ;;  %s3168_s26 = scalar_lea.vmem [#allocation14], %s2217_s29  ;;  %v2915_v0 = vmov (!%p3540_p8), 0.0  }
  0x8c   : > { %320 = sbr.rel (%p3540_p8) target bundleno = 147 (0x93), region = 64  ;;  %321 = vst [vmem:[#allocation2] sm:$0xff] (!%p3540_p8), %v2915_v0  ;;  %322 = vst [vmem:[#allocation3] sm:$0xff] (!%p3540_p8), %v2915_v0 }
  0x93 PF: > { %v2505_v1 = vld [vmem:[#allocation9 + $0x4] ss:$16 sps:$4 sm:$0xff]   ;;  %v2507_v2 = vld [vmem:[#allocation9] ss:$16 sps:$4 sm:$0xff]   ;;  %v3522_v3 = vmov 0   ;;  %v2572_v42 = vld [vmem:[%s3153_s8 + $0x8] sm:$0xff]  }
  0x94   : > { %585 = vmatprep.mubr.bf16.mxu1 %v3522_v3  ;;  %906 = vmatprep.mubr.bf16.mxu0 %v3522_v3  ;;  %v3174_v4 = vld [vmem:[#allocation11 + $0x4] ss:$16 sps:$4 sm:$0xff]   ;;  %v3176_v5 = vld [vmem:[#allocation11] ss:$16 sps:$4 sm:$0xff]   ;;  %v2556_v34 = vld [vmem:[#allocation9 + $0xc] ss:$16 sps:$4 sm:$0xff]  }
  0x95   : > { %553 = vmatprep.subr.bf16.mxu1 %v2505_v1  ;;  %v2511_v6 = vld [vmem:[#allocation9 + $0x24] ss:$16 sps:$4 sm:$0xff]   ;;  %v2513_v7 = vld [vmem:[#allocation9 + $0x20] ss:$16 sps:$4 sm:$0xff]   ;;  %874 = vmatprep.subr.bf16.mxu0 %v3174_v4  ;;  %v2554_v37 = vld [vmem:[#allocation9 + $0x8] ss:$16 sps:$4 sm:$0xff]  }
  0x96   : > { %554 = vmatpush1.bf16.msra.mxu1 %v2507_v2  ;;  %v3179_v8 = vld [vmem:[#allocation11 + $0x24] ss:$16 sps:$4 sm:$0xff]   ;;  %875 = vmatpush1.bf16.msra.mxu0 %v3176_v5  ;;  %v3182_v9 = vld [vmem:[#allocation11 + $0x20] ss:$16 sps:$4 sm:$0xff]   ;;  %v2559_v39 = vld [vmem:[#allocation9 + $0x2c] ss:$16 sps:$4 sm:$0xff]  }
  0x97   : > { %555 = vmatprep.subr.bf16.mxu1 %v2511_v6  ;;  %876 = vmatprep.subr.bf16.mxu0 %v3179_v8  ;;  %v2517_v10 = vld [vmem:[#allocation9 + $0x44] ss:$16 sps:$4 sm:$0xff]   ;;  %v2519_v11 = vld [vmem:[#allocation9 + $0x40] ss:$16 sps:$4 sm:$0xff]   ;;  %v2557_v40 = vld [vmem:[#allocation9 + $0x28] ss:$16 sps:$4 sm:$0xff]  }
  0x98   : > { %v3185_v12 = vld [vmem:[#allocation11 + $0x44] ss:$16 sps:$4 sm:$0xff]   ;;  %v3188_v14 = vld [vmem:[#allocation11 + $0x40] ss:$16 sps:$4 sm:$0xff]   ;;  %v2562_v41 = vld [vmem:[#allocation9 + $0x4c] ss:$16 sps:$4 sm:$0xff]  }
  0x99   : > { %v2523_v13 = vld [vmem:[#allocation9 + $0x64] ss:$16 sps:$4 sm:$0xff]   ;;  %v2525_v16 = vld [vmem:[#allocation9 + $0x60] ss:$16 sps:$4 sm:$0xff]   ;;  %v2560_v43 = vld [vmem:[#allocation9 + $0x48] ss:$16 sps:$4 sm:$0xff]  }
  0x9a   : > { %556 = vmatpush1.bf16.msra.mxu1 %v2513_v7  ;;  %877 = vmatpush1.bf16.msra.mxu0 %v3182_v9  ;;  %v3191_v15 = vld [vmem:[#allocation11 + $0x64] ss:$16 sps:$4 sm:$0xff]   ;;  %v3194_v18 = vld [vmem:[#allocation11 + $0x60] ss:$16 sps:$4 sm:$0xff]   ;;  %v2565_v44 = vld [vmem:[#allocation9 + $0x6c] ss:$16 sps:$4 sm:$0xff]  }
  0x9b   : > { %557 = vmatprep.subr.bf16.mxu1 %v2517_v10  ;;  %878 = vmatprep.subr.bf16.mxu0 %v3185_v12  ;;  %v2529_v17 = vld [vmem:[#allocation9 + $0x84] ss:$16 sps:$4 sm:$0xff]   ;;  %v2531_v20 = vld [vmem:[#allocation9 + $0x80] ss:$16 sps:$4 sm:$0xff]   ;;  %v2563_v45 = vld [vmem:[#allocation9 + $0x68] ss:$16 sps:$4 sm:$0xff]   ;;  %v361_v10 = vlaneseq }
  0x9c   : > { %v3197_v19 = vld [vmem:[#allocation11 + $0x84] ss:$16 sps:$4 sm:$0xff]   ;;  %v3200_v22 = vld [vmem:[#allocation11 + $0x80] ss:$16 sps:$4 sm:$0xff]   ;;  %v2568_v46 = vld [vmem:[#allocation9 + $0x8c] ss:$16 sps:$4 sm:$0xff]  }
  0x9d   : > { %v2535_v21 = vld [vmem:[#allocation9 + $0xa4] ss:$16 sps:$4 sm:$0xff]   ;;  %v2537_v24 = vld [vmem:[#allocation9 + $0xa0] ss:$16 sps:$4 sm:$0xff]   ;;  %v2566_v47 = vld [vmem:[#allocation9 + $0x88] ss:$16 sps:$4 sm:$0xff]  }
  0x9e   : > { %558 = vmatpush1.bf16.msra.mxu1 %v2519_v11  ;;  %879 = vmatpush1.bf16.msra.mxu0 %v3188_v14  ;;  %v3203_v23 = vld [vmem:[#allocation11 + $0xa4] ss:$16 sps:$4 sm:$0xff]   ;;  %v3206_v26 = vld [vmem:[#allocation11 + $0xa0] ss:$16 sps:$4 sm:$0xff]   ;;  %v2571_v48 = vld [vmem:[#allocation9 + $0xac] ss:$16 sps:$4 sm:$0xff]  }
  0x9f   : > { %559 = vmatprep.subr.bf16.mxu1 %v2523_v13  ;;  %880 = vmatprep.subr.bf16.mxu0 %v3191_v15  ;;  %v2541_v25 = vld [vmem:[#allocation9 + $0xc4] ss:$16 sps:$4 sm:$0xff]   ;;  %v2543_v28 = vld [vmem:[#allocation9 + $0xc0] ss:$16 sps:$4 sm:$0xff]   ;;  %v2569_v49 = vld [vmem:[#allocation9 + $0xa8] ss:$16 sps:$4 sm:$0xff]  }
  0xa0   : > { %v3209_v27 = vld [vmem:[#allocation11 + $0xc4] ss:$16 sps:$4 sm:$0xff]   ;;  %v3212_v30 = vld [vmem:[#allocation11 + $0xc0] ss:$16 sps:$4 sm:$0xff]   ;;  %v2575_v50 = vld [vmem:[#allocation9 + $0xcc] ss:$16 sps:$4 sm:$0xff]  }
  0xa1   : > { %v2547_v29 = vld [vmem:[#allocation9 + $0xe4] ss:$16 sps:$4 sm:$0xff]   ;;  %v2549_v32 = vld [vmem:[#allocation9 + $0xe0] ss:$16 sps:$4 sm:$0xff]   ;;  %v2573_v51 = vld [vmem:[#allocation9 + $0xc8] ss:$16 sps:$4 sm:$0xff]  }
  0xa2   : > { %560 = vmatpush1.bf16.msra.mxu1 %v2525_v16  ;;  %881 = vmatpush1.bf16.msra.mxu0 %v3194_v18  ;;  %v3215_v31 = vld [vmem:[#allocation11 + $0xe4] ss:$16 sps:$4 sm:$0xff]   ;;  %v3217_v33 = vld [vmem:[#allocation11 + $0xe0] ss:$16 sps:$4 sm:$0xff]   ;;  %v2578_v52 = vld [vmem:[#allocation9 + $0xec] ss:$16 sps:$4 sm:$0xff]  }
  0xa3   : > { %561 = vmatprep.subr.bf16.mxu1 %v2529_v17  ;;  %882 = vmatprep.subr.bf16.mxu0 %v3197_v19  ;;  %v675_v35 = vld [vmem:[#allocation2] sm:$0xff]  ;;  %v2576_v53 = vld [vmem:[#allocation9 + $0xe8] ss:$16 sps:$4 sm:$0xff]   ;;  %v3243_v54 = vld [vmem:[#allocation11 + $0xc] ss:$16 sps:$4 sm:$0xff]   ;;  %v3316_v11 = vshrl.u32 %v361_v10, 7 }
  0xa4   : > { %v2553_v36 = vld [vmem:[%s3153_s8] sm:$0xff]   ;;  %v3222_v38 = vpack.c.bf16 %v675_v35, %v675_v35  ;;  %v3247_v55 = vld [vmem:[#allocation11 + $0x8] ss:$16 sps:$4 sm:$0xff]   ;;  %v3250_v56 = vld [vmem:[#allocation11 + $0x2c] ss:$16 sps:$4 sm:$0xff]   ;;  %s2417_s20 = sshll.u32 %s2976_s25, 10 }
  0xa5   : > { %v3255_v57 = vld [vmem:[#allocation11 + $0x28] ss:$16 sps:$4 sm:$0xff]   ;;  %v3259_v58 = vld [vmem:[#allocation11 + $0x4c] ss:$16 sps:$4 sm:$0xff]   ;;  %3541 = vst [vmem:[#allocation19_spill] sm:$0xff] %v3316_v11  ;;  %v3521_v13 = vsub.s32 0, %v3316_v11  ;;  %s3461_s14 = scalar_lea.hbm %s3516_s6, %s2417_s20 }
  0xa6   : > { %562 = vmatpush1.bf16.msra.mxu1 %v2531_v20  ;;  %883 = vmatpush1.bf16.msra.mxu0 %v3200_v22  ;;  %v3262_v59 = vld [vmem:[#allocation11 + $0x48] ss:$16 sps:$4 sm:$0xff]   ;;  %v3265_v60 = vld [vmem:[#allocation11 + $0x6c] ss:$16 sps:$4 sm:$0xff]   ;;  %v359_v16 = vld [vmem:[%s3512_s2] sm:$0xf] }
  0xa7   : > { %563 = vmatprep.subr.bf16.mxu1 %v2535_v21  ;;  %884 = vmatprep.subr.bf16.mxu0 %v3203_v23  ;;  %v3268_v61 = vld [vmem:[#allocation11 + $0x68] ss:$16 sps:$4 sm:$0xff]   ;;  %v3272_v62 = vld [vmem:[#allocation11 + $0x8c] ss:$16 sps:$4 sm:$0xff]   ;;  %v3520_v17 = vsub.s32 1, %v3316_v11  ;;  %v364_v20 = vrot.slane %v359_v16, %v3521_v13  ;;  %s2101_s7 = sshll.u32 %s3168_s26, 4  ;;  %s3463_s7 = int_to_ptr.vmem [resolvable:$true] %s2101_s7 }
  0xa8   : > { %v3275_v63 = vld [vmem:[#allocation11 + $0x88] ss:$16 sps:$4 sm:$0xff]   ;;  %v3278_v0 = vld [vmem:[#allocation11 + $0xac] ss:$16 sps:$4 sm:$0xff]   ;;  %s2087_s25 = scalar_lea.sflag [#allocation8], %s3149_s17  ;;  %s2829_s12 = scalar_lea.vmem %s3463_s7, 1024 }
  0xa9   : > { %v3281_v1 = vld [vmem:[#allocation11 + $0xa8] ss:$16 sps:$4 sm:$0xff]   ;;  %v3284_v2 = vld [vmem:[#allocation11 + $0xcc] ss:$16 sps:$4 sm:$0xff]   ;;  %v368_v21 = vrot.slane %v359_v16, %v3520_v17  ;;  %p2830_p11 = scmp.ne.s32.totalorder %s3463_s7, %s2829_s12  ;;  %s2917_s19 = smov [#allocation14]  }
  0xaa   : > { %564 = vmatpush1.bf16.msra.mxu1 %v2537_v24  ;;  %885 = vmatpush1.bf16.msra.mxu0 %v3206_v26  ;;  %v3290_v6 = vld [vmem:[#allocation11 + $0xec] ss:$16 sps:$4 sm:$0xff]   ;;  %v3293_v7 = vld [vmem:[#allocation11 + $0xe8] ss:$16 sps:$4 sm:$0xff]   ;;  %s2833_s8 = sshll.u32 %s2917_s19, 4  ;;  %s2834_s8 = int_to_ptr.vmem [resolvable:$false] %s2833_s8 }
  0xab   : > { %565 = vmatprep.subr.bf16.mxu1 %v2541_v25  ;;  %886 = vmatprep.subr.bf16.mxu0 %v3209_v27  ;;  %p2831_p7 = pnand %p2830_p11, %p3101_p5  ;;  %s2835_s29 = scalar_lea.vmem %s2834_s8, 2048 }
  0xac   : > { %p2836_p2 = scmp.lt.s32.totalorder %s3463_s7, %s2834_s8  ;;  %p2837_p1 = scmp.lt.s32.totalorder %s2835_s29, %s2829_s12 }
  0xad   : > { %p2832_p13 = pneg %p2831_p7 }
  0xae   : > { %566 = vmatpush1.bf16.msra.mxu1 %v2543_v28  ;;  %887 = vmatpush1.bf16.msra.mxu0 %v3212_v30  ;;  %p2838_p4 = por %p2837_p1, %p2836_p2 }
  0xaf   : > { %567 = vmatprep.subr.bf16.mxu1 %v2547_v29  ;;  %888 = vmatprep.subr.bf16.mxu0 %v3215_v31 }
  0xb0   : > { %p2839_p10 = pnand %p2838_p4, %p2832_p13 }
  0xb2   : > { %568 = vmatpush1.bf16.msra.mxu1 %v2549_v32  ;;  %889 = vmatpush1.bf16.msra.mxu0 %v3217_v33 }
  0xb3   : > { %606 = vmatprep.subr.bf16.mxu1 %v2556_v34  ;;  %1182 = vmatprep.subr.bf16.mxu0 %v3174_v4 }
  0xb5   : > { %586 = vmatmul.mubr.bf16.vlgmr.msra.gmra.mrb[0].mxu1 %v2553_v36  ;;  %907 = vmatmul.mubr.bf16.vlgmr.msra.gmra.mrb[0].mxu0 %v3222_v38 }
  0xb6   : > { %607 = vmatpush1.bf16.msra.mxu1 %v2554_v37  ;;  %595 = vmatprep.mubr.bf16.mxu1 %v3522_v3 }
  0xb7   : > { %608 = vmatprep.subr.bf16.mxu1 %v2559_v39  ;;  %1183 = vmatpush1.bf16.msra.mxu0 %v3176_v5 }
  0xb8   : > { %1214 = vmatprep.mubr.bf16.mxu0 %v3522_v3  ;;  %1184 = vmatprep.subr.bf16.mxu0 %v3179_v8 }
  0xba   : > { %609 = vmatpush1.bf16.msra.mxu1 %v2557_v40 }
  0xbb   : > { %610 = vmatprep.subr.bf16.mxu1 %v2562_v41  ;;  %1185 = vmatpush1.bf16.msra.mxu0 %v3182_v9 }
  0xbc   : > { %1186 = vmatprep.subr.bf16.mxu0 %v3185_v12 }
  0xbd   : > { %596 = vmatmul.mubr.bf16.gmra.mrb[4].mxu1 %v2572_v42 }
  0xbe   : > { %611 = vmatpush1.bf16.msra.mxu1 %v2560_v43  ;;  %638 = vmatprep.mubr.bf16.mxu1 %v3522_v3 }
  0xbf   : > { %612 = vmatprep.subr.bf16.mxu1 %v2565_v44  ;;  %1187 = vmatpush1.bf16.msra.mxu0 %v3188_v14 }
  0xc0   : > { %1188 = vmatprep.subr.bf16.mxu0 %v3191_v15 }
  0xc2   : > { %613 = vmatpush1.bf16.msra.mxu1 %v2563_v45 }
  0xc3   : > { %614 = vmatprep.subr.bf16.mxu1 %v2568_v46  ;;  %1189 = vmatpush1.bf16.msra.mxu0 %v3194_v18 }
  0xc4   : > { %1190 = vmatprep.subr.bf16.mxu0 %v3197_v19 }
  0xc6   : > { %615 = vmatpush1.bf16.msra.mxu1 %v2566_v47 }
  0xc7   : > { %616 = vmatprep.subr.bf16.mxu1 %v2571_v48  ;;  %1191 = vmatpush1.bf16.msra.mxu0 %v3200_v22 }
  0xc8   : > { %1192 = vmatprep.subr.bf16.mxu0 %v3203_v23 }
  0xca   : > { %617 = vmatpush1.bf16.msra.mxu1 %v2569_v49 }
  0xcb   : > { %618 = vmatprep.subr.bf16.mxu1 %v2575_v50  ;;  %1193 = vmatpush1.bf16.msra.mxu0 %v3206_v26 }
  0xcc   : > { %1194 = vmatprep.subr.bf16.mxu0 %v3209_v27 }
  0xce   : > { %619 = vmatpush1.bf16.msra.mxu1 %v2573_v51  ;;  %v371_v51 = vsub.s32 2, %v3316_v11 }
  0xcf   : > { %620 = vmatprep.subr.bf16.mxu1 %v2578_v52  ;;  %1195 = vmatpush1.bf16.msra.mxu0 %v3212_v30  ;;  %v375_v52 = vsub.s32 3, %v3316_v11 }
  0xd0   : > { %1196 = vmatprep.subr.bf16.mxu0 %v3215_v31 }
  0xd2   : > { %621 = vmatpush1.bf16.msra.mxu1 %v2576_v53  ;;  %v372_v53 = vrot.slane %v359_v16, %v371_v51 }
  0xd3   : > { %915 = vmatprep.subr.bf16.mxu1 %v3243_v54  ;;  %1197 = vmatpush1.bf16.msra.mxu0 %v3217_v33 }
  0xd4   : > { %1490 = vmatprep.subr.bf16.mxu0 %v3174_v4  ;;  %v3287_v4 = vld [vmem:[#allocation11 + $0xc8] ss:$16 sps:$4 sm:$0xff]  }
  0xd5   : > { %639 = vmatmul.mubr.bf16.vlgmr.msra.gmra.mrb[8].mxu1 %v2553_v36 }
  0xd6   : > { %916 = vmatpush1.bf16.msra.mxu1 %v3247_v55  ;;  %648 = vmatprep.mubr.bf16.mxu1 %v3522_v3 }
  0xd7   : > { %917 = vmatprep.subr.bf16.mxu1 %v3250_v56 }
  0xda   : > { %918 = vmatpush1.bf16.msra.mxu1 %v3255_v57 }
  0xdb   : > { %919 = vmatprep.subr.bf16.mxu1 %v3259_v58 }
  0xdd   : > { %649 = vmatmul.mubr.bf16.gmra.mrb[12].mxu1 %v2572_v42 }
  0xde   : > { %920 = vmatpush1.bf16.msra.mxu1 %v3262_v59  ;;  %947 = vmatprep.mubr.bf16.mxu1 %v3522_v3 }
  0xdf   : > { %921 = vmatprep.subr.bf16.mxu1 %v3265_v60 }
  0xe2   : > { %922 = vmatpush1.bf16.msra.mxu1 %v3268_v61 }
  0xe3   : > { %923 = vmatprep.subr.bf16.mxu1 %v3272_v62 }
  0xe6   : > { %924 = vmatpush1.bf16.msra.mxu1 %v3275_v63 }
  0xe7   : > { %925 = vmatprep.subr.bf16.mxu1 %v3278_v0 }
  0xea   : > { %926 = vmatpush1.bf16.msra.mxu1 %v3281_v1 }
  0xeb   : > { %927 = vmatprep.subr.bf16.mxu1 %v3284_v2 }
  0xee   : > { %928 = vmatpush1.bf16.msra.mxu1 %v3287_v4 }
  0xef   : > { %929 = vmatprep.subr.bf16.mxu1 %v3290_v6 }
  0xf2   : > { %930 = vmatpush1.bf16.msra.mxu1 %v3293_v7 }
  0xf3   : > { %1223 = vmatprep.subr.bf16.mxu1 %v3243_v54 }
  0xf5   : > { %948 = vmatmul.mubr.bf16.vlgmr.msra.gmra.mrb[16].mxu1 %v3222_v38 }
  0xf6   : > { %1224 = vmatpush1.bf16.msra.mxu1 %v3247_v55  ;;  %1255 = vmatprep.mubr.bf16.mxu1 %v3522_v3 }
  0xf7   : > { %1225 = vmatprep.subr.bf16.mxu1 %v3250_v56 }
  0xfa   : > { %1226 = vmatpush1.bf16.msra.mxu1 %v3255_v57 }
  0xfb   : > { %1227 = vmatprep.subr.bf16.mxu1 %v3259_v58 }
  0xfe   : > { %1228 = vmatpush1.bf16.msra.mxu1 %v3262_v59 }
  0xff   : > { %1229 = vmatprep.subr.bf16.mxu1 %v3265_v60 }
 0x102   : > { %1230 = vmatpush1.bf16.msra.mxu1 %v3268_v61 }
 0x103   : > { %1231 = vmatprep.subr.bf16.mxu1 %v3272_v62 }
 0x106   : > { %1232 = vmatpush1.bf16.msra.mxu1 %v3275_v63 }
 0x107   : > { %1233 = vmatprep.subr.bf16.mxu1 %v3278_v0 }
 0x10a   : > { %1234 = vmatpush1.bf16.msra.mxu1 %v3281_v1 }
 0x10b   : > { %1235 = vmatprep.subr.bf16.mxu1 %v3284_v2 }
 0x10e   : > { %1236 = vmatpush1.bf16.msra.mxu1 %v3287_v4 }
 0x10f   : > { %1237 = vmatprep.subr.bf16.mxu1 %v3290_v6 }
 0x112   : > { %1238 = vmatpush1.bf16.msra.mxu1 %v3293_v7 }
 0x113   : > { %1531 = vmatprep.subr.bf16.mxu1 %v3243_v54 }
 0x188   : > { %v587_v24 = vpop.f32.mrb[0].mxu1  ;;  %v908_v34 = vpop.f32.mrb[0].mxu0 }
 0x189   : > { %v588_v25 = vadd.f32 %v587_v24, %v364_v20  ;;  %v589_v28 = vpop.f32.mrb[1].mxu1  ;;  %v910_v38 = vpop.f32.mrb[1].mxu0 }
 0x18a   : > { %v590_v29 = vadd.f32 %v589_v28, %v368_v21  ;;  %v591_v32 = vpop.f32.mrb[2].mxu1  ;;  %v912_v41 = vpop.f32.mrb[2].mxu0 }
 0x18b   : > { %v3327_v35 = vadd.f32 %v591_v32, %v364_v20  ;;  %v956_v36 = vadd.f32 %v908_v34, %v588_v25  ;;  %v593_v37 = vpop.f32.mrb[3].mxu1  ;;  %v913_v42 = vpop.f32.mrb[3].mxu0  ;;  %v376_v25 = vrot.slane %v359_v16, %v375_v52 }
 0x18c   : > { %v3329_v39 = vadd.f32 %v593_v37, %v368_v21  ;;  %v957_v40 = vadd.f32 %v910_v38, %v590_v29 }
 0x18d   : > { %v2285_v16 = vmul.f32 -1.442695, %v956_v36 }
 0x190   : > { %v597_v43 = vpop.f32.mrb[4].mxu1 }
 0x191   : > { %v3331_v44 = vadd.f32 %v597_v43, %v364_v20  ;;  %v599_v45 = vpop.f32.mrb[5].mxu1 }
 0x192   : > { %v3333_v46 = vadd.f32 %v599_v45, %v368_v21  ;;  %v601_v47 = vpop.f32.mrb[6].mxu1  ;;  %v2286_v45 = vmul.f32 -1.442695, %v957_v40 }
 0x193   : > { %v3335_v48 = vadd.f32 %v601_v47, %v364_v20  ;;  %v603_v49 = vpop.f32.mrb[7].mxu1 }
 0x194   : > { %v3337_v50 = vadd.f32 %v603_v49, %v368_v21  ;;  %2651 = vpow2.f32 %v2286_v45  ;;  %v676_v45 = vld [vmem:[#allocation3] sm:$0xff] }
 0x195   : > { %2653 = vpow2.f32 %v2285_v16 }
 0x19e   : > { %v2652_v49 = vpop.eup %2651 }
 0x19f   : > { %v2654_v51 = vpop.eup %2653  ;;  %v969_v52 = vadd.f32 1.0, %v2652_v49 }
 0x1a1   : > { %2655 = vrcp.f32 %v969_v52 }
 0x1a8   : > { %v640_v10 = vpop.f32.mrb[8].mxu1 }
 0x1a9   : > { %v642_v24 = vpop.f32.mrb[9].mxu1 }
 0x1aa   : > { %v644_v28 = vpop.f32.mrb[10].mxu1 }
 0x1ab   : > { %v3341_v29 = vadd.f32 %v644_v28, %v372_v53  ;;  %v646_v32 = vpop.f32.mrb[11].mxu1  ;;  %v963_v28 = vadd.f32 1.0, %v2654_v51  ;;  %v2656_v36 = vpop.eup %2655 }
 0x1ac   : > { %v3343_v34 = vadd.f32 %v646_v32, %v376_v25  ;;  %v641_v32 = vadd.f32 %v640_v10, %v372_v53 }
 0x1ad   : > { %2657 = vrcp.f32 %v963_v28 }
 0x1b0   : > { %v650_v37 = vpop.f32.mrb[12].mxu1 }
 0x1b1   : > { %v3345_v20 = vadd.f32 %v650_v37, %v372_v53  ;;  %v652_v38 = vpop.f32.mrb[13].mxu1  ;;  %v643_v37 = vadd.f32 %v642_v24, %v376_v25 }
 0x1b2   : > { %v3347_v21 = vadd.f32 %v652_v38, %v376_v25  ;;  %v654_v41 = vpop.f32.mrb[14].mxu1 }
 0x1b3   : > { %v3349_v42 = vadd.f32 %v654_v41, %v372_v53  ;;  %v656_v43 = vpop.f32.mrb[15].mxu1 }
 0x1b4   : > { %v3351_v47 = vadd.f32 %v656_v43, %v376_v25 }
 0x1b6   : > { %3542 = vst [vmem:[#allocation20_spill] sm:$0xff] %v3351_v47  ;;  %v979_v47 = vmul.f32 %v2656_v36, %v676_v45  ;;  %v2624_v45 = vld [vmem:[#allocation11 + $0xe0] ss:$16 sps:$4 sm:$0xff]  }
 0x1b7   : > { %v2658_v16 = vpop.eup %2657 }
 0x1c8   : > { %v949_v17 = vpop.f32.mrb[16].mxu1 }
 0x1c9   : > { %v958_v38 = vadd.f32 %v949_v17, %v641_v32  ;;  %v951_v13 = vpop.f32.mrb[17].mxu1 }
 0x1ca   : > { %v959_v41 = vadd.f32 %v951_v13, %v643_v37  ;;  %v953_v3 = vpop.f32.mrb[18].mxu1 }
 0x1cb   : > { %2659 = vtanh.f32 %v958_v38  ;;  %v954_v40 = vpop.f32.mrb[19].mxu1 }
 0x1cc   : > { %v2287_v43 = vmul.f32 -1.442695, %v959_v41 }
 0x1ce   : > { %2661 = vpow2.f32 %v2287_v43 }
 0x1d5   : > { %v2660_v11 = vpop.eup %2659 }
 0x1d6   : > { %v980_v49 = vmul.f32 %v2660_v11, %v2658_v16  ;;  %v3543_v11 = vmov 0   ;;  %v2629_v16 = vld [vmem:[#allocation12 + $0x4] ss:$8 sps:$4 sm:$0xff]  }
 0x1d8   : > { %v2662_v51 = vpop.eup %2661  ;;  %v3353_v53 = vadd.f32 %v980_v49, %v979_v47 }
 0x1d9   : > { %v976_v10 = vadd.f32 1.0, %v2662_v51 }
 0x1da   : > { %2663 = vtanh.f32 %v3353_v53 }
 0x1db   : > { %2665 = vrcp.f32 %v976_v10 }
 0x1e4   : > { %v2664_v17 = vpop.eup %2663 }
 0x1e5   : > { %v2666_v13 = vpop.eup %2665 }
 0x1e6   : > { %v3356_v3 = vmul.f32 %v2666_v13, %v2664_v17 }
 0x1e8   : > { %v989_v24 = vpack.c.bf16 %v3356_v3, %v3356_v3 }
 0x1ea   : > { %1215 = vmatmul.mubr.bf16.vlgmr.msra.gmra.mrb[4].mxu0 %v989_v24  ;;  %1256 = vmatmul.mubr.bf16.vlgmr.msra.gmra.mrb[20].mxu1 %v989_v24 }
 0x1eb   : > { %1491 = vmatpush1.bf16.msra.mxu0 %v3176_v5  ;;  %1532 = vmatpush1.bf16.msra.mxu1 %v3247_v55 }
 0x1ec   : > { %1492 = vmatprep.subr.bf16.mxu0 %v3179_v8  ;;  %1533 = vmatprep.subr.bf16.mxu1 %v3250_v56 }
 0x1ed   : > { %1522 = vmatprep.mubr.bf16.mxu0 %v3543_v11  ;;  %1563 = vmatprep.mubr.bf16.mxu1 %v3543_v11 }
 0x1ef   : > { %1493 = vmatpush1.bf16.msra.mxu0 %v3182_v9  ;;  %1534 = vmatpush1.bf16.msra.mxu1 %v3255_v57 }
 0x1f0   : > { %1494 = vmatprep.subr.bf16.mxu0 %v3185_v12  ;;  %1535 = vmatprep.subr.bf16.mxu1 %v3259_v58 }
 0x1f3   : > { %1495 = vmatpush1.bf16.msra.mxu0 %v3188_v14  ;;  %1536 = vmatpush1.bf16.msra.mxu1 %v3262_v59 }
 0x1f4   : > { %1496 = vmatprep.subr.bf16.mxu0 %v3191_v15  ;;  %1537 = vmatprep.subr.bf16.mxu1 %v3265_v60 }
 0x1f7   : > { %1497 = vmatpush1.bf16.msra.mxu0 %v3194_v18  ;;  %1538 = vmatpush1.bf16.msra.mxu1 %v3268_v61 }
 0x1f8   : > { %1498 = vmatprep.subr.bf16.mxu0 %v3197_v19  ;;  %1539 = vmatprep.subr.bf16.mxu1 %v3272_v62 }
 0x1fb   : > { %1499 = vmatpush1.bf16.msra.mxu0 %v3200_v22  ;;  %1540 = vmatpush1.bf16.msra.mxu1 %v3275_v63 }
 0x1fc   : > { %1500 = vmatprep.subr.bf16.mxu0 %v3203_v23  ;;  %1541 = vmatprep.subr.bf16.mxu1 %v3278_v0 }
 0x1ff   : > { %1501 = vmatpush1.bf16.msra.mxu0 %v3206_v26  ;;  %1542 = vmatpush1.bf16.msra.mxu1 %v3281_v1 }
 0x200   : > { %1502 = vmatprep.subr.bf16.mxu0 %v3209_v27  ;;  %1543 = vmatprep.subr.bf16.mxu1 %v3284_v2 }
 0x203   : > { %1503 = vmatpush1.bf16.msra.mxu0 %v3212_v30  ;;  %1544 = vmatpush1.bf16.msra.mxu1 %v3287_v4 }
 0x204   : > { %1504 = vmatprep.subr.bf16.mxu0 %v3215_v31  ;;  %1545 = vmatprep.subr.bf16.mxu1 %v3290_v6 }
 0x207   : > { %1505 = vmatpush1.bf16.msra.mxu0 %v3217_v33  ;;  %1546 = vmatpush1.bf16.msra.mxu1 %v3293_v7 }
 0x208   : > { %1839 = vmatprep.subr.bf16.mxu1 %v3243_v54 }
 0x2bd   : > { %v1216_v5 = vpop.f32.mrb[4].mxu0  ;;  %v1257_v8 = vpop.f32.mrb[20].mxu1 }
 0x2be   : > { %v1264_v9 = vadd.f32 %v1216_v5, %v3327_v35  ;;  %v1266_v12 = vadd.f32 %v1257_v8, %v3341_v29  ;;  %v1218_v14 = vpop.f32.mrb[5].mxu0  ;;  %v1259_v15 = vpop.f32.mrb[21].mxu1 }
 0x2bf   : > { %v1265_v18 = vadd.f32 %v1218_v14, %v3329_v39  ;;  %v1267_v19 = vadd.f32 %v1259_v15, %v3343_v34  ;;  %v1220_v22 = vpop.f32.mrb[6].mxu0  ;;  %v1261_v23 = vpop.f32.mrb[22].mxu1 }
 0x2c0   : > { %v2320_v26 = vmul.f32 -1.442695, %v1264_v9  ;;  %v1221_v27 = vpop.f32.mrb[7].mxu0  ;;  %v1262_v30 = vpop.f32.mrb[23].mxu1 }
 0x2c1   : > { %v2321_v31 = vmul.f32 -1.442695, %v1265_v18  ;;  %v2322_v33 = vmul.f32 -1.442695, %v1267_v19 }
 0x2c2   : > { %2667 = vpow2.f32 %v2320_v26 }
 0x2c3   : > { %2669 = vpow2.f32 %v2321_v31 }
 0x2c4   : > { %2671 = vpow2.f32 %v2322_v33 }
 0x2c5   : > { %2673 = vtanh.f32 %v1266_v12 }
 0x2cc   : > { %v2668_v54 = vpop.eup %2667 }
 0x2cd   : > { %v2670_v25 = vpop.eup %2669  ;;  %v1271_v35 = vadd.f32 1.0, %v2668_v54 }
 0x2ce   : > { %v1277_v29 = vadd.f32 1.0, %v2670_v25  ;;  %v2672_v39 = vpop.eup %2671 }
 0x2cf   : > { %2675 = vrcp.f32 %v1271_v35  ;;  %v2674_v47 = vpop.eup %2673  ;;  %v1284_v32 = vadd.f32 1.0, %v2672_v39  ;;  %v2627_v39 = vld [vmem:[#allocation12] ss:$8 sps:$4 sm:$0xff]  }
 0x2d0   : > { %2677 = vrcp.f32 %v1277_v29 }
 0x2d1   : > { %2679 = vrcp.f32 %v1284_v32  ;;  %v2633_v32 = vld [vmem:[#allocation12 + $0x20] ss:$8 sps:$4 sm:$0xff]  }
 0x2d9   : > { %v2676_v34 = vpop.eup %2675 }
 0x2da   : > { %v2678_v52 = vpop.eup %2677  ;;  %v1288_v28 = vmul.f32 %v2676_v34, %v2674_v47  ;;  %v2632_v34 = vld [vmem:[#allocation12 + $0x14] ss:$8 sps:$4 sm:$0xff]  }
 0x2db   : > { %v1287_v37 = vmul.f32 %v2678_v52, %v3353_v53  ;;  %v2680_v41 = vpop.eup %2679  ;;  %v2630_v52 = vld [vmem:[#allocation12 + $0x10] ss:$8 sps:$4 sm:$0xff]  }
 0x2dd   : > { %v3398_v38 = vadd.f32 %v1288_v28, %v1287_v37  ;;  %v2635_v28 = vld [vmem:[#allocation12 + $0x24] ss:$8 sps:$4 sm:$0xff]   ;;  %v2638_v37 = vld [vmem:[#allocation12 + $0x34] ss:$8 sps:$4 sm:$0xff]  }
 0x2df   : > { %2681 = vtanh.f32 %v3398_v38 }
 0x2e9   : > { %v2682_v40 = vpop.eup %2681 }
 0x2ea   : > { %v3401_v43 = vmul.f32 %v2682_v40, %v2680_v41  ;;  %v2641_v41 = vld [vmem:[#allocation12 + $0x44] ss:$8 sps:$4 sm:$0xff]   ;;  %v2639_v40 = vld [vmem:[#allocation12 + $0x40] ss:$8 sps:$4 sm:$0xff]  }
 0x2ec   : > { %v1297_v36 = vpack.c.bf16 %v3401_v43, %v3401_v43 }
 0x2ee   : > { %1523 = vmatmul.mubr.bf16.vlgmr.msra.gmra.mrb[8].mxu0 %v1297_v36  ;;  %1564 = vmatmul.mubr.bf16.vlgmr.msra.gmra.mrb[24].mxu1 %v1297_v36  ;;  %v2644_v36 = vld [vmem:[#allocation12 + $0x54] ss:$8 sps:$4 sm:$0xff]  }
 0x2ef   : > { %1840 = vmatpush1.bf16.msra.mxu1 %v3247_v55  ;;  %1830 = vmatprep.mubr.bf16.mxu0 %v3543_v11  ;;  %v2605_v55 = vld [vmem:[#allocation11 + $0x4] ss:$16 sps:$4 sm:$0xff]  }
 0x2f0   : > { %1841 = vmatprep.subr.bf16.mxu1 %v3250_v56  ;;  %1871 = vmatprep.mubr.bf16.mxu1 %v3543_v11  ;;  %v2603_v56 = vld [vmem:[#allocation11] ss:$16 sps:$4 sm:$0xff]  }
 0x2f1   : > { %1798 = vmatprep.subr.bf16.mxu0 %v2605_v55  ;;  %v2642_v55 = vld [vmem:[#allocation12 + $0x50] ss:$8 sps:$4 sm:$0xff]  }
 0x2f2   : > { %1799 = vmatpush1.bf16.msra.mxu0 %v2603_v56  ;;  %v2647_v56 = vld [vmem:[#allocation12 + $0x64] ss:$8 sps:$4 sm:$0xff]  }
 0x2f3   : > { %1842 = vmatpush1.bf16.msra.mxu1 %v3255_v57  ;;  %v2608_v57 = vld [vmem:[#allocation11 + $0x24] ss:$16 sps:$4 sm:$0xff]  }
 0x2f4   : > { %1843 = vmatprep.subr.bf16.mxu1 %v3259_v58  ;;  %v2606_v58 = vld [vmem:[#allocation11 + $0x20] ss:$16 sps:$4 sm:$0xff]   ;;  %1800 = vmatprep.subr.bf16.mxu0 %v2608_v57 }
 0x2f5   : > { %v2645_v57 = vld [vmem:[#allocation12 + $0x60] ss:$8 sps:$4 sm:$0xff]  }
 0x2f6   : > { %1801 = vmatpush1.bf16.msra.mxu0 %v2606_v58  ;;  %v2650_v58 = vld [vmem:[#allocation12 + $0x74] ss:$8 sps:$4 sm:$0xff]  }
 0x2f7   : > { %1844 = vmatpush1.bf16.msra.mxu1 %v3262_v59  ;;  %v2611_v59 = vld [vmem:[#allocation11 + $0x44] ss:$16 sps:$4 sm:$0xff]  }
 0x2f8   : > { %1845 = vmatprep.subr.bf16.mxu1 %v3265_v60  ;;  %v2609_v60 = vld [vmem:[#allocation11 + $0x40] ss:$16 sps:$4 sm:$0xff]   ;;  %1802 = vmatprep.subr.bf16.mxu0 %v2611_v59 }
 0x2f9   : > { %v2648_v59 = vld [vmem:[#allocation12 + $0x70] ss:$8 sps:$4 sm:$0xff]  }
 0x2fa   : > { %1803 = vmatpush1.bf16.msra.mxu0 %v2609_v60  ;;  %v1915_v60 = vpack.c.bf16 %v3401_v43, %v3356_v3 }
 0x2fb   : > { %1846 = vmatpush1.bf16.msra.mxu1 %v3268_v61  ;;  %v2614_v61 = vld [vmem:[#allocation11 + $0x64] ss:$16 sps:$4 sm:$0xff]  }
 0x2fc   : > { %1847 = vmatprep.subr.bf16.mxu1 %v3272_v62  ;;  %v2612_v62 = vld [vmem:[#allocation11 + $0x60] ss:$16 sps:$4 sm:$0xff]   ;;  %1804 = vmatprep.subr.bf16.mxu0 %v2614_v61 }
 0x2fe   : > { %1805 = vmatpush1.bf16.msra.mxu0 %v2612_v62 }
 0x2ff   : > { %1848 = vmatpush1.bf16.msra.mxu1 %v3275_v63  ;;  %v2617_v63 = vld [vmem:[#allocation11 + $0x84] ss:$16 sps:$4 sm:$0xff]  }
 0x300   : > { %1849 = vmatprep.subr.bf16.mxu1 %v3278_v0  ;;  %v2615_v0 = vld [vmem:[#allocation11 + $0x80] ss:$16 sps:$4 sm:$0xff]   ;;  %1806 = vmatprep.subr.bf16.mxu0 %v2617_v63 }
 0x302   : > { %1807 = vmatpush1.bf16.msra.mxu0 %v2615_v0 }
 0x303   : > { %1850 = vmatpush1.bf16.msra.mxu1 %v3281_v1  ;;  %v2618_v1 = vld [vmem:[#allocation11 + $0xa0] ss:$16 sps:$4 sm:$0xff]  }
 0x304   : > { %1851 = vmatprep.subr.bf16.mxu1 %v3284_v2  ;;  %v2620_v2 = vld [vmem:[#allocation11 + $0xa4] ss:$16 sps:$4 sm:$0xff]  }
 0x305   : > { %1808 = vmatprep.subr.bf16.mxu0 %v2620_v2 }
 0x306   : > { %1809 = vmatpush1.bf16.msra.mxu0 %v2618_v1 }
 0x307   : > { %1852 = vmatpush1.bf16.msra.mxu1 %v3287_v4  ;;  %v2623_v4 = vld [vmem:[#allocation11 + $0xc4] ss:$16 sps:$4 sm:$0xff]  }
 0x308   : > { %1853 = vmatprep.subr.bf16.mxu1 %v3290_v6  ;;  %v2621_v6 = vld [vmem:[#allocation11 + $0xc0] ss:$16 sps:$4 sm:$0xff]   ;;  %1810 = vmatprep.subr.bf16.mxu0 %v2623_v4 }
 0x30a   : > { %1811 = vmatpush1.bf16.msra.mxu0 %v2621_v6  ;;  %v3544_v6 = vld [vmem:[#allocation20_spill] sm:$0xff] }
 0x30b   : > { %1854 = vmatpush1.bf16.msra.mxu1 %v3293_v7  ;;  %v2626_v7 = vld [vmem:[#allocation11 + $0xe4] ss:$16 sps:$4 sm:$0xff]  }
 0x30c   : > { %1812 = vmatprep.subr.bf16.mxu0 %v2626_v7 }
 0x30e   : > { %1813 = vmatpush1.bf16.msra.mxu0 %v2624_v45 }
 0x30f   : > { %2025 = vmatprep.subr.bf16.mxu0 %v2629_v16 }
 0x3c1   : > { %v1524_v49 = vpop.f32.mrb[8].mxu0  ;;  %v1565_v51 = vpop.f32.mrb[24].mxu1 }
 0x3c2   : > { %v1572_v53 = vadd.f32 %v1524_v49, %v3331_v44  ;;  %v1574_v10 = vadd.f32 %v1565_v51, %v3345_v20  ;;  %v1526_v17 = vpop.f32.mrb[9].mxu0  ;;  %v1567_v13 = vpop.f32.mrb[25].mxu1 }
 0x3c3   : > { %v1573_v24 = vadd.f32 %v1526_v17, %v3333_v46  ;;  %v1575_v5 = vadd.f32 %v1567_v13, %v3347_v21  ;;  %v1528_v8 = vpop.f32.mrb[10].mxu0  ;;  %v1569_v9 = vpop.f32.mrb[26].mxu1  ;;  %v1933_v17 = vld [vmem:[%s3515_s5] sm:$0x3] }
 0x3c4   : > { %v2355_v12 = vmul.f32 -1.442695, %v1572_v53  ;;  %v1529_v14 = vpop.f32.mrb[11].mxu0  ;;  %v1570_v15 = vpop.f32.mrb[27].mxu1 }
 0x3c5   : > { %v2356_v18 = vmul.f32 -1.442695, %v1573_v24  ;;  %v2357_v19 = vmul.f32 -1.442695, %v1575_v5 }
 0x3c6   : > { %2683 = vpow2.f32 %v2355_v12  ;;  %v3545_v12 = vld [vmem:[#allocation19_spill] sm:$0xff] }
 0x3c7   : > { %2685 = vpow2.f32 %v2356_v18  ;;  %v3546_v14 = vsub.s32 0, %v3545_v12 }
 0x3c8   : > { %2687 = vpow2.f32 %v2357_v19  ;;  %v3547_v19 = vsub.s32 1, %v3545_v12 }
 0x3c9   : > { %2689 = vtanh.f32 %v1574_v10  ;;  %v1938_v15 = vrot.slane %v1933_v17, %v3546_v14 }
 0x3d0   : > { %v2684_v22 = vpop.eup %2683 }
 0x3d1   : > { %v2686_v23 = vpop.eup %2685  ;;  %v1579_v44 = vadd.f32 1.0, %v2684_v22  ;;  %v1942_v22 = vrot.slane %v1933_v17, %v3547_v19 }
 0x3d2   : > { %v1585_v20 = vadd.f32 1.0, %v2686_v23  ;;  %v2688_v46 = vpop.eup %2687 }
 0x3d3   : > { %2691 = vrcp.f32 %v1579_v44  ;;  %v2690_v26 = vpop.eup %2689  ;;  %v1592_v31 = vadd.f32 1.0, %v2688_v46 }
 0x3d4   : > { %2693 = vrcp.f32 %v1585_v20 }
 0x3d5   : > { %2695 = vrcp.f32 %v1592_v31 }
 0x3dd   : > { %v2692_v21 = vpop.eup %2691 }
 0x3de   : > { %v2694_v27 = vpop.eup %2693  ;;  %v1596_v30 = vmul.f32 %v2692_v21, %v2690_v26 }
 0x3df   : > { %v1595_v33 = vmul.f32 %v2694_v27, %v3398_v38  ;;  %v2696_v25 = vpop.eup %2695  ;;  %v2636_v38 = vld [vmem:[#allocation12 + $0x30] ss:$8 sps:$4 sm:$0xff]  }
 0x3e1   : > { %v3427_v54 = vadd.f32 %v1596_v30, %v1595_v33 }
 0x3e3   : > { %2697 = vtanh.f32 %v3427_v54 }
 0x3ed   : > { %v2698_v35 = vpop.eup %2697 }
 0x3ee   : > { %v3430_v29 = vmul.f32 %v2698_v35, %v2696_v25 }
 0x3f0   : > { %v1605_v47 = vpack.c.bf16 %v3430_v29, %v3430_v29 }
 0x3f2   : > { %1831 = vmatmul.mubr.bf16.vlgmr.msra.gmra.mrb[12].mxu0 %v1605_v47  ;;  %1872 = vmatmul.mubr.bf16.vlgmr.msra.gmra.mrb[28].mxu1 %v1605_v47 }
 0x3f3   : > { %2026 = vmatpush1.bf16.msra.mxu0 %v2627_v39  ;;  %2057 = vmatprep.mubr.bf16.mxu0 %v3543_v11 }
 0x3f4   : > { %2027 = vmatprep.subr.bf16.mxu0 %v2632_v34 }
 0x3f7   : > { %2028 = vmatpush1.bf16.msra.mxu0 %v2630_v52 }
 0x3f8   : > { %2029 = vmatprep.subr.bf16.mxu0 %v2635_v28 }
 0x3fb   : > { %2030 = vmatpush1.bf16.msra.mxu0 %v2633_v32 }
 0x3fc   : > { %2031 = vmatprep.subr.bf16.mxu0 %v2638_v37 }
 0x3ff   : > { %2032 = vmatpush1.bf16.msra.mxu0 %v2636_v38 }
 0x400   : > { %2033 = vmatprep.subr.bf16.mxu0 %v2641_v41 }
 0x403   : > { %2034 = vmatpush1.bf16.msra.mxu0 %v2639_v40 }
 0x404   : > { %2035 = vmatprep.subr.bf16.mxu0 %v2644_v36 }
 0x407   : > { %2036 = vmatpush1.bf16.msra.mxu0 %v2642_v55 }
 0x408   : > { %2037 = vmatprep.subr.bf16.mxu0 %v2647_v56 }
 0x40b   : > { %2038 = vmatpush1.bf16.msra.mxu0 %v2645_v57 }
 0x40c   : > { %2039 = vmatprep.subr.bf16.mxu0 %v2650_v58 }
 0x40f   : > { %2040 = vmatpush1.bf16.msra.mxu0 %v2648_v59 }
 0x412   : > { %2058 = vmatmul.mubr.bf16.vlgmr.msra.gmra.mrb[16].mxu0 %v1915_v60 }
 0x413   : > { %2067 = vmatprep.mubr.bf16.mxu0 %v3543_v11 }
 0x4c5   : > { %v1832_v61 = vpop.f32.mrb[12].mxu0  ;;  %v1873_v62 = vpop.f32.mrb[28].mxu1 }
 0x4c6   : > { %v1880_v63 = vadd.f32 %v1832_v61, %v3335_v48  ;;  %v1882_v0 = vadd.f32 %v1873_v62, %v3349_v42  ;;  %v1834_v1 = vpop.f32.mrb[13].mxu0  ;;  %v1875_v2 = vpop.f32.mrb[29].mxu1 }
 0x4c7   : > { %v1881_v4 = vadd.f32 %v1834_v1, %v3337_v50  ;;  %v1883_v7 = vadd.f32 %v1875_v2, %v3544_v6  ;;  %v1836_v45 = vpop.f32.mrb[14].mxu0  ;;  %v1877_v16 = vpop.f32.mrb[30].mxu1 }
 0x4c8   : > { %v2390_v49 = vmul.f32 -1.442695, %v1880_v63  ;;  %v1837_v51 = vpop.f32.mrb[15].mxu0  ;;  %v1878_v3 = vpop.f32.mrb[31].mxu1 }
 0x4c9   : > { %v2391_v43 = vmul.f32 -1.442695, %v1881_v4  ;;  %v2392_v11 = vmul.f32 -1.442695, %v1883_v7 }
 0x4ca   : > { %2699 = vpow2.f32 %v2390_v49 }
 0x4cb   : > { %2701 = vpow2.f32 %v2391_v43 }
 0x4cc   : > { %2703 = vpow2.f32 %v2392_v11 }
 0x4cd   : > { %2705 = vtanh.f32 %v1882_v0 }
 0x4d4   : > { %v2700_v53 = vpop.eup %2699 }
 0x4d5   : > { %v2702_v10 = vpop.eup %2701  ;;  %v1887_v48 = vadd.f32 1.0, %v2700_v53 }
 0x4d6   : > { %v1893_v42 = vadd.f32 1.0, %v2702_v10  ;;  %v2704_v50 = vpop.eup %2703 }
 0x4d7   : > { %2707 = vrcp.f32 %v1887_v48  ;;  %v2706_v13 = vpop.eup %2705  ;;  %v1900_v9 = vadd.f32 1.0, %v2704_v50 }
 0x4d8   : > { %2709 = vrcp.f32 %v1893_v42 }
 0x4d9   : > { %2711 = vrcp.f32 %v1900_v9 }
 0x4e1   : > { %v2708_v24 = vpop.eup %2707 }
 0x4e2   : > { %v2710_v5 = vpop.eup %2709  ;;  %v1904_v8 = vmul.f32 %v2708_v24, %v2706_v13 }
 0x4e3   : > { %v1903_v18 = vmul.f32 %v2710_v5, %v3427_v54  ;;  %v2712_v33 = vpop.eup %2711 }
 0x4e5   : > { %v1905_v23 = vadd.f32 %v1904_v8, %v1903_v18  ;;  %v2059_v44 = vpop.f32.mrb[16].mxu0 }
 0x4e6   : > { %v2060_v20 = vadd.f32 %v2059_v44, %v1938_v15  ;;  %v2061_v46 = vpop.f32.mrb[17].mxu0 }
 0x4e7   : > { %1910 = vst [vmem:[#allocation3] sm:$0xff] %v1905_v23  ;;  %v2062_v26 = vadd.f32 %v2061_v46, %v1942_v22  ;;  %v2063_v21 = vpop.f32.mrb[18].mxu0  ;;  %2713 = vtanh.f32 %v1905_v23 }
 0x4e8   : > { %2078 = vst [vmem:[%s3168_s26] sm:$0xff] %v2060_v20  ;;  %v2064_v27 = vadd.f32 %v2063_v21, %v1938_v15  ;;  %v2065_v30 = vpop.f32.mrb[19].mxu0 }
 0x4e9   : > { %2079 = vst [vmem:[%s3168_s26 + $0x8] sm:$0xff] %v2062_v26  ;;  %v2066_v31 = vadd.f32 %v2065_v30, %v1942_v22 }
 0x4ea   : > { %2080 = vst [vmem:[%s3168_s26 + $0x10] sm:$0xff] %v2064_v27 }
 0x4eb   : > { %2081 = vst [vmem:[%s3168_s26 + $0x18] sm:$0xff] %v2066_v31 }
 0x4f1   : > { %v2714_v54 = vpop.eup %2713 }
 0x4f2   : > { %v1907_v25 = vmul.f32 %v2714_v54, %v2712_v33 }
 0x4f4   : > { %1909 = vst [vmem:[#allocation2] sm:$0xff] %v1907_v25  ;;  %v1916_v35 = vpack.c.bf16 %v1907_v25, %v3430_v29 }
 0x4f6   : > { %2068 = vmatmul.mubr.bf16.gmra.mrb[20].mxu0 %v1916_v35 }
 0x5c9   : > { %v2069_v39 = vpop.f32.mrb[20].mxu0 }
 0x5ca   : > { %v2070_v47 = vadd.f32 %v2069_v39, %v1938_v15  ;;  %v2071_v34 = vpop.f32.mrb[21].mxu0 }
 0x5cb   : > { %v2072_v52 = vadd.f32 %v2071_v34, %v1942_v22  ;;  %v2073_v28 = vpop.f32.mrb[22].mxu0 }
 0x5cc   : > { %2082 = vst [vmem:[%s3168_s26 + $0x20] sm:$0xff] %v2070_v47  ;;  %v2074_v32 = vadd.f32 %v2073_v28, %v1938_v15  ;;  %v2075_v37 = vpop.f32.mrb[23].mxu0 }
 0x5cd   : > { %2083 = vst [vmem:[%s3168_s26 + $0x28] sm:$0xff] %v2072_v52  ;;  %v2076_v29 = vadd.f32 %v2075_v37, %v1942_v22 }
 0x5ce   : > { %2084 = vst [vmem:[%s3168_s26 + $0x30] sm:$0xff] %v2074_v32 }
 0x5cf   : > { %2085 = vst [vmem:[%s3168_s26 + $0x38] sm:$0xff] %v2076_v29 }
 0x5d0   : > { %2842 = shalt.err (!%p2839_p10)
}
 0x5d1   : > { %s2843_s26 = scalar_lea.hbm %s3461_s14, 1024  ;;  %s2847_s18 = scalar_lea.hbm %s3516_s6, 2048 }
 0x5d2   : > { %p2844_p3 = scmp.ne.s32.totalorder %s3461_s14, %s2843_s26  ;;  %p2848_p0 = scmp.lt.u32.totalorder %s3461_s14, %s3516_s6 }
 0x5d3   : > { %p2849_p6 = scmp.lt.u32.totalorder %s2847_s18, %s2843_s26  ;;  %p2851_p11 = scmp.lt.u32.totalorder %s2843_s26, %s3461_s14 }
 0x5d4   : > { %p2845_p12 = pnand %p2844_p3, %p3101_p5 }
 0x5d5   : > { %p2850_p8 = por %p2849_p6, %p2848_p0 }
 0x5d6   : > { %p2846_p9 = pneg %p2845_p12 }
 0x5d7   : > { %p2852_p7 = por %p2851_p11, %p2850_p8 }
 0x5d9   : > { %p2853_p13 = pnand %p2852_p7, %p2846_p9 }
 0x5db   : > { %2856 = shalt.err (!%p2853_p13)
}
 0x5dc   : > { %s2918_s13 = smov 256   ;;  %s2919_s9 = smov 16  }
 0x5dd   : > { %2432 = dma.vmem_to_hbm [thread:$0]  (%p3101_p5), %s3463_s7, 1024, %s3461_s14, %s2087_s25, %s2918_s13, %s2918_s13, %s2919_s9  }
 0x5de PF: > { %s2116_s12 = sand.u32 1, %s2891_s21   ;;  %p3548_p2 = scmp.ne.s32.totalorder %s3527_s28, 0 }
 0x5df   : > { %p3549_p1 = scmp.ge.s32.totalorder %s2903_s24, 2  ;;  %s2117_s19 = scalar_lea.sflag [#allocation8], %s2116_s12 }
 0x5e1   : > { %p2449_p4 = pnand %p3549_p1, %p3548_p2 }
 0x5e3   : > { %2886 = dma.done.wait (!%p2449_p4), %s2117_s19, 1024  }
 0x5e4   : > { %2888 = vsyncadd (!%p2449_p4), %s2117_s19, 4294966272  ;;  %p21_p10 = scmp.ge.s32.totalorder %s3087_s11, 4   ;;  %s3550_s21 = smov %s2895_s22 }
 0x5e5   : > { %s3551_s22 = smov %s2899_s23  ;;  %s3552_s23 = smov %s3097_s15 }
 0x5e6   : > { %s3553_s24 = smov %s3087_s11  ;;  %23 = sbr.rel (!%p21_p10) target bundleno = 7 (0x7), region = 105 }
 0x5ed   :  { %2122 = vsyncpa [#allocation7], 1 }
 0x5ee   :  { %2124 = vsyncpa [#allocation7 + $0x1], 1 }
 0x5ef   :  { %2125 = vsyncpa [#allocation10], 1 }
 0x5f0   :  { %2126 = vsyncpa [#allocation13], 1 }
 0x5f1   :  { %2127 = vsyncpa [#allocation8], 1 }
 0x5f2   :  { %2129 = vsyncpa [#allocation8 + $0x1], 1 }

// kernel: tpu_custom_call.1
= control target key start
LH: loop header
LB: loop body
LE: loop exit
PB: predicated region body
PF: predicated region fallthrough
CT: control target
= control target key end

     0   :  { %11 = vsyncpa [#allocation7], 0  ;;  %s3510_s0 = inlined_call_operand.hbm [shape: bf16[64,128], index: 0, kind: input, shape index: {}]   ;;  %s3511_s1 = inlined_call_operand.hbm [shape: bf16[128,512], index: 1, kind: input, shape index: {}]   ;;  %s3512_s2 = inlined_call_operand.vmem [shape: f32[1,512], index: 2, kind: input, shape index: {}]   ;;  %s3513_s3 = inlined_call_operand.hbm [shape: bf16[128,512], index: 3, kind: input, shape index: {}]   ;;  %s3514_s4 = inlined_call_operand.hbm [shape: bf16[128,256], index: 4, kind: input, shape index: {}]   ;;  %s3515_s5 = inlined_call_operand.vmem [shape: f32[1,256], index: 5, kind: input, shape index: {}]   ;;  %s3516_s6 = inlined_call_operand.hbm [shape: f32[64,256], index: 6, kind: output, shape index: {}]  }
   0x1   :  { %13 = vsyncpa [#allocation7 + $0x1], 0 }
   0x2   :  { %14 = vsyncpa [#allocation10], 0 }
   0x3   :  { %15 = vsyncpa [#allocation13], 0 }
   0x4   :  { %16 = vsyncpa [#allocation8], 0 }
   0x5   :  { %18 = vsyncpa [#allocation8 + $0x1], 0  ;;  %s2955_s21 = smov 0   ;;  %s2957_s22 = smov 0  }
   0x6   :  { %s2959_s23 = smov 0   ;;  %s2961_s24 = smov 0  }
   0x7 LB: > { %s2976_s25 = sadd.s32 4294967295, %s2903_s24   ;;  %s2203_s26 = sadd.s32 4294967294, %s2903_s24   ;;  %s2903_s24 = sphi %s2961_s24, %s3553_s24   ;;  %s2899_s23 = sphi %s2959_s23, %s3552_s23   ;;  %s2895_s22 = sphi %s2957_s22, %s3551_s22   ;;  %s2891_s21 = sphi %s2955_s21, %s3550_s21  }
   0x8   : > { %p44_p0 = scmp.ne.s32.totalorder %s2895_s22, %s2891_s21  ;;  %p3517_p1 = scmp.eq.s32.totalorder %s2976_s25, 0 }
   0x9   : > { %p179_p3 = scmp.eq.s32.totalorder %s2203_s26, 1  ;;  %p2204_p5 = scmp.ge.s32.totalorder %s2903_s24, 1 }
   0xa   : > { %p2985_p4 = por %p3517_p1, %p44_p0  ;;  %p186_p7 = scmp.lt.s32.totalorder %s2903_s24, 3 }
   0xb   : > { %p2990_p6 = por %p179_p3, %p44_p0  ;;  %s2905_s30 = smov [#allocation9]  }
   0xc   : > { %s3526_s27 = scalar_select %p2985_p4, 1, 0 }
   0xd   : > { %s3527_s28 = scalar_select %p2990_p6, 1, 0 }
   0xe   : > { %p2996_p9 = pnand %p2204_p5, %p186_p7  ;;  %s198_s7 = sshll.u32 %s2905_s30, 4  ;;  %s3000_s7 = int_to_ptr.vmem [resolvable:$true] %s198_s7 }
   0xf   : > { %s2906_s9 = smov [#allocation11]   ;;  %s2907_s11 = smov [#allocation12]  }
  0x10   : > { %s3528_s29 = scalar_select %p2996_p9, 1, 0 }
  0x11   : > { %p2434_p10 = pneg %p2996_p9  ;;  %s214_s10 = sshll.u32 %s2906_s9, 4  ;;  %s3011_s10 = int_to_ptr.vmem [resolvable:$true] %s214_s10 }
  0x12   : > { %s3013_s12 = sshll.u32 %s2907_s11, 4  ;;  %s2715_s15 = scalar_lea.hbm %s3511_s1, 4096  ;;  %s228_s12 = int_to_ptr.vmem [resolvable:$true] %s3013_s12 }
  0x13   : > { %p3007_p12 = pnand %p2434_p10, %p3517_p1  ;;  %p2716_p13 = scmp.ne.s32.totalorder %s3511_s1, %s2715_s15 }
  0x14   : > { %p2722_p7 = scmp.lt.u32.totalorder %s2715_s15, %s3511_s1 }
  0x15   : > { %p3023_p0 = pneg %p3007_p12 }
  0x17   : > { %p2718_p3 = pnand %p3023_p0, %p2716_p13 }
  0x19   : > { %p2719_p5 = pneg %p2718_p3 }
  0x1b   : > { %p2724_p10 = pnand %p2722_p7, %p2719_p5 }
  0x1d   : > { %2727 = shalt.err (!%p2724_p10)
}
  0x1e   : > { %s2728_s26 = scalar_lea.vmem %s3000_s7, 4096  ;;  %p2736_p2 = scmp.lt.s32.totalorder %s3000_s7, %s3000_s7 }
  0x1f   : > { %p2729_p11 = scmp.ne.s32.totalorder %s3000_s7, %s2728_s26  ;;  %p2737_p6 = scmp.lt.s32.totalorder %s2728_s26, %s2728_s26 }
  0x21   : > { %p2731_p8 = pnand %p2729_p11, %p3023_p0  ;;  %p2738_p13 = por %p2737_p6, %p2736_p2 }
  0x23   : > { %p2732_p1 = pneg %p2731_p8 }
  0x25   : > { %p2739_p3 = pnand %p2738_p13, %p2732_p1 }
  0x27   : > { %2742 = shalt.err (!%p2739_p3)
}
  0x28   : > { %s2908_s30 = smov 256   ;;  %s2909_s9 = smov 16  }
  0x29   : > { %2437 = dma.hbm_to_vmem [thread:$0]  (!%p3007_p12), %s3511_s1, 4096, %s3000_s7, [#allocation10], %s2908_s30, %s2908_s30, %s2909_s9  }
  0x2a   : > { %s2743_s16 = scalar_lea.hbm %s3513_s3, 4096 }
  0x2b   : > { %p2744_p2 = scmp.ne.s32.totalorder %s3513_s3, %s2743_s16  ;;  %p2750_p8 = scmp.lt.u32.totalorder %s2743_s16, %s3513_s3 }
  0x2d   : > { %p2746_p1 = pnand %p2744_p2, %p3023_p0 }
  0x2f   : > { %p2747_p6 = pneg %p2746_p1 }
  0x31   : > { %p2752_p11 = pnand %p2750_p8, %p2747_p6 }
  0x33   : > { %2755 = shalt.err (!%p2752_p11)
}
  0x34   : > { %s2756_s7 = scalar_lea.vmem %s3011_s10, 4096  ;;  %p2764_p13 = scmp.lt.s32.totalorder %s3011_s10, %s3011_s10 }
  0x35   : > { %p2757_p5 = scmp.ne.s32.totalorder %s3011_s10, %s2756_s7  ;;  %p2765_p3 = scmp.lt.s32.totalorder %s2756_s7, %s2756_s7 }
  0x37   : > { %p2759_p7 = pnand %p2757_p5, %p3023_p0  ;;  %p2766_p2 = por %p2765_p3, %p2764_p13 }
  0x39   : > { %p2760_p10 = pneg %p2759_p7 }
  0x3b   : > { %p2767_p1 = pnand %p2766_p2, %p2760_p10 }
  0x3d   : > { %2770 = shalt.err (!%p2767_p1)
}
  0x3e   : > { %2440 = dma.hbm_to_vmem [thread:$0]  (!%p3007_p12), %s3513_s3, 4096, %s3011_s10, [#allocation10], %s2908_s30, %s2908_s30, %s2909_s9  }
  0x3f   : > { %s2771_s16 = scalar_lea.hbm %s3514_s4, 2048 }
  0x40   : > { %p2772_p6 = scmp.ne.s32.totalorder %s3514_s4, %s2771_s16  ;;  %p2778_p5 = scmp.lt.u32.totalorder %s2771_s16, %s3514_s4 }
  0x42   : > { %p2774_p8 = pnand %p2772_p6, %p3023_p0 }
  0x44   : > { %p2775_p11 = pneg %p2774_p8 }
  0x46   : > { %p2780_p7 = pnand %p2778_p5, %p2775_p11 }
  0x48   : > { %2783 = shalt.err (!%p2780_p7)
}
  0x49   : > { %s2784_s7 = scalar_lea.vmem %s228_s12, 2048  ;;  %p2792_p2 = scmp.lt.s32.totalorder %s228_s12, %s228_s12 }
  0x4a   : > { %p2785_p10 = scmp.ne.s32.totalorder %s228_s12, %s2784_s7  ;;  %p2793_p1 = scmp.lt.s32.totalorder %s2784_s7, %s2784_s7 }
  0x4c   : > { %p2787_p13 = pnand %p2785_p10, %p3023_p0  ;;  %p2794_p4 = por %p2793_p1, %p2792_p2 }
  0x4e   : > { %p2788_p3 = pneg %p2787_p13 }
  0x50   : > { %p2795_p9 = pnand %p2794_p4, %p2788_p3 }
  0x52   : > { %2798 = shalt.err (!%p2795_p9)
}
  0x53   : > { %s2910_s10 = smov 128   ;;  %s2911_s18 = smov 8  }
  0x54   : > { %2443 = dma.hbm_to_vmem [thread:$0]  (!%p3007_p12), %s3514_s4, 2048, %s228_s12, [#allocation13], %s2910_s10, %s2910_s10, %s2911_s18  }
  0x55   : > { %s3087_s11 = sadd.s32 1, %s2903_s24   ;;  %s31_s14 = sadd.s32 1, %s2899_s23 }
  0x56   : > { %s28_s13 = ssub.s32 %s2903_s24, %s3087_s11  ;;  %p38_p9 = scmp.ne.s32.totalorder %s2899_s23, %s2895_s22 }
  0x57   : > { %p29_p4 = scmp.eq.s32.totalorder %s28_s13, 0  ;;  %p39_p0 = scmp.eq.s32.totalorder %s2903_s24, 0 }
  0x58   : > { %p2455_p6 = scmp.lt.s32.totalorder %s2903_s24, 2  ;;  %p3531_p11 = scmp.eq.s32.totalorder %s2976_s25, 1 }
  0x59   : > { %s3097_s15 = scalar_select %p29_p4, %s2899_s23, %s31_s14  }
  0x5a   : > { %p40_p8 = por %p39_p0, %p38_p9  ;;  %p3101_p5 = por %p3531_p11, %p38_p9 }
  0x5b   : > { %s244_s8 = sand.u32 1, %s2899_s23   ;;  %s2415_s17 = sshll.u32 %s2903_s24, 8 }
  0x5c   : > { %s2209_s12 = sshll.u32 %s244_s8, 4  ;;  %s3110_s26 = scalar_lea.hbm %s3510_s0, %s2415_s17 }
  0x5d   : > { %s248_s7 = scalar_lea.vmem [#allocation6], %s2209_s12  ;;  %p3112_p12 = pnand %p2455_p6, %p40_p8 }
  0x5e   : > { %s255_s10 = sshll.u32 %s248_s7, 4  ;;  %s3118_s30 = scalar_lea.sflag [#allocation7], %s244_s8  ;;  %s3116_s10 = int_to_ptr.vmem [resolvable:$true] %s255_s10 }
  0x5f   : > { %s2799_s9 = scalar_lea.hbm %s3110_s26, 256  ;;  %p2801_p10 = pneg %p3112_p12 }
  0x60   : > { %p2800_p7 = scmp.ne.s32.totalorder %s3110_s26, %s2799_s9  ;;  %s2804_s17 = scalar_lea.hbm %s3510_s0, 512 }
  0x61   : > { %p2805_p2 = scmp.lt.u32.totalorder %s3110_s26, %s3510_s0  ;;  %p2806_p1 = scmp.lt.u32.totalorder %s2804_s17, %s2799_s9 }
  0x62   : > { %p2802_p13 = pnand %p2801_p10, %p2800_p7  ;;  %p2808_p9 = scmp.lt.u32.totalorder %s2799_s9, %s3110_s26 }
  0x63   : > { %p2807_p4 = por %p2806_p1, %p2805_p2 }
  0x64   : > { %p2803_p3 = pneg %p2802_p13 }
  0x65   : > { %p2809_p0 = por %p2808_p9, %p2807_p4 }
  0x67   : > { %p2810_p6 = pnand %p2809_p0, %p2803_p3 }
  0x69   : > { %2813 = shalt.err (!%p2810_p6)
}
  0x6a   : > { %s2814_s8 = scalar_lea.vmem %s3116_s10, 256  ;;  %s2912_s20 = smov [#allocation6]  }
  0x6b   : > { %p2815_p8 = scmp.ne.s32.totalorder %s3116_s10, %s2814_s8  ;;  %s2819_s7 = sshll.u32 %s2912_s20, 4  ;;  %s2820_s7 = int_to_ptr.vmem [resolvable:$false] %s2819_s7 }
  0x6c   : > { %s2821_s13 = scalar_lea.vmem %s2820_s7, 512  ;;  %p2822_p13 = scmp.lt.s32.totalorder %s3116_s10, %s2820_s7 }
  0x6d   : > { %p2817_p11 = pnand %p2815_p8, %p2801_p10  ;;  %p2823_p2 = scmp.lt.s32.totalorder %s2821_s13, %s2814_s8 }
  0x6f   : > { %p2818_p7 = pneg %p2817_p11  ;;  %p2824_p1 = por %p2823_p2, %p2822_p13 }
  0x71   : > { %p2825_p4 = pnand %p2824_p1, %p2818_p7 }
  0x73   : > { %2828 = shalt.err (!%p2825_p4)
}
  0x74   : > { %s2913_s9 = smov 64   ;;  %s2914_s14 = smov 4  }
  0x75   : > { %2447 = dma.hbm_to_vmem [thread:$0]  (!%p3112_p12), %s3110_s26, 256, %s3116_s10, %s3118_s30, %s2913_s9, %s2913_s9, %s2914_s14  }
  0x76   : > { %p3534_p10 = scmp.ne.s32.totalorder %s3528_s29, 0 }
  0x78   : > { %267 = sbr.rel (%p3534_p10) target bundleno = 1502 (0x5de), region = 44 }
  0x7f   : > { %s3149_s17 = sand.u32 1, %s2895_s22   ;;  %p3535_p3 = scmp.ne.s32.totalorder %s3526_s27, 0 }
  0x80   : > { %s2213_s12 = sshll.u32 %s3149_s17, 4  ;;  %s270_s19 = scalar_lea.sflag [#allocation7], %s3149_s17 }
  0x81   : > { %s3153_s8 = scalar_lea.vmem [#allocation6], %s2213_s12 }
  0x82   : > { %2874 = dma.done.wait (%p3535_p3), %s270_s19, 256  }
  0x83   : > { %2876 = vsyncadd (%p3535_p3), %s270_s19, 4294967040  ;;  %p3536_p12 = scmp.eq.s32.totalorder %s2976_s25, 0 }
  0x85   : > { %2878 = dma.done.wait (%p3536_p12), [#allocation10], 8192   ;;  %p3537_p9 = pmov %p3536_p12 }
  0x87   : > { %2880 = vsyncadd (%p3537_p9), [#allocation10], 4294959104  ;;  %p3538_p0 = pmov %p3537_p9 }
  0x89   : > { %2882 = dma.done.wait (%p3538_p0), [#allocation13], 2048   ;;  %p3539_p6 = pmov %p3538_p0 }
  0x8a   : > { %s2217_s29 = sshll.u32 %s3149_s17, 6  ;;  %p3540_p8 = scmp.ne.s32.totalorder %s2976_s25, 0 }
  0x8b   : > { %2884 = vsyncadd (%p3539_p6), [#allocation13], 4294965248  ;;  %s3168_s26 = scalar_lea.vmem [#allocation14], %s2217_s29  ;;  %v2915_v0 = vmov (!%p3540_p8), 0.0  }
  0x8c   : > { %320 = sbr.rel (%p3540_p8) target bundleno = 147 (0x93), region = 64  ;;  %321 = vst [vmem:[#allocation2] sm:$0xff] (!%p3540_p8), %v2915_v0  ;;  %322 = vst [vmem:[#allocation3] sm:$0xff] (!%p3540_p8), %v2915_v0 }
  0x93 PF: > { %v2505_v1 = vld [vmem:[#allocation9 + $0x4] ss:$16 sps:$4 sm:$0xff]   ;;  %v2507_v2 = vld [vmem:[#allocation9] ss:$16 sps:$4 sm:$0xff]   ;;  %v3522_v3 = vmov 0   ;;  %v2572_v42 = vld [vmem:[%s3153_s8 + $0x8] sm:$0xff]  }
  0x94   : > { %585 = vmatprep.mubr.bf16.mxu1 %v3522_v3  ;;  %906 = vmatprep.mubr.bf16.mxu0 %v3522_v3  ;;  %v3174_v4 = vld [vmem:[#allocation11 + $0x4] ss:$16 sps:$4 sm:$0xff]   ;;  %v3176_v5 = vld [vmem:[#allocation11] ss:$16 sps:$4 sm:$0xff]   ;;  %v2556_v34 = vld [vmem:[#allocation9 + $0xc] ss:$16 sps:$4 sm:$0xff]  }
  0x95   : > { %553 = vmatprep.subr.bf16.mxu1 %v2505_v1  ;;  %v2511_v6 = vld [vmem:[#allocation9 + $0x24] ss:$16 sps:$4 sm:$0xff]   ;;  %v2513_v7 = vld [vmem:[#allocation9 + $0x20] ss:$16 sps:$4 sm:$0xff]   ;;  %874 = vmatprep.subr.bf16.mxu0 %v3174_v4  ;;  %v2554_v37 = vld [vmem:[#allocation9 + $0x8] ss:$16 sps:$4 sm:$0xff]  }
  0x96   : > { %554 = vmatpush1.bf16.msra.mxu1 %v2507_v2  ;;  %v3179_v8 = vld [vmem:[#allocation11 + $0x24] ss:$16 sps:$4 sm:$0xff]   ;;  %875 = vmatpush1.bf16.msra.mxu0 %v3176_v5  ;;  %v3182_v9 = vld [vmem:[#allocation11 + $0x20] ss:$16 sps:$4 sm:$0xff]   ;;  %v2559_v39 = vld [vmem:[#allocation9 + $0x2c] ss:$16 sps:$4 sm:$0xff]  }
  0x97   : > { %555 = vmatprep.subr.bf16.mxu1 %v2511_v6  ;;  %876 = vmatprep.subr.bf16.mxu0 %v3179_v8  ;;  %v2517_v10 = vld [vmem:[#allocation9 + $0x44] ss:$16 sps:$4 sm:$0xff]   ;;  %v2519_v11 = vld [vmem:[#allocation9 + $0x40] ss:$16 sps:$4 sm:$0xff]   ;;  %v2557_v40 = vld [vmem:[#allocation9 + $0x28] ss:$16 sps:$4 sm:$0xff]  }
  0x98   : > { %v3185_v12 = vld [vmem:[#allocation11 + $0x44] ss:$16 sps:$4 sm:$0xff]   ;;  %v3188_v14 = vld [vmem:[#allocation11 + $0x40] ss:$16 sps:$4 sm:$0xff]   ;;  %v2562_v41 = vld [vmem:[#allocation9 + $0x4c] ss:$16 sps:$4 sm:$0xff]  }
  0x99   : > { %v2523_v13 = vld [vmem:[#allocation9 + $0x64] ss:$16 sps:$4 sm:$0xff]   ;;  %v2525_v16 = vld [vmem:[#allocation9 + $0x60] ss:$16 sps:$4 sm:$0xff]   ;;  %v2560_v43 = vld [vmem:[#allocation9 + $0x48] ss:$16 sps:$4 sm:$0xff]  }
  0x9a   : > { %556 = vmatpush1.bf16.msra.mxu1 %v2513_v7  ;;  %877 = vmatpush1.bf16.msra.mxu0 %v3182_v9  ;;  %v3191_v15 = vld [vmem:[#allocation11 + $0x64] ss:$16 sps:$4 sm:$0xff]   ;;  %v3194_v18 = vld [vmem:[#allocation11 + $0x60] ss:$16 sps:$4 sm:$0xff]   ;;  %v2565_v44 = vld [vmem:[#allocation9 + $0x6c] ss:$16 sps:$4 sm:$0xff]  }
  0x9b   : > { %557 = vmatprep.subr.bf16.mxu1 %v2517_v10  ;;  %878 = vmatprep.subr.bf16.mxu0 %v3185_v12  ;;  %v2529_v17 = vld [vmem:[#allocation9 + $0x84] ss:$16 sps:$4 sm:$0xff]   ;;  %v2531_v20 = vld [vmem:[#allocation9 + $0x80] ss:$16 sps:$4 sm:$0xff]   ;;  %v2563_v45 = vld [vmem:[#allocation9 + $0x68] ss:$16 sps:$4 sm:$0xff]   ;;  %v361_v10 = vlaneseq }
  0x9c   : > { %v3197_v19 = vld [vmem:[#allocation11 + $0x84] ss:$16 sps:$4 sm:$0xff]   ;;  %v3200_v22 = vld [vmem:[#allocation11 + $0x80] ss:$16 sps:$4 sm:$0xff]   ;;  %v2568_v46 = vld [vmem:[#allocation9 + $0x8c] ss:$16 sps:$4 sm:$0xff]  }
  0x9d   : > { %v2535_v21 = vld [vmem:[#allocation9 + $0xa4] ss:$16 sps:$4 sm:$0xff]   ;;  %v2537_v24 = vld [vmem:[#allocation9 + $0xa0] ss:$16 sps:$4 sm:$0xff]   ;;  %v2566_v47 = vld [vmem:[#allocation9 + $0x88] ss:$16 sps:$4 sm:$0xff]  }
  0x9e   : > { %558 = vmatpush1.bf16.msra.mxu1 %v2519_v11  ;;  %879 = vmatpush1.bf16.msra.mxu0 %v3188_v14  ;;  %v3203_v23 = vld [vmem:[#allocation11 + $0xa4] ss:$16 sps:$4 sm:$0xff]   ;;  %v3206_v26 = vld [vmem:[#allocation11 + $0xa0] ss:$16 sps:$4 sm:$0xff]   ;;  %v2571_v48 = vld [vmem:[#allocation9 + $0xac] ss:$16 sps:$4 sm:$0xff]  }
  0x9f   : > { %559 = vmatprep.subr.bf16.mxu1 %v2523_v13  ;;  %880 = vmatprep.subr.bf16.mxu0 %v3191_v15  ;;  %v2541_v25 = vld [vmem:[#allocation9 + $0xc4] ss:$16 sps:$4 sm:$0xff]   ;;  %v2543_v28 = vld [vmem:[#allocation9 + $0xc0] ss:$16 sps:$4 sm:$0xff]   ;;  %v2569_v49 = vld [vmem:[#allocation9 + $0xa8] ss:$16 sps:$4 sm:$0xff]  }
  0xa0   : > { %v3209_v27 = vld [vmem:[#allocation11 + $0xc4] ss:$16 sps:$4 sm:$0xff]   ;;  %v3212_v30 = vld [vmem:[#allocation11 + $0xc0] ss:$16 sps:$4 sm:$0xff]   ;;  %v2575_v50 = vld [vmem:[#allocation9 + $0xcc] ss:$16 sps:$4 sm:$0xff]  }
  0xa1   : > { %v2547_v29 = vld [vmem:[#allocation9 + $0xe4] ss:$16 sps:$4 sm:$0xff]   ;;  %v2549_v32 = vld [vmem:[#allocation9 + $0xe0] ss:$16 sps:$4 sm:$0xff]   ;;  %v2573_v51 = vld [vmem:[#allocation9 + $0xc8] ss:$16 sps:$4 sm:$0xff]  }
  0xa2   : > { %560 = vmatpush1.bf16.msra.mxu1 %v2525_v16  ;;  %881 = vmatpush1.bf16.msra.mxu0 %v3194_v18  ;;  %v3215_v31 = vld [vmem:[#allocation11 + $0xe4] ss:$16 sps:$4 sm:$0xff]   ;;  %v3217_v33 = vld [vmem:[#allocation11 + $0xe0] ss:$16 sps:$4 sm:$0xff]   ;;  %v2578_v52 = vld [vmem:[#allocation9 + $0xec] ss:$16 sps:$4 sm:$0xff]  }
  0xa3   : > { %561 = vmatprep.subr.bf16.mxu1 %v2529_v17  ;;  %882 = vmatprep.subr.bf16.mxu0 %v3197_v19  ;;  %v675_v35 = vld [vmem:[#allocation2] sm:$0xff]  ;;  %v2576_v53 = vld [vmem:[#allocation9 + $0xe8] ss:$16 sps:$4 sm:$0xff]   ;;  %v3243_v54 = vld [vmem:[#allocation11 + $0xc] ss:$16 sps:$4 sm:$0xff]   ;;  %v3316_v11 = vshrl.u32 %v361_v10, 7 }
  0xa4   : > { %v2553_v36 = vld [vmem:[%s3153_s8] sm:$0xff]   ;;  %v3222_v38 = vpack.c.bf16 %v675_v35, %v675_v35  ;;  %v3247_v55 = vld [vmem:[#allocation11 + $0x8] ss:$16 sps:$4 sm:$0xff]   ;;  %v3250_v56 = vld [vmem:[#allocation11 + $0x2c] ss:$16 sps:$4 sm:$0xff]   ;;  %s2417_s20 = sshll.u32 %s2976_s25, 10 }
  0xa5   : > { %v3255_v57 = vld [vmem:[#allocation11 + $0x28] ss:$16 sps:$4 sm:$0xff]   ;;  %v3259_v58 = vld [vmem:[#allocation11 + $0x4c] ss:$16 sps:$4 sm:$0xff]   ;;  %3541 = vst [vmem:[#allocation19_spill] sm:$0xff] %v3316_v11  ;;  %v3521_v13 = vsub.s32 0, %v3316_v11  ;;  %s3461_s14 = scalar_lea.hbm %s3516_s6, %s2417_s20 }
  0xa6   : > { %562 = vmatpush1.bf16.msra.mxu1 %v2531_v20  ;;  %883 = vmatpush1.bf16.msra.mxu0 %v3200_v22  ;;  %v3262_v59 = vld [vmem:[#allocation11 + $0x48] ss:$16 sps:$4 sm:$0xff]   ;;  %v3265_v60 = vld [vmem:[#allocation11 + $0x6c] ss:$16 sps:$4 sm:$0xff]   ;;  %v359_v16 = vld [vmem:[%s3512_s2] sm:$0xf] }
  0xa7   : > { %563 = vmatprep.subr.bf16.mxu1 %v2535_v21  ;;  %884 = vmatprep.subr.bf16.mxu0 %v3203_v23  ;;  %v3268_v61 = vld [vmem:[#allocation11 + $0x68] ss:$16 sps:$4 sm:$0xff]   ;;  %v3272_v62 = vld [vmem:[#allocation11 + $0x8c] ss:$16 sps:$4 sm:$0xff]   ;;  %v3520_v17 = vsub.s32 1, %v3316_v11  ;;  %v364_v20 = vrot.slane %v359_v16, %v3521_v13  ;;  %s2101_s7 = sshll.u32 %s3168_s26, 4  ;;  %s3463_s7 = int_to_ptr.vmem [resolvable:$true] %s2101_s7 }
  0xa8   : > { %v3275_v63 = vld [vmem:[#allocation11 + $0x88] ss:$16 sps:$4 sm:$0xff]   ;;  %v3278_v0 = vld [vmem:[#allocation11 + $0xac] ss:$16 sps:$4 sm:$0xff]   ;;  %s2087_s25 = scalar_lea.sflag [#allocation8], %s3149_s17  ;;  %s2829_s12 = scalar_lea.vmem %s3463_s7, 1024 }
  0xa9   : > { %v3281_v1 = vld [vmem:[#allocation11 + $0xa8] ss:$16 sps:$4 sm:$0xff]   ;;  %v3284_v2 = vld [vmem:[#allocation11 + $0xcc] ss:$16 sps:$4 sm:$0xff]   ;;  %v368_v21 = vrot.slane %v359_v16, %v3520_v17  ;;  %p2830_p11 = scmp.ne.s32.totalorder %s3463_s7, %s2829_s12  ;;  %s2917_s19 = smov [#allocation14]  }
  0xaa   : > { %564 = vmatpush1.bf16.msra.mxu1 %v2537_v24  ;;  %885 = vmatpush1.bf16.msra.mxu0 %v3206_v26  ;;  %v3290_v6 = vld [vmem:[#allocation11 + $0xec] ss:$16 sps:$4 sm:$0xff]   ;;  %v3293_v7 = vld [vmem:[#allocation11 + $0xe8] ss:$16 sps:$4 sm:$0xff]   ;;  %s2833_s8 = sshll.u32 %s2917_s19, 4  ;;  %s2834_s8 = int_to_ptr.vmem [resolvable:$false] %s2833_s8 }
  0xab   : > { %565 = vmatprep.subr.bf16.mxu1 %v2541_v25  ;;  %886 = vmatprep.subr.bf16.mxu0 %v3209_v27  ;;  %p2831_p7 = pnand %p2830_p11, %p3101_p5  ;;  %s2835_s29 = scalar_lea.vmem %s2834_s8, 2048 }
  0xac   : > { %p2836_p2 = scmp.lt.s32.totalorder %s3463_s7, %s2834_s8  ;;  %p2837_p1 = scmp.lt.s32.totalorder %s2835_s29, %s2829_s12 }
  0xad   : > { %p2832_p13 = pneg %p2831_p7 }
  0xae   : > { %566 = vmatpush1.bf16.msra.mxu1 %v2543_v28  ;;  %887 = vmatpush1.bf16.msra.mxu0 %v3212_v30  ;;  %p2838_p4 = por %p2837_p1, %p2836_p2 }
  0xaf   : > { %567 = vmatprep.subr.bf16.mxu1 %v2547_v29  ;;  %888 = vmatprep.subr.bf16.mxu0 %v3215_v31 }
  0xb0   : > { %p2839_p10 = pnand %p2838_p4, %p2832_p13 }
  0xb2   : > { %568 = vmatpush1.bf16.msra.mxu1 %v2549_v32  ;;  %889 = vmatpush1.bf16.msra.mxu0 %v3217_v33 }
  0xb3   : > { %606 = vmatprep.subr.bf16.mxu1 %v2556_v34  ;;  %1182 = vmatprep.subr.bf16.mxu0 %v3174_v4 }
  0xb5   : > { %586 = vmatmul.mubr.bf16.vlgmr.msra.gmra.mrb[0].mxu1 %v2553_v36  ;;  %907 = vmatmul.mubr.bf16.vlgmr.msra.gmra.mrb[0].mxu0 %v3222_v38 }
  0xb6   : > { %607 = vmatpush1.bf16.msra.mxu1 %v2554_v37  ;;  %595 = vmatprep.mubr.bf16.mxu1 %v3522_v3 }
  0xb7   : > { %608 = vmatprep.subr.bf16.mxu1 %v2559_v39  ;;  %1183 = vmatpush1.bf16.msra.mxu0 %v3176_v5 }
  0xb8   : > { %1214 = vmatprep.mubr.bf16.mxu0 %v3522_v3  ;;  %1184 = vmatprep.subr.bf16.mxu0 %v3179_v8 }
  0xba   : > { %609 = vmatpush1.bf16.msra.mxu1 %v2557_v40 }
  0xbb   : > { %610 = vmatprep.subr.bf16.mxu1 %v2562_v41  ;;  %1185 = vmatpush1.bf16.msra.mxu0 %v3182_v9 }
  0xbc   : > { %1186 = vmatprep.subr.bf16.mxu0 %v3185_v12 }
  0xbd   : > { %596 = vmatmul.mubr.bf16.gmra.mrb[4].mxu1 %v2572_v42 }
  0xbe   : > { %611 = vmatpush1.bf16.msra.mxu1 %v2560_v43  ;;  %638 = vmatprep.mubr.bf16.mxu1 %v3522_v3 }
  0xbf   : > { %612 = vmatprep.subr.bf16.mxu1 %v2565_v44  ;;  %1187 = vmatpush1.bf16.msra.mxu0 %v3188_v14 }
  0xc0   : > { %1188 = vmatprep.subr.bf16.mxu0 %v3191_v15 }
  0xc2   : > { %613 = vmatpush1.bf16.msra.mxu1 %v2563_v45 }
  0xc3   : > { %614 = vmatprep.subr.bf16.mxu1 %v2568_v46  ;;  %1189 = vmatpush1.bf16.msra.mxu0 %v3194_v18 }
  0xc4   : > { %1190 = vmatprep.subr.bf16.mxu0 %v3197_v19 }
  0xc6   : > { %615 = vmatpush1.bf16.msra.mxu1 %v2566_v47 }
  0xc7   : > { %616 = vmatprep.subr.bf16.mxu1 %v2571_v48  ;;  %1191 = vmatpush1.bf16.msra.mxu0 %v3200_v22 }
  0xc8   : > { %1192 = vmatprep.subr.bf16.mxu0 %v3203_v23 }
  0xca   : > { %617 = vmatpush1.bf16.msra.mxu1 %v2569_v49 }
  0xcb   : > { %618 = vmatprep.subr.bf16.mxu1 %v2575_v50  ;;  %1193 = vmatpush1.bf16.msra.mxu0 %v3206_v26 }
  0xcc   : > { %1194 = vmatprep.subr.bf16.mxu0 %v3209_v27 }
  0xce   : > { %619 = vmatpush1.bf16.msra.mxu1 %v2573_v51  ;;  %v371_v51 = vsub.s32 2, %v3316_v11 }
  0xcf   : > { %620 = vmatprep.subr.bf16.mxu1 %v2578_v52  ;;  %1195 = vmatpush1.bf16.msra.mxu0 %v3212_v30  ;;  %v375_v52 = vsub.s32 3, %v3316_v11 }
  0xd0   : > { %1196 = vmatprep.subr.bf16.mxu0 %v3215_v31 }
  0xd2   : > { %621 = vmatpush1.bf16.msra.mxu1 %v2576_v53  ;;  %v372_v53 = vrot.slane %v359_v16, %v371_v51 }
  0xd3   : > { %915 = vmatprep.subr.bf16.mxu1 %v3243_v54  ;;  %1197 = vmatpush1.bf16.msra.mxu0 %v3217_v33 }
  0xd4   : > { %1490 = vmatprep.subr.bf16.mxu0 %v3174_v4  ;;  %v3287_v4 = vld [vmem:[#allocation11 + $0xc8] ss:$16 sps:$4 sm:$0xff]  }
  0xd5   : > { %639 = vmatmul.mubr.bf16.vlgmr.msra.gmra.mrb[8].mxu1 %v2553_v36 }
  0xd6   : > { %916 = vmatpush1.bf16.msra.mxu1 %v3247_v55  ;;  %648 = vmatprep.mubr.bf16.mxu1 %v3522_v3 }
  0xd7   : > { %917 = vmatprep.subr.bf16.mxu1 %v3250_v56 }
  0xda   : > { %918 = vmatpush1.bf16.msra.mxu1 %v3255_v57 }
  0xdb   : > { %919 = vmatprep.subr.bf16.mxu1 %v3259_v58 }
  0xdd   : > { %649 = vmatmul.mubr.bf16.gmra.mrb[12].mxu1 %v2572_v42 }
  0xde   : > { %920 = vmatpush1.bf16.msra.mxu1 %v3262_v59  ;;  %947 = vmatprep.mubr.bf16.mxu1 %v3522_v3 }
  0xdf   : > { %921 = vmatprep.subr.bf16.mxu1 %v3265_v60 }
  0xe2   : > { %922 = vmatpush1.bf16.msra.mxu1 %v3268_v61 }
  0xe3   : > { %923 = vmatprep.subr.bf16.mxu1 %v3272_v62 }
  0xe6   : > { %924 = vmatpush1.bf16.msra.mxu1 %v3275_v63 }
  0xe7   : > { %925 = vmatprep.subr.bf16.mxu1 %v3278_v0 }
  0xea   : > { %926 = vmatpush1.bf16.msra.mxu1 %v3281_v1 }
  0xeb   : > { %927 = vmatprep.subr.bf16.mxu1 %v3284_v2 }
  0xee   : > { %928 = vmatpush1.bf16.msra.mxu1 %v3287_v4 }
  0xef   : > { %929 = vmatprep.subr.bf16.mxu1 %v3290_v6 }
  0xf2   : > { %930 = vmatpush1.bf16.msra.mxu1 %v3293_v7 }
  0xf3   : > { %1223 = vmatprep.subr.bf16.mxu1 %v3243_v54 }
  0xf5   : > { %948 = vmatmul.mubr.bf16.vlgmr.msra.gmra.mrb[16].mxu1 %v3222_v38 }
  0xf6   : > { %1224 = vmatpush1.bf16.msra.mxu1 %v3247_v55  ;;  %1255 = vmatprep.mubr.bf16.mxu1 %v3522_v3 }
  0xf7   : > { %1225 = vmatprep.subr.bf16.mxu1 %v3250_v56 }
  0xfa   : > { %1226 = vmatpush1.bf16.msra.mxu1 %v3255_v57 }
  0xfb   : > { %1227 = vmatprep.subr.bf16.mxu1 %v3259_v58 }
  0xfe   : > { %1228 = vmatpush1.bf16.msra.mxu1 %v3262_v59 }
  0xff   : > { %1229 = vmatprep.subr.bf16.mxu1 %v3265_v60 }
 0x102   : > { %1230 = vmatpush1.bf16.msra.mxu1 %v3268_v61 }
 0x103   : > { %1231 = vmatprep.subr.bf16.mxu1 %v3272_v62 }
 0x106   : > { %1232 = vmatpush1.bf16.msra.mxu1 %v3275_v63 }
 0x107   : > { %1233 = vmatprep.subr.bf16.mxu1 %v3278_v0 }
 0x10a   : > { %1234 = vmatpush1.bf16.msra.mxu1 %v3281_v1 }
 0x10b   : > { %1235 = vmatprep.subr.bf16.mxu1 %v3284_v2 }
 0x10e   : > { %1236 = vmatpush1.bf16.msra.mxu1 %v3287_v4 }
 0x10f   : > { %1237 = vmatprep.subr.bf16.mxu1 %v3290_v6 }
 0x112   : > { %1238 = vmatpush1.bf16.msra.mxu1 %v3293_v7 }
 0x113   : > { %1531 = vmatprep.subr.bf16.mxu1 %v3243_v54 }
 0x188   : > { %v587_v24 = vpop.f32.mrb[0].mxu1  ;;  %v908_v34 = vpop.f32.mrb[0].mxu0 }
 0x189   : > { %v588_v25 = vadd.f32 %v587_v24, %v364_v20  ;;  %v589_v28 = vpop.f32.mrb[1].mxu1  ;;  %v910_v38 = vpop.f32.mrb[1].mxu0 }
 0x18a   : > { %v590_v29 = vadd.f32 %v589_v28, %v368_v21  ;;  %v591_v32 = vpop.f32.mrb[2].mxu1  ;;  %v912_v41 = vpop.f32.mrb[2].mxu0 }
 0x18b   : > { %v3327_v35 = vadd.f32 %v591_v32, %v364_v20  ;;  %v956_v36 = vadd.f32 %v908_v34, %v588_v25  ;;  %v593_v37 = vpop.f32.mrb[3].mxu1  ;;  %v913_v42 = vpop.f32.mrb[3].mxu0  ;;  %v376_v25 = vrot.slane %v359_v16, %v375_v52 }
 0x18c   : > { %v3329_v39 = vadd.f32 %v593_v37, %v368_v21  ;;  %v957_v40 = vadd.f32 %v910_v38, %v590_v29 }
 0x18d   : > { %v2285_v16 = vmul.f32 -1.442695, %v956_v36 }
 0x190   : > { %v597_v43 = vpop.f32.mrb[4].mxu1 }
 0x191   : > { %v3331_v44 = vadd.f32 %v597_v43, %v364_v20  ;;  %v599_v45 = vpop.f32.mrb[5].mxu1 }
 0x192   : > { %v3333_v46 = vadd.f32 %v599_v45, %v368_v21  ;;  %v601_v47 = vpop.f32.mrb[6].mxu1  ;;  %v2286_v45 = vmul.f32 -1.442695, %v957_v40 }
 0x193   : > { %v3335_v48 = vadd.f32 %v601_v47, %v364_v20  ;;  %v603_v49 = vpop.f32.mrb[7].mxu1 }
 0x194   : > { %v3337_v50 = vadd.f32 %v603_v49, %v368_v21  ;;  %2651 = vpow2.f32 %v2286_v45  ;;  %v676_v45 = vld [vmem:[#allocation3] sm:$0xff] }
 0x195   : > { %2653 = vpow2.f32 %v2285_v16 }
 0x19e   : > { %v2652_v49 = vpop.eup %2651 }
 0x19f   : > { %v2654_v51 = vpop.eup %2653  ;;  %v969_v52 = vadd.f32 1.0, %v2652_v49 }
 0x1a1   : > { %2655 = vrcp.f32 %v969_v52 }
 0x1a8   : > { %v640_v10 = vpop.f32.mrb[8].mxu1 }
 0x1a9   : > { %v642_v24 = vpop.f32.mrb[9].mxu1 }
 0x1aa   : > { %v644_v28 = vpop.f32.mrb[10].mxu1 }
 0x1ab   : > { %v3341_v29 = vadd.f32 %v644_v28, %v372_v53  ;;  %v646_v32 = vpop.f32.mrb[11].mxu1  ;;  %v963_v28 = vadd.f32 1.0, %v2654_v51  ;;  %v2656_v36 = vpop.eup %2655 }
 0x1ac   : > { %v3343_v34 = vadd.f32 %v646_v32, %v376_v25  ;;  %v641_v32 = vadd.f32 %v640_v10, %v372_v53 }
 0x1ad   : > { %2657 = vrcp.f32 %v963_v28 }
 0x1b0   : > { %v650_v37 = vpop.f32.mrb[12].mxu1 }
 0x1b1   : > { %v3345_v20 = vadd.f32 %v650_v37, %v372_v53  ;;  %v652_v38 = vpop.f32.mrb[13].mxu1  ;;  %v643_v37 = vadd.f32 %v642_v24, %v376_v25 }
 0x1b2   : > { %v3347_v21 = vadd.f32 %v652_v38, %v376_v25  ;;  %v654_v41 = vpop.f32.mrb[14].mxu1 }
 0x1b3   : > { %v3349_v42 = vadd.f32 %v654_v41, %v372_v53  ;;  %v656_v43 = vpop.f32.mrb[15].mxu1 }
 0x1b4   : > { %v3351_v47 = vadd.f32 %v656_v43, %v376_v25 }
 0x1b6   : > { %3542 = vst [vmem:[#allocation20_spill] sm:$0xff] %v3351_v47  ;;  %v979_v47 = vmul.f32 %v2656_v36, %v676_v45  ;;  %v2624_v45 = vld [vmem:[#allocation11 + $0xe0] ss:$16 sps:$4 sm:$0xff]  }
 0x1b7   : > { %v2658_v16 = vpop.eup %2657 }
 0x1c8   : > { %v949_v17 = vpop.f32.mrb[16].mxu1 }
 0x1c9   : > { %v958_v38 = vadd.f32 %v949_v17, %v641_v32  ;;  %v951_v13 = vpop.f32.mrb[17].mxu1 }
 0x1ca   : > { %v959_v41 = vadd.f32 %v951_v13, %v643_v37  ;;  %v953_v3 = vpop.f32.mrb[18].mxu1 }
 0x1cb   : > { %2659 = vtanh.f32 %v958_v38  ;;  %v954_v40 = vpop.f32.mrb[19].mxu1 }
 0x1cc   : > { %v2287_v43 = vmul.f32 -1.442695, %v959_v41 }
 0x1ce   : > { %2661 = vpow2.f32 %v2287_v43 }
 0x1d5   : > { %v2660_v11 = vpop.eup %2659 }
 0x1d6   : > { %v980_v49 = vmul.f32 %v2660_v11, %v2658_v16  ;;  %v3543_v11 = vmov 0   ;;  %v2629_v16 = vld [vmem:[#allocation12 + $0x4] ss:$8 sps:$4 sm:$0xff]  }
 0x1d8   : > { %v2662_v51 = vpop.eup %2661  ;;  %v3353_v53 = vadd.f32 %v980_v49, %v979_v47 }
 0x1d9   : > { %v976_v10 = vadd.f32 1.0, %v2662_v51 }
 0x1da   : > { %2663 = vtanh.f32 %v3353_v53 }
 0x1db   : > { %2665 = vrcp.f32 %v976_v10 }
 0x1e4   : > { %v2664_v17 = vpop.eup %2663 }
 0x1e5   : > { %v2666_v13 = vpop.eup %2665 }
 0x1e6   : > { %v3356_v3 = vmul.f32 %v2666_v13, %v2664_v17 }
 0x1e8   : > { %v989_v24 = vpack.c.bf16 %v3356_v3, %v3356_v3 }
 0x1ea   : > { %1215 = vmatmul.mubr.bf16.vlgmr.msra.gmra.mrb[4].mxu0 %v989_v24  ;;  %1256 = vmatmul.mubr.bf16.vlgmr.msra.gmra.mrb[20].mxu1 %v989_v24 }
 0x1eb   : > { %1491 = vmatpush1.bf16.msra.mxu0 %v3176_v5  ;;  %1532 = vmatpush1.bf16.msra.mxu1 %v3247_v55 }
 0x1ec   : > { %1492 = vmatprep.subr.bf16.mxu0 %v3179_v8  ;;  %1533 = vmatprep.subr.bf16.mxu1 %v3250_v56 }
 0x1ed   : > { %1522 = vmatprep.mubr.bf16.mxu0 %v3543_v11  ;;  %1563 = vmatprep.mubr.bf16.mxu1 %v3543_v11 }
 0x1ef   : > { %1493 = vmatpush1.bf16.msra.mxu0 %v3182_v9  ;;  %1534 = vmatpush1.bf16.msra.mxu1 %v3255_v57 }
 0x1f0   : > { %1494 = vmatprep.subr.bf16.mxu0 %v3185_v12  ;;  %1535 = vmatprep.subr.bf16.mxu1 %v3259_v58 }
 0x1f3   : > { %1495 = vmatpush1.bf16.msra.mxu0 %v3188_v14  ;;  %1536 = vmatpush1.bf16.msra.mxu1 %v3262_v59 }
 0x1f4   : > { %1496 = vmatprep.subr.bf16.mxu0 %v3191_v15  ;;  %1537 = vmatprep.subr.bf16.mxu1 %v3265_v60 }
 0x1f7   : > { %1497 = vmatpush1.bf16.msra.mxu0 %v3194_v18  ;;  %1538 = vmatpush1.bf16.msra.mxu1 %v3268_v61 }
 0x1f8   : > { %1498 = vmatprep.subr.bf16.mxu0 %v3197_v19  ;;  %1539 = vmatprep.subr.bf16.mxu1 %v3272_v62 }
 0x1fb   : > { %1499 = vmatpush1.bf16.msra.mxu0 %v3200_v22  ;;  %1540 = vmatpush1.bf16.msra.mxu1 %v3275_v63 }
 0x1fc   : > { %1500 = vmatprep.subr.bf16.mxu0 %v3203_v23  ;;  %1541 = vmatprep.subr.bf16.mxu1 %v3278_v0 }
 0x1ff   : > { %1501 = vmatpush1.bf16.msra.mxu0 %v3206_v26  ;;  %1542 = vmatpush1.bf16.msra.mxu1 %v3281_v1 }
 0x200   : > { %1502 = vmatprep.subr.bf16.mxu0 %v3209_v27  ;;  %1543 = vmatprep.subr.bf16.mxu1 %v3284_v2 }
 0x203   : > { %1503 = vmatpush1.bf16.msra.mxu0 %v3212_v30  ;;  %1544 = vmatpush1.bf16.msra.mxu1 %v3287_v4 }
 0x204   : > { %1504 = vmatprep.subr.bf16.mxu0 %v3215_v31  ;;  %1545 = vmatprep.subr.bf16.mxu1 %v3290_v6 }
 0x207   : > { %1505 = vmatpush1.bf16.msra.mxu0 %v3217_v33  ;;  %1546 = vmatpush1.bf16.msra.mxu1 %v3293_v7 }
 0x208   : > { %1839 = vmatprep.subr.bf16.mxu1 %v3243_v54 }
 0x2bd   : > { %v1216_v5 = vpop.f32.mrb[4].mxu0  ;;  %v1257_v8 = vpop.f32.mrb[20].mxu1 }
 0x2be   : > { %v1264_v9 = vadd.f32 %v1216_v5, %v3327_v35  ;;  %v1266_v12 = vadd.f32 %v1257_v8, %v3341_v29  ;;  %v1218_v14 = vpop.f32.mrb[5].mxu0  ;;  %v1259_v15 = vpop.f32.mrb[21].mxu1 }
 0x2bf   : > { %v1265_v18 = vadd.f32 %v1218_v14, %v3329_v39  ;;  %v1267_v19 = vadd.f32 %v1259_v15, %v3343_v34  ;;  %v1220_v22 = vpop.f32.mrb[6].mxu0  ;;  %v1261_v23 = vpop.f32.mrb[22].mxu1 }
 0x2c0   : > { %v2320_v26 = vmul.f32 -1.442695, %v1264_v9  ;;  %v1221_v27 = vpop.f32.mrb[7].mxu0  ;;  %v1262_v30 = vpop.f32.mrb[23].mxu1 }
 0x2c1   : > { %v2321_v31 = vmul.f32 -1.442695, %v1265_v18  ;;  %v2322_v33 = vmul.f32 -1.442695, %v1267_v19 }
 0x2c2   : > { %2667 = vpow2.f32 %v2320_v26 }
 0x2c3   : > { %2669 = vpow2.f32 %v2321_v31 }
 0x2c4   : > { %2671 = vpow2.f32 %v2322_v33 }
 0x2c5   : > { %2673 = vtanh.f32 %v1266_v12 }
 0x2cc   : > { %v2668_v54 = vpop.eup %2667 }
 0x2cd   : > { %v2670_v25 = vpop.eup %2669  ;;  %v1271_v35 = vadd.f32 1.0, %v2668_v54 }
 0x2ce   : > { %v1277_v29 = vadd.f32 1.0, %v2670_v25  ;;  %v2672_v39 = vpop.eup %2671 }
 0x2cf   : > { %2675 = vrcp.f32 %v1271_v35  ;;  %v2674_v47 = vpop.eup %2673  ;;  %v1284_v32 = vadd.f32 1.0, %v2672_v39  ;;  %v2627_v39 = vld [vmem:[#allocation12] ss:$8 sps:$4 sm:$0xff]  }
 0x2d0   : > { %2677 = vrcp.f32 %v1277_v29 }
 0x2d1   : > { %2679 = vrcp.f32 %v1284_v32  ;;  %v2633_v32 = vld [vmem:[#allocation12 + $0x20] ss:$8 sps:$4 sm:$0xff]  }
 0x2d9   : > { %v2676_v34 = vpop.eup %2675 }
 0x2da   : > { %v2678_v52 = vpop.eup %2677  ;;  %v1288_v28 = vmul.f32 %v2676_v34, %v2674_v47  ;;  %v2632_v34 = vld [vmem:[#allocation12 + $0x14] ss:$8 sps:$4 sm:$0xff]  }
 0x2db   : > { %v1287_v37 = vmul.f32 %v2678_v52, %v3353_v53  ;;  %v2680_v41 = vpop.eup %2679  ;;  %v2630_v52 = vld [vmem:[#allocation12 + $0x10] ss:$8 sps:$4 sm:$0xff]  }
 0x2dd   : > { %v3398_v38 = vadd.f32 %v1288_v28, %v1287_v37  ;;  %v2635_v28 = vld [vmem:[#allocation12 + $0x24] ss:$8 sps:$4 sm:$0xff]   ;;  %v2638_v37 = vld [vmem:[#allocation12 + $0x34] ss:$8 sps:$4 sm:$0xff]  }
 0x2df   : > { %2681 = vtanh.f32 %v3398_v38 }
 0x2e9   : > { %v2682_v40 = vpop.eup %2681 }
 0x2ea   : > { %v3401_v43 = vmul.f32 %v2682_v40, %v2680_v41  ;;  %v2641_v41 = vld [vmem:[#allocation12 + $0x44] ss:$8 sps:$4 sm:$0xff]   ;;  %v2639_v40 = vld [vmem:[#allocation12 + $0x40] ss:$8 sps:$4 sm:$0xff]  }
 0x2ec   : > { %v1297_v36 = vpack.c.bf16 %v3401_v43, %v3401_v43 }
 0x2ee   : > { %1523 = vmatmul.mubr.bf16.vlgmr.msra.gmra.mrb[8].mxu0 %v1297_v36  ;;  %1564 = vmatmul.mubr.bf16.vlgmr.msra.gmra.mrb[24].mxu1 %v1297_v36  ;;  %v2644_v36 = vld [vmem:[#allocation12 + $0x54] ss:$8 sps:$4 sm:$0xff]  }
 0x2ef   : > { %1840 = vmatpush1.bf16.msra.mxu1 %v3247_v55  ;;  %1830 = vmatprep.mubr.bf16.mxu0 %v3543_v11  ;;  %v2605_v55 = vld [vmem:[#allocation11 + $0x4] ss:$16 sps:$4 sm:$0xff]  }
 0x2f0   : > { %1841 = vmatprep.subr.bf16.mxu1 %v3250_v56  ;;  %1871 = vmatprep.mubr.bf16.mxu1 %v3543_v11  ;;  %v2603_v56 = vld [vmem:[#allocation11] ss:$16 sps:$4 sm:$0xff]  }
 0x2f1   : > { %1798 = vmatprep.subr.bf16.mxu0 %v2605_v55  ;;  %v2642_v55 = vld [vmem:[#allocation12 + $0x50] ss:$8 sps:$4 sm:$0xff]  }
 0x2f2   : > { %1799 = vmatpush1.bf16.msra.mxu0 %v2603_v56  ;;  %v2647_v56 = vld [vmem:[#allocation12 + $0x64] ss:$8 sps:$4 sm:$0xff]  }
 0x2f3   : > { %1842 = vmatpush1.bf16.msra.mxu1 %v3255_v57  ;;  %v2608_v57 = vld [vmem:[#allocation11 + $0x24] ss:$16 sps:$4 sm:$0xff]  }
 0x2f4   : > { %1843 = vmatprep.subr.bf16.mxu1 %v3259_v58  ;;  %v2606_v58 = vld [vmem:[#allocation11 + $0x20] ss:$16 sps:$4 sm:$0xff]   ;;  %1800 = vmatprep.subr.bf16.mxu0 %v2608_v57 }
 0x2f5   : > { %v2645_v57 = vld [vmem:[#allocation12 + $0x60] ss:$8 sps:$4 sm:$0xff]  }
 0x2f6   : > { %1801 = vmatpush1.bf16.msra.mxu0 %v2606_v58  ;;  %v2650_v58 = vld [vmem:[#allocation12 + $0x74] ss:$8 sps:$4 sm:$0xff]  }
 0x2f7   : > { %1844 = vmatpush1.bf16.msra.mxu1 %v3262_v59  ;;  %v2611_v59 = vld [vmem:[#allocation11 + $0x44] ss:$16 sps:$4 sm:$0xff]  }
 0x2f8   : > { %1845 = vmatprep.subr.bf16.mxu1 %v3265_v60  ;;  %v2609_v60 = vld [vmem:[#allocation11 + $0x40] ss:$16 sps:$4 sm:$0xff]   ;;  %1802 = vmatprep.subr.bf16.mxu0 %v2611_v59 }
 0x2f9   : > { %v2648_v59 = vld [vmem:[#allocation12 + $0x70] ss:$8 sps:$4 sm:$0xff]  }
 0x2fa   : > { %1803 = vmatpush1.bf16.msra.mxu0 %v2609_v60  ;;  %v1915_v60 = vpack.c.bf16 %v3401_v43, %v3356_v3 }
 0x2fb   : > { %1846 = vmatpush1.bf16.msra.mxu1 %v3268_v61  ;;  %v2614_v61 = vld [vmem:[#allocation11 + $0x64] ss:$16 sps:$4 sm:$0xff]  }
 0x2fc   : > { %1847 = vmatprep.subr.bf16.mxu1 %v3272_v62  ;;  %v2612_v62 = vld [vmem:[#allocation11 + $0x60] ss:$16 sps:$4 sm:$0xff]   ;;  %1804 = vmatprep.subr.bf16.mxu0 %v2614_v61 }
 0x2fe   : > { %1805 = vmatpush1.bf16.msra.mxu0 %v2612_v62 }
 0x2ff   : > { %1848 = vmatpush1.bf16.msra.mxu1 %v3275_v63  ;;  %v2617_v63 = vld [vmem:[#allocation11 + $0x84] ss:$16 sps:$4 sm:$0xff]  }
 0x300   : > { %1849 = vmatprep.subr.bf16.mxu1 %v3278_v0  ;;  %v2615_v0 = vld [vmem:[#allocation11 + $0x80] ss:$16 sps:$4 sm:$0xff]   ;;  %1806 = vmatprep.subr.bf16.mxu0 %v2617_v63 }
 0x302   : > { %1807 = vmatpush1.bf16.msra.mxu0 %v2615_v0 }
 0x303   : > { %1850 = vmatpush1.bf16.msra.mxu1 %v3281_v1  ;;  %v2618_v1 = vld [vmem:[#allocation11 + $0xa0] ss:$16 sps:$4 sm:$0xff]  }
 0x304   : > { %1851 = vmatprep.subr.bf16.mxu1 %v3284_v2  ;;  %v2620_v2 = vld [vmem:[#allocation11 + $0xa4] ss:$16 sps:$4 sm:$0xff]  }
 0x305   : > { %1808 = vmatprep.subr.bf16.mxu0 %v2620_v2 }
 0x306   : > { %1809 = vmatpush1.bf16.msra.mxu0 %v2618_v1 }
 0x307   : > { %1852 = vmatpush1.bf16.msra.mxu1 %v3287_v4  ;;  %v2623_v4 = vld [vmem:[#allocation11 + $0xc4] ss:$16 sps:$4 sm:$0xff]  }
 0x308   : > { %1853 = vmatprep.subr.bf16.mxu1 %v3290_v6  ;;  %v2621_v6 = vld [vmem:[#allocation11 + $0xc0] ss:$16 sps:$4 sm:$0xff]   ;;  %1810 = vmatprep.subr.bf16.mxu0 %v2623_v4 }
 0x30a   : > { %1811 = vmatpush1.bf16.msra.mxu0 %v2621_v6  ;;  %v3544_v6 = vld [vmem:[#allocation20_spill] sm:$0xff] }
 0x30b   : > { %1854 = vmatpush1.bf16.msra.mxu1 %v3293_v7  ;;  %v2626_v7 = vld [vmem:[#allocation11 + $0xe4] ss:$16 sps:$4 sm:$0xff]  }
 0x30c   : > { %1812 = vmatprep.subr.bf16.mxu0 %v2626_v7 }
 0x30e   : > { %1813 = vmatpush1.bf16.msra.mxu0 %v2624_v45 }
 0x30f   : > { %2025 = vmatprep.subr.bf16.mxu0 %v2629_v16 }
 0x3c1   : > { %v1524_v49 = vpop.f32.mrb[8].mxu0  ;;  %v1565_v51 = vpop.f32.mrb[24].mxu1 }
 0x3c2   : > { %v1572_v53 = vadd.f32 %v1524_v49, %v3331_v44  ;;  %v1574_v10 = vadd.f32 %v1565_v51, %v3345_v20  ;;  %v1526_v17 = vpop.f32.mrb[9].mxu0  ;;  %v1567_v13 = vpop.f32.mrb[25].mxu1 }
 0x3c3   : > { %v1573_v24 = vadd.f32 %v1526_v17, %v3333_v46  ;;  %v1575_v5 = vadd.f32 %v1567_v13, %v3347_v21  ;;  %v1528_v8 = vpop.f32.mrb[10].mxu0  ;;  %v1569_v9 = vpop.f32.mrb[26].mxu1  ;;  %v1933_v17 = vld [vmem:[%s3515_s5] sm:$0x3] }
 0x3c4   : > { %v2355_v12 = vmul.f32 -1.442695, %v1572_v53  ;;  %v1529_v14 = vpop.f32.mrb[11].mxu0  ;;  %v1570_v15 = vpop.f32.mrb[27].mxu1 }
 0x3c5   : > { %v2356_v18 = vmul.f32 -1.442695, %v1573_v24  ;;  %v2357_v19 = vmul.f32 -1.442695, %v1575_v5 }
 0x3c6   : > { %2683 = vpow2.f32 %v2355_v12  ;;  %v3545_v12 = vld [vmem:[#allocation19_spill] sm:$0xff] }
 0x3c7   : > { %2685 = vpow2.f32 %v2356_v18  ;;  %v3546_v14 = vsub.s32 0, %v3545_v12 }
 0x3c8   : > { %2687 = vpow2.f32 %v2357_v19  ;;  %v3547_v19 = vsub.s32 1, %v3545_v12 }
 0x3c9   : > { %2689 = vtanh.f32 %v1574_v10  ;;  %v1938_v15 = vrot.slane %v1933_v17, %v3546_v14 }
 0x3d0   : > { %v2684_v22 = vpop.eup %2683 }
 0x3d1   : > { %v2686_v23 = vpop.eup %2685  ;;  %v1579_v44 = vadd.f32 1.0, %v2684_v22  ;;  %v1942_v22 = vrot.slane %v1933_v17, %v3547_v19 }
 0x3d2   : > { %v1585_v20 = vadd.f32 1.0, %v2686_v23  ;;  %v2688_v46 = vpop.eup %2687 }
 0x3d3   : > { %2691 = vrcp.f32 %v1579_v44  ;;  %v2690_v26 = vpop.eup %2689  ;;  %v1592_v31 = vadd.f32 1.0, %v2688_v46 }
 0x3d4   : > { %2693 = vrcp.f32 %v1585_v20 }
 0x3d5   : > { %2695 = vrcp.f32 %v1592_v31 }
 0x3dd   : > { %v2692_v21 = vpop.eup %2691 }
 0x3de   : > { %v2694_v27 = vpop.eup %2693  ;;  %v1596_v30 = vmul.f32 %v2692_v21, %v2690_v26 }
 0x3df   : > { %v1595_v33 = vmul.f32 %v2694_v27, %v3398_v38  ;;  %v2696_v25 = vpop.eup %2695  ;;  %v2636_v38 = vld [vmem:[#allocation12 + $0x30] ss:$8 sps:$4 sm:$0xff]  }
 0x3e1   : > { %v3427_v54 = vadd.f32 %v1596_v30, %v1595_v33 }
 0x3e3   : > { %2697 = vtanh.f32 %v3427_v54 }
 0x3ed   : > { %v2698_v35 = vpop.eup %2697 }
 0x3ee   : > { %v3430_v29 = vmul.f32 %v2698_v35, %v2696_v25 }
 0x3f0   : > { %v1605_v47 = vpack.c.bf16 %v3430_v29, %v3430_v29 }
 0x3f2   : > { %1831 = vmatmul.mubr.bf16.vlgmr.msra.gmra.mrb[12].mxu0 %v1605_v47  ;;  %1872 = vmatmul.mubr.bf16.vlgmr.msra.gmra.mrb[28].mxu1 %v1605_v47 }
 0x3f3   : > { %2026 = vmatpush1.bf16.msra.mxu0 %v2627_v39  ;;  %2057 = vmatprep.mubr.bf16.mxu0 %v3543_v11 }
 0x3f4   : > { %2027 = vmatprep.subr.bf16.mxu0 %v2632_v34 }
 0x3f7   : > { %2028 = vmatpush1.bf16.msra.mxu0 %v2630_v52 }
 0x3f8   : > { %2029 = vmatprep.subr.bf16.mxu0 %v2635_v28 }
 0x3fb   : > { %2030 = vmatpush1.bf16.msra.mxu0 %v2633_v32 }
 0x3fc   : > { %2031 = vmatprep.subr.bf16.mxu0 %v2638_v37 }
 0x3ff   : > { %2032 = vmatpush1.bf16.msra.mxu0 %v2636_v38 }
 0x400   : > { %2033 = vmatprep.subr.bf16.mxu0 %v2641_v41 }
 0x403   : > { %2034 = vmatpush1.bf16.msra.mxu0 %v2639_v40 }
 0x404   : > { %2035 = vmatprep.subr.bf16.mxu0 %v2644_v36 }
 0x407   : > { %2036 = vmatpush1.bf16.msra.mxu0 %v2642_v55 }
 0x408   : > { %2037 = vmatprep.subr.bf16.mxu0 %v2647_v56 }
 0x40b   : > { %2038 = vmatpush1.bf16.msra.mxu0 %v2645_v57 }
 0x40c   : > { %2039 = vmatprep.subr.bf16.mxu0 %v2650_v58 }
 0x40f   : > { %2040 = vmatpush1.bf16.msra.mxu0 %v2648_v59 }
 0x412   : > { %2058 = vmatmul.mubr.bf16.vlgmr.msra.gmra.mrb[16].mxu0 %v1915_v60 }
 0x413   : > { %2067 = vmatprep.mubr.bf16.mxu0 %v3543_v11 }
 0x4c5   : > { %v1832_v61 = vpop.f32.mrb[12].mxu0  ;;  %v1873_v62 = vpop.f32.mrb[28].mxu1 }
 0x4c6   : > { %v1880_v63 = vadd.f32 %v1832_v61, %v3335_v48  ;;  %v1882_v0 = vadd.f32 %v1873_v62, %v3349_v42  ;;  %v1834_v1 = vpop.f32.mrb[13].mxu0  ;;  %v1875_v2 = vpop.f32.mrb[29].mxu1 }
 0x4c7   : > { %v1881_v4 = vadd.f32 %v1834_v1, %v3337_v50  ;;  %v1883_v7 = vadd.f32 %v1875_v2, %v3544_v6  ;;  %v1836_v45 = vpop.f32.mrb[14].mxu0  ;;  %v1877_v16 = vpop.f32.mrb[30].mxu1 }
 0x4c8   : > { %v2390_v49 = vmul.f32 -1.442695, %v1880_v63  ;;  %v1837_v51 = vpop.f32.mrb[15].mxu0  ;;  %v1878_v3 = vpop.f32.mrb[31].mxu1 }
 0x4c9   : > { %v2391_v43 = vmul.f32 -1.442695, %v1881_v4  ;;  %v2392_v11 = vmul.f32 -1.442695, %v1883_v7 }
 0x4ca   : > { %2699 = vpow2.f32 %v2390_v49 }
 0x4cb   : > { %2701 = vpow2.f32 %v2391_v43 }
 0x4cc   : > { %2703 = vpow2.f32 %v2392_v11 }
 0x4cd   : > { %2705 = vtanh.f32 %v1882_v0 }
 0x4d4   : > { %v2700_v53 = vpop.eup %2699 }
 0x4d5   : > { %v2702_v10 = vpop.eup %2701  ;;  %v1887_v48 = vadd.f32 1.0, %v2700_v53 }
 0x4d6   : > { %v1893_v42 = vadd.f32 1.0, %v2702_v10  ;;  %v2704_v50 = vpop.eup %2703 }
 0x4d7   : > { %2707 = vrcp.f32 %v1887_v48  ;;  %v2706_v13 = vpop.eup %2705  ;;  %v1900_v9 = vadd.f32 1.0, %v2704_v50 }
 0x4d8   : > { %2709 = vrcp.f32 %v1893_v42 }
 0x4d9   : > { %2711 = vrcp.f32 %v1900_v9 }
 0x4e1   : > { %v2708_v24 = vpop.eup %2707 }
 0x4e2   : > { %v2710_v5 = vpop.eup %2709  ;;  %v1904_v8 = vmul.f32 %v2708_v24, %v2706_v13 }
 0x4e3   : > { %v1903_v18 = vmul.f32 %v2710_v5, %v3427_v54  ;;  %v2712_v33 = vpop.eup %2711 }
 0x4e5   : > { %v1905_v23 = vadd.f32 %v1904_v8, %v1903_v18  ;;  %v2059_v44 = vpop.f32.mrb[16].mxu0 }
 0x4e6   : > { %v2060_v20 = vadd.f32 %v2059_v44, %v1938_v15  ;;  %v2061_v46 = vpop.f32.mrb[17].mxu0 }
 0x4e7   : > { %1910 = vst [vmem:[#allocation3] sm:$0xff] %v1905_v23  ;;  %v2062_v26 = vadd.f32 %v2061_v46, %v1942_v22  ;;  %v2063_v21 = vpop.f32.mrb[18].mxu0  ;;  %2713 = vtanh.f32 %v1905_v23 }
 0x4e8   : > { %2078 = vst [vmem:[%s3168_s26] sm:$0xff] %v2060_v20  ;;  %v2064_v27 = vadd.f32 %v2063_v21, %v1938_v15  ;;  %v2065_v30 = vpop.f32.mrb[19].mxu0 }
 0x4e9   : > { %2079 = vst [vmem:[%s3168_s26 + $0x8] sm:$0xff] %v2062_v26  ;;  %v2066_v31 = vadd.f32 %v2065_v30, %v1942_v22 }
 0x4ea   : > { %2080 = vst [vmem:[%s3168_s26 + $0x10] sm:$0xff] %v2064_v27 }
 0x4eb   : > { %2081 = vst [vmem:[%s3168_s26 + $0x18] sm:$0xff] %v2066_v31 }
 0x4f1   : > { %v2714_v54 = vpop.eup %2713 }
 0x4f2   : > { %v1907_v25 = vmul.f32 %v2714_v54, %v2712_v33 }
 0x4f4   : > { %1909 = vst [vmem:[#allocation2] sm:$0xff] %v1907_v25  ;;  %v1916_v35 = vpack.c.bf16 %v1907_v25, %v3430_v29 }
 0x4f6   : > { %2068 = vmatmul.mubr.bf16.gmra.mrb[20].mxu0 %v1916_v35 }
 0x5c9   : > { %v2069_v39 = vpop.f32.mrb[20].mxu0 }
 0x5ca   : > { %v2070_v47 = vadd.f32 %v2069_v39, %v1938_v15  ;;  %v2071_v34 = vpop.f32.mrb[21].mxu0 }
 0x5cb   : > { %v2072_v52 = vadd.f32 %v2071_v34, %v1942_v22  ;;  %v2073_v28 = vpop.f32.mrb[22].mxu0 }
 0x5cc   : > { %2082 = vst [vmem:[%s3168_s26 + $0x20] sm:$0xff] %v2070_v47  ;;  %v2074_v32 = vadd.f32 %v2073_v28, %v1938_v15  ;;  %v2075_v37 = vpop.f32.mrb[23].mxu0 }
 0x5cd   : > { %2083 = vst [vmem:[%s3168_s26 + $0x28] sm:$0xff] %v2072_v52  ;;  %v2076_v29 = vadd.f32 %v2075_v37, %v1942_v22 }
 0x5ce   : > { %2084 = vst [vmem:[%s3168_s26 + $0x30] sm:$0xff] %v2074_v32 }
 0x5cf   : > { %2085 = vst [vmem:[%s3168_s26 + $0x38] sm:$0xff] %v2076_v29 }
 0x5d0   : > { %2842 = shalt.err (!%p2839_p10)
}
 0x5d1   : > { %s2843_s26 = scalar_lea.hbm %s3461_s14, 1024  ;;  %s2847_s18 = scalar_lea.hbm %s3516_s6, 2048 }
 0x5d2   : > { %p2844_p3 = scmp.ne.s32.totalorder %s3461_s14, %s2843_s26  ;;  %p2848_p0 = scmp.lt.u32.totalorder %s3461_s14, %s3516_s6 }
 0x5d3   : > { %p2849_p6 = scmp.lt.u32.totalorder %s2847_s18, %s2843_s26  ;;  %p2851_p11 = scmp.lt.u32.totalorder %s2843_s26, %s3461_s14 }
 0x5d4   : > { %p2845_p12 = pnand %p2844_p3, %p3101_p5 }
 0x5d5   : > { %p2850_p8 = por %p2849_p6, %p2848_p0 }
 0x5d6   : > { %p2846_p9 = pneg %p2845_p12 }
 0x5d7   : > { %p2852_p7 = por %p2851_p11, %p2850_p8 }
 0x5d9   : > { %p2853_p13 = pnand %p2852_p7, %p2846_p9 }
 0x5db   : > { %2856 = shalt.err (!%p2853_p13)
}
 0x5dc   : > { %s2918_s13 = smov 256   ;;  %s2919_s9 = smov 16  }
 0x5dd   : > { %2432 = dma.vmem_to_hbm [thread:$0]  (%p3101_p5), %s3463_s7, 1024, %s3461_s14, %s2087_s25, %s2918_s13, %s2918_s13, %s2919_s9  }
 0x5de PF: > { %s2116_s12 = sand.u32 1, %s2891_s21   ;;  %p3548_p2 = scmp.ne.s32.totalorder %s3527_s28, 0 }
 0x5df   : > { %p3549_p1 = scmp.ge.s32.totalorder %s2903_s24, 2  ;;  %s2117_s19 = scalar_lea.sflag [#allocation8], %s2116_s12 }
 0x5e1   : > { %p2449_p4 = pnand %p3549_p1, %p3548_p2 }
 0x5e3   : > { %2886 = dma.done.wait (!%p2449_p4), %s2117_s19, 1024  }
 0x5e4   : > { %2888 = vsyncadd (!%p2449_p4), %s2117_s19, 4294966272  ;;  %p21_p10 = scmp.ge.s32.totalorder %s3087_s11, 4   ;;  %s3550_s21 = smov %s2895_s22 }
 0x5e5   : > { %s3551_s22 = smov %s2899_s23  ;;  %s3552_s23 = smov %s3097_s15 }
 0x5e6   : > { %s3553_s24 = smov %s3087_s11  ;;  %23 = sbr.rel (!%p21_p10) target bundleno = 7 (0x7), region = 105 }
 0x5ed   :  { %2122 = vsyncpa [#allocation7], 1 }
 0x5ee   :  { %2124 = vsyncpa [#allocation7 + $0x1], 1 }
 0x5ef   :  { %2125 = vsyncpa [#allocation10], 1 }
 0x5f0   :  { %2126 = vsyncpa [#allocation13], 1 }
 0x5f1   :  { %2127 = vsyncpa [#allocation8], 1 }
 0x5f2   :  { %2129 = vsyncpa [#allocation8 + $0x1], 1 }

</bundles_post_ra>
